<compile_context>
chip_gen: v5e
topology: v5e:2x2
jax: 0.10.0
libtpu: 0.0.40
codegen_flags: <defaults>
</compile_context>

<pallas_src>
import functools

import jax
import jax.numpy as jnp
from jax import lax
from jax.experimental import pallas as pl
from jax.experimental.pallas import tpu as pltpu

OUT_PAD = 128  # lane-dense padding for the final FC output


# ----------------------------------------------------------------------------
# Fused Pallas kernel
# ----------------------------------------------------------------------------
def fused_time_encoder_kernel(x_ref, h_emb_ref, h_rec_ref, *refs,
                              n_layers, seq_len, batch_pad, hidden):
    """Whole TimeEncoder forward in one kernel.

    x_ref      : (T, B_pad, Din)  time-major, batch zero-padded to 8 sublanes
    h_emb_ref  : (L, B_pad, H)    initial hidden, embedder stack
    h_rec_ref  : (L, B_pad, H)    initial hidden, recovery stack
    refs       : per GRU layer (emb layers then rec layers), 4 refs each:
                   wih_all (Din, 3H)  gates [r|z|n] along lanes
                   whh_all (H,  3H)
                   b_gx    (1,  3H)   = [b_ih_r+b_hh_r | b_ih_z+b_hh_z | b_ih_n]
                   b_hn    (1,  H)    = b_hh_n  (stays inside r*(...))
                 then emb_fc_w (H, H), emb_fc_b (1, H),
                      rec_fc_w (H, OUT_PAD), rec_fc_b (1, OUT_PAD)
                 then outputs: out (B_pad, OUT_PAD), h_rec_new (L, B_pad, H)
    """
    H = hidden
    n_gru_refs = 2 * n_layers * 4
    gru_refs = refs[:n_gru_refs]
    emb_fc_w_ref, emb_fc_b_ref, rec_fc_w_ref, rec_fc_b_ref = \
        refs[n_gru_refs:n_gru_refs + 4]
    out_ref = refs[n_gru_refs + 4]
    h_rec_out_ref = refs[n_gru_refs + 5]

    emb_layers = [gru_refs[4 * l: 4 * l + 4] for l in range(n_layers)]
    rec_layers = [gru_refs[4 * (n_layers + l): 4 * (n_layers + l) + 4]
                  for l in range(n_layers)]

    def run_gru_stack(seq, h0_ref, layer_refs, need_last_seq):
        """seq: (T, B_pad, Din_l) time-major.  Returns (last-layer sequence
        (T, B_pad, H) or None, list of per-layer final hidden states)."""
        cur = seq
        h_finals = []
        for l, (wih_ref, whh_ref, bgx_ref, bhn_ref) in enumerate(layer_refs):
            wih = wih_ref[...]                              # (Din_l, 3H)
            whh = whh_ref[...]                              # (H, 3H)
            bgx = bgx_ref[...]                              # (1, 3H)
            # Hoisted broadcast (JAX does not CSE broadcast_in_dim).
            bhn_b = jnp.broadcast_to(bhn_ref[...], (batch_pad, H))

            # Non-recurrent input projection for the whole sequence: ONE matmul.
            din = cur.shape[-1]
            gx = jnp.dot(cur.reshape(seq_len * batch_pad, din), wih,
                         preferred_element_type=jnp.float32) + bgx
            gx = gx.reshape(seq_len, batch_pad, 3 * H)      # tile-aligned view

            keep_seq = need_last_seq or (l < n_layers - 1)
            h = h0_ref[l]                                   # (B_pad, H) carry
            hs = []
            # T = 8 here: full unroll is fine.
            # TODO(synk): for large T switch to lax.fori_loop(unroll=4..8) with
            # a (T, B_pad, H) VMEM scratch to bound vreg live ranges.
            for t in range(seq_len):
                gx_t = gx[t]                                # (B_pad, 3H)
                gh = jnp.dot(h, whh,
                             preferred_element_type=jnp.float32)  # 1 MXU push
                # Fused r|z sigmoid on one (B_pad, 2H) slab (single EUP call).
                rz = jax.nn.sigmoid(gx_t[:, :2 * H] + gh[:, :2 * H])
                r = rz[:, :H]
                z = rz[:, H:]
                n = jnp.tanh(gx_t[:, 2 * H:] + r * (gh[:, 2 * H:] + bhn_b))
                h = (1.0 - z) * n + z * h
                if keep_seq:
                    hs.append(h)
            h_finals.append(h)
            cur = jnp.stack(hs, axis=0) if keep_seq else None
        return cur, h_finals

    x = x_ref[...]                                          # (T, B_pad, Din)

    # ---- Embedder: GRU stack -> FC(sigmoid(seq)) --------------------------
    emb_seq, _ = run_gru_stack(x, h_emb_ref, emb_layers, need_last_seq=True)
    emb_act = jax.nn.sigmoid(emb_seq)                       # (T, B_pad, H)
    emb_fc = (jnp.dot(emb_act.reshape(seq_len * batch_pad, H), emb_fc_w_ref[...],
                      preferred_element_type=jnp.float32) + emb_fc_b_ref[...])
    emb_fc = emb_fc.reshape(seq_len, batch_pad, H)

    # ---- Recovery: GRU stack -> FC(sigmoid(last step of last layer)) ------
    _, rec_finals = run_gru_stack(emb_fc, h_rec_ref, rec_layers,
                                  need_last_seq=False)
    last = jax.nn.sigmoid(rec_finals[-1])                   # (B_pad, H)
    out = (jnp.dot(last, rec_fc_w_ref[...],
                   preferred_element_type=jnp.float32) + rec_fc_b_ref[...])

    out_ref[...] = out.astype(out_ref.dtype)                # lane-dense store
    for l in range(n_layers):
        h_rec_out_ref[l] = rec_finals[l].astype(h_rec_out_ref.dtype)


# ----------------------------------------------------------------------------
# Parameter prep (done ONCE, outside the hot path)
# ----------------------------------------------------------------------------
def prepare_params(raw, hidden_dim, n_out):
    """Pre-transpose, fuse gates along the lane axis, fold r/z biases, and
    lane-pad the final FC."""
    H = hidden_dim

    def prep_stack(layers):
        prepped = []
        for (w_ih, w_hh, b_ih, b_hh) in layers:
            wih_all = w_ih.T                                 # (Din, 3H) [r|z|n]
            whh_all = w_hh.T                                 # (H, 3H)
            b_gx = jnp.concatenate(
                [b_ih[:2 * H] + b_hh[:2 * H],                # folded r|z biases
                 b_ih[2 * H:]], axis=0).reshape(1, 3 * H)    # b_ih_n
            b_hn = b_hh[2 * H:].reshape(1, H)                # stays inside r*(.)
            prepped.append((wih_all, whh_all, b_gx, b_hn))
        return prepped

    rec_fc_w = jnp.zeros((H, OUT_PAD), jnp.float32).at[:, :n_out].set(raw["rec_fc_w"].T)
    rec_fc_b = jnp.zeros((1, OUT_PAD), jnp.float32).at[:, :n_out].set(
        raw["rec_fc_b"].reshape(1, -1))

    return {
        "emb_gru": prep_stack(raw["emb_gru"]),
        "rec_gru": prep_stack(raw["rec_gru"]),
        "emb_fc_w": raw["emb_fc_w"].T,                       # (H, H)
        "emb_fc_b": raw["emb_fc_b"].reshape(1, -1),          # (1, H)
        "rec_fc_w": rec_fc_w,                                # (H, OUT_PAD)
        "rec_fc_b": rec_fc_b,                                # (1, OUT_PAD)
    }


# ----------------------------------------------------------------------------
# Forward wrapper: a single pallas_call
# ----------------------------------------------------------------------------
def time_encoder_forward(prepped, x, h_emb, h_rec, *, n_out):
    """x: (B, T, input_dim) batch_first; h_emb/h_rec: (L, B, H).
       Returns (out (B, n_out), new recovery hidden (L, B, H))."""
    B, T, Din = x.shape
    L, _, H = h_emb.shape
    B_pad = -(-B // 8) * 8                                   # pad batch to sublanes

    # time-major + batch padded to 8 sublanes (padding rows are zero)
    x_tm = jnp.transpose(x, (1, 0, 2))                                    # (T, B, Din)
    x_p = jnp.zeros((T, B_pad, Din), jnp.float32).at[:, :B, :].set(x_tm)
    h_emb_p = jnp.zeros((L, B_pad, H), jnp.float32).at[:, :B, :].set(h_emb)
    h_rec_p = jnp.zeros((L, B_pad, H), jnp.float32).at[:, :B, :].set(h_rec)

    flat_params = []
    for stack in ("emb_gru", "rec_gru"):
        for layer in prepped[stack]:
            flat_params.extend(layer)
    flat_params += [prepped["emb_fc_w"], prepped["emb_fc_b"],
                    prepped["rec_fc_w"], prepped["rec_fc_b"]]

    kernel = functools.partial(fused_time_encoder_kernel, n_layers=L,
                               seq_len=T, batch_pad=B_pad, hidden=H)
    vmem = pl.BlockSpec(memory_space=pltpu.MemorySpace.VMEM)

    out_p, h_rec_new_p = pl.pallas_call(
        kernel,
        out_shape=(jax.ShapeDtypeStruct((B_pad, OUT_PAD), jnp.float32),
                   jax.ShapeDtypeStruct((L, B_pad, H), jnp.float32)),
        in_specs=[vmem] * (3 + len(flat_params)),
        out_specs=(vmem, vmem),
    )(x_p, h_emb_p, h_rec_p, *flat_params)

    return out_p[:B, :n_out], h_rec_new_p[:, :B, :]


# ----------------------------------------------------------------------------
# Pure-JAX reference (correctness check, uses raw PyTorch-layout params)
# ----------------------------------------------------------------------------
def _ref_gru_layer(x_tm, h0, w_ih, w_hh, b_ih, b_hh):
    H = h0.shape[-1]

    def step(h, x_t):
        gx = x_t @ w_ih.T + b_ih
        gh = h @ w_hh.T + b_hh
        r = jax.nn.sigmoid(gx[:, :H] + gh[:, :H])
        z = jax.nn.sigmoid(gx[:, H:2 * H] + gh[:, H:2 * H])
        n = jnp.tanh(gx[:, 2 * H:] + r * gh[:, 2 * H:])
        h_new = (1.0 - z) * n + z * h
        return h_new, h_new

    hT, outs = lax.scan(step, h0, x_tm)
    return outs, hT


def _ref_forward(params, x, h_emb, h_rec):
    x_tm = jnp.transpose(x, (1, 0, 2))
    cur = x_tm
    for l, p in enumerate(params["emb_gru"]):
        cur, _ = _ref_gru_layer(cur, h_emb[l], *p)
    cur = jax.nn.sigmoid(cur) @ params["emb_fc_w"].T + params["emb_fc_b"]
    hs = []
    for l, p in enumerate(params["rec_gru"]):
        cur, hT = _ref_gru_layer(cur, h_rec[l], *p)
        hs.append(hT)
    out = jax.nn.sigmoid(cur[-1]) @ params["rec_fc_w"].T + params["rec_fc_b"]
    return out, jnp.stack(hs, axis=0)


# ----------------------------------------------------------------------------
# Deterministic parameter init (PyTorch GRU/Linear shapes)
# ----------------------------------------------------------------------------
def init_params(key, input_dim, hidden_dim, n_out, n_layers):
    def gru_params(key, in_dim):
        ps = []
        for l in range(n_layers):
            d_in = in_dim if l == 0 else hidden_dim
            key, k1, k2, k3, k4 = jax.random.split(key, 5)
            scale = 1.0 / jnp.sqrt(hidden_dim)
            ps.append((
                jax.random.uniform(k1, (3 * hidden_dim, d_in), jnp.float32, -scale, scale),
                jax.random.uniform(k2, (3 * hidden_dim, hidden_dim), jnp.float32, -scale, scale),
                jax.random.uniform(k3, (3 * hidden_dim,), jnp.float32, -scale, scale),
                jax.random.uniform(k4, (3 * hidden_dim,), jnp.float32, -scale, scale),
            ))
        return key, ps

    key, emb_gru = gru_params(key, input_dim)
    # Recovery consumes the Embedder FC output (width hidden_dim).
    key, rec_gru = gru_params(key, hidden_dim)
    key, k1, k2, k3, k4 = jax.random.split(key, 5)
    scale = 1.0 / jnp.sqrt(hidden_dim)
    return {
        "emb_gru": emb_gru,
        "emb_fc_w": jax.random.uniform(k1, (hidden_dim, hidden_dim), jnp.float32, -scale, scale),
        "emb_fc_b": jax.random.uniform(k2, (hidden_dim,), jnp.float32, -scale, scale),
        "rec_gru": rec_gru,
        "rec_fc_w": jax.random.uniform(k3, (n_out, hidden_dim), jnp.float32, -scale, scale),
        "rec_fc_b": jax.random.uniform(k4, (n_out,), jnp.float32, -scale, scale),
    }


# ----------------------------------------------------------------------------
if __name__ == "__main__":
    # TODO(synk): only the model_type='GRU' branch is implemented (LSTM branch omitted).
    B, T = 2, 8
    input_dim = 32          # PyTorch module implicitly requires input_dim == hidden_dim
    hidden_dim = 32
    n_out = 16
    n_layers = 2
    assert input_dim == hidden_dim, "Recovery GRU consumes Embedder FC output (width H)"

    key = jax.random.PRNGKey(0)
    key, kx = jax.random.split(key)
    x = jax.random.normal(kx, (B, T, input_dim), jnp.float32)
    h_emb = jnp.zeros((n_layers, B, hidden_dim), jnp.float32)   # Embedder.init_hidden()
    h_rec = jnp.zeros((n_layers, B, hidden_dim), jnp.float32)   # Recovery.init_hidden()

    raw_params = init_params(key, input_dim, hidden_dim, n_out, n_layers)
    prepped = prepare_params(raw_params, hidden_dim, n_out)     # one-time prep

    fwd = jax.jit(functools.partial(time_encoder_forward, n_out=n_out))
    out, h_rec_new = fwd(prepped, x, h_emb, h_rec)
    jax.block_until_ready((out, h_rec_new))

    out_ref, h_ref = _ref_forward(raw_params, x, h_emb, h_rec)
    assert out.shape == (B, n_out) and h_rec_new.shape == (n_layers, B, hidden_dim)
    assert jnp.allclose(out, out_ref, atol=2e-3, rtol=2e-3)
    assert jnp.allclose(h_rec_new, h_ref, atol=2e-3, rtol=2e-3)

    print("KERNEL_OK")
</pallas_src>

<mosaic_0001>
module attributes {stable_mosaic.version = 11 : i64} {
  func.func @fused_time_encoder_kernel(%arg0: memref<8x8x32xf32, #tpu.memory_space<vmem>>, %arg1: memref<2x8x32xf32, #tpu.memory_space<vmem>>, %arg2: memref<2x8x32xf32, #tpu.memory_space<vmem>>, %arg3: memref<32x96xf32, #tpu.memory_space<vmem>>, %arg4: memref<32x96xf32, #tpu.memory_space<vmem>>, %arg5: memref<1x96xf32, #tpu.memory_space<vmem>>, %arg6: memref<1x32xf32, #tpu.memory_space<vmem>>, %arg7: memref<32x96xf32, #tpu.memory_space<vmem>>, %arg8: memref<32x96xf32, #tpu.memory_space<vmem>>, %arg9: memref<1x96xf32, #tpu.memory_space<vmem>>, %arg10: memref<1x32xf32, #tpu.memory_space<vmem>>, %arg11: memref<32x96xf32, #tpu.memory_space<vmem>>, %arg12: memref<32x96xf32, #tpu.memory_space<vmem>>, %arg13: memref<1x96xf32, #tpu.memory_space<vmem>>, %arg14: memref<1x32xf32, #tpu.memory_space<vmem>>, %arg15: memref<32x96xf32, #tpu.memory_space<vmem>>, %arg16: memref<32x96xf32, #tpu.memory_space<vmem>>, %arg17: memref<1x96xf32, #tpu.memory_space<vmem>>, %arg18: memref<1x32xf32, #tpu.memory_space<vmem>>, %arg19: memref<32x32xf32, #tpu.memory_space<vmem>>, %arg20: memref<1x32xf32, #tpu.memory_space<vmem>>, %arg21: memref<32x128xf32, #tpu.memory_space<vmem>>, %arg22: memref<1x128xf32, #tpu.memory_space<vmem>>, %arg23: memref<8x128xf32, #tpu.memory_space<vmem>>, %arg24: memref<2x8x32xf32, #tpu.memory_space<vmem>>) attributes {dimension_semantics = [], scalar_prefetch = 0 : i64, scratch_operands = 0 : i64, tpu.core_type = #tpu.core_type<tc>} {
    %c0 = arith.constant 0 : index
    %c0_0 = arith.constant 0 : index
    %c0_1 = arith.constant 0 : index
    %0 = vector.load %arg0[%c0, %c0_0, %c0_1] : memref<8x8x32xf32, #tpu.memory_space<vmem>>, vector<8x8x32xf32>
    %c0_2 = arith.constant 0 : index
    %c0_3 = arith.constant 0 : index
    %1 = vector.load %arg3[%c0_2, %c0_3] : memref<32x96xf32, #tpu.memory_space<vmem>>, vector<32x96xf32>
    %c0_4 = arith.constant 0 : index
    %c0_5 = arith.constant 0 : index
    %2 = vector.load %arg4[%c0_4, %c0_5] : memref<32x96xf32, #tpu.memory_space<vmem>>, vector<32x96xf32>
    %c0_6 = arith.constant 0 : index
    %c0_7 = arith.constant 0 : index
    %3 = vector.load %arg5[%c0_6, %c0_7] : memref<1x96xf32, #tpu.memory_space<vmem>>, vector<1x96xf32>
    %c0_8 = arith.constant 0 : index
    %c0_9 = arith.constant 0 : index
    %4 = vector.load %arg6[%c0_8, %c0_9] : memref<1x32xf32, #tpu.memory_space<vmem>>, vector<1x32xf32>
    %5 = vector.shape_cast %4 : vector<1x32xf32> to vector<1x32xf32>
    %6 = vector.broadcast %5 : vector<1x32xf32> to vector<8x32xf32>
    %7 = vector.shape_cast %0 : vector<8x8x32xf32> to vector<64x32xf32>
    %cst = arith.constant dense<0.000000e+00> : vector<64x96xf32>
    %8 = tpu.matmul %7, %1, %cst {dimension_numbers = #tpu.dot_dimension_numbers<[1], [0], [0], [1], [0, 0, 1, 1], [], []>} : vector<64x32xf32>, vector<32x96xf32>, vector<64x96xf32> -> vector<64x96xf32>
    %9 = vector.broadcast %3 : vector<1x96xf32> to vector<64x96xf32>
    %10 = arith.addf %8, %9 : vector<64x96xf32>
    %11 = vector.shape_cast %10 : vector<64x96xf32> to vector<8x8x96xf32>
    %c0_10 = arith.constant 0 : index
    %c0_11 = arith.constant 0 : index
    %c0_12 = arith.constant 0 : index
    %12 = vector.load %arg1[%c0_10, %c0_11, %c0_12] : memref<2x8x32xf32, #tpu.memory_space<vmem>>, vector<1x8x32xf32>
    %13 = vector.shape_cast %12 : vector<1x8x32xf32> to vector<8x32xf32>
    %14 = vector.extract_strided_slice %11 {offsets = [0, 0, 0], sizes = [1, 8, 96], strides = [1, 1, 1]} : vector<8x8x96xf32> to vector<1x8x96xf32>
    %15 = vector.shape_cast %14 : vector<1x8x96xf32> to vector<8x96xf32>
    %cst_13 = arith.constant dense<0.000000e+00> : vector<8x96xf32>
    %16 = tpu.matmul %13, %2, %cst_13 {dimension_numbers = #tpu.dot_dimension_numbers<[1], [0], [0], [1], [0, 0, 1, 1], [], []>} : vector<8x32xf32>, vector<32x96xf32>, vector<8x96xf32> -> vector<8x96xf32>
    %17 = vector.extract_strided_slice %15 {offsets = [0, 0], sizes = [8, 64], strides = [1, 1]} : vector<8x96xf32> to vector<8x64xf32>
    %18 = vector.extract_strided_slice %16 {offsets = [0, 0], sizes = [8, 64], strides = [1, 1]} : vector<8x96xf32> to vector<8x64xf32>
    %19 = arith.addf %17, %18 : vector<8x64xf32>
    %20 = arith.negf %19 : vector<8x64xf32>
    %21 = math.exp %20 : vector<8x64xf32>
    %cst_14 = arith.constant 1.000000e+00 : f32
    %22 = vector.broadcast %cst_14 : f32 to vector<8x64xf32>
    %23 = arith.addf %22, %21 : vector<8x64xf32>
    %24 = arith.divf %22, %23 : vector<8x64xf32>
    %25 = vector.extract_strided_slice %24 {offsets = [0, 0], sizes = [8, 32], strides = [1, 1]} : vector<8x64xf32> to vector<8x32xf32>
    %26 = vector.extract_strided_slice %24 {offsets = [0, 32], sizes = [8, 32], strides = [1, 1]} : vector<8x64xf32> to vector<8x32xf32>
    %27 = vector.extract_strided_slice %15 {offsets = [0, 64], sizes = [8, 32], strides = [1, 1]} : vector<8x96xf32> to vector<8x32xf32>
    %28 = vector.extract_strided_slice %16 {offsets = [0, 64], sizes = [8, 32], strides = [1, 1]} : vector<8x96xf32> to vector<8x32xf32>
    %29 = arith.addf %28, %6 : vector<8x32xf32>
    %30 = arith.mulf %25, %29 : vector<8x32xf32>
    %31 = arith.addf %27, %30 : vector<8x32xf32>
    %32 = math.tanh %31 : vector<8x32xf32>
    %cst_15 = arith.constant 1.000000e+00 : f32
    %33 = vector.broadcast %cst_15 : f32 to vector<8x32xf32>
    %34 = arith.subf %33, %26 : vector<8x32xf32>
    %35 = arith.mulf %34, %32 : vector<8x32xf32>
    %36 = arith.mulf %26, %13 : vector<8x32xf32>
    %37 = arith.addf %35, %36 : vector<8x32xf32>
    %38 = vector.extract_strided_slice %11 {offsets = [1, 0, 0], sizes = [1, 8, 96], strides = [1, 1, 1]} : vector<8x8x96xf32> to vector<1x8x96xf32>
    %39 = vector.shape_cast %38 : vector<1x8x96xf32> to vector<8x96xf32>
    %cst_16 = arith.constant dense<0.000000e+00> : vector<8x96xf32>
    %40 = tpu.matmul %37, %2, %cst_16 {dimension_numbers = #tpu.dot_dimension_numbers<[1], [0], [0], [1], [0, 0, 1, 1], [], []>} : vector<8x32xf32>, vector<32x96xf32>, vector<8x96xf32> -> vector<8x96xf32>
    %41 = vector.extract_strided_slice %39 {offsets = [0, 0], sizes = [8, 64], strides = [1, 1]} : vector<8x96xf32> to vector<8x64xf32>
    %42 = vector.extract_strided_slice %40 {offsets = [0, 0], sizes = [8, 64], strides = [1, 1]} : vector<8x96xf32> to vector<8x64xf32>
    %43 = arith.addf %41, %42 : vector<8x64xf32>
    %44 = arith.negf %43 : vector<8x64xf32>
    %45 = math.exp %44 : vector<8x64xf32>
    %cst_17 = arith.constant 1.000000e+00 : f32
    %46 = vector.broadcast %cst_17 : f32 to vector<8x64xf32>
    %47 = arith.addf %46, %45 : vector<8x64xf32>
    %48 = arith.divf %46, %47 : vector<8x64xf32>
    %49 = vector.extract_strided_slice %48 {offsets = [0, 0], sizes = [8, 32], strides = [1, 1]} : vector<8x64xf32> to vector<8x32xf32>
    %50 = vector.extract_strided_slice %48 {offsets = [0, 32], sizes = [8, 32], strides = [1, 1]} : vector<8x64xf32> to vector<8x32xf32>
    %51 = vector.extract_strided_slice %39 {offsets = [0, 64], sizes = [8, 32], strides = [1, 1]} : vector<8x96xf32> to vector<8x32xf32>
    %52 = vector.extract_strided_slice %40 {offsets = [0, 64], sizes = [8, 32], strides = [1, 1]} : vector<8x96xf32> to vector<8x32xf32>
    %53 = arith.addf %52, %6 : vector<8x32xf32>
    %54 = arith.mulf %49, %53 : vector<8x32xf32>
    %55 = arith.addf %51, %54 : vector<8x32xf32>
    %56 = math.tanh %55 : vector<8x32xf32>
    %cst_18 = arith.constant 1.000000e+00 : f32
    %57 = vector.broadcast %cst_18 : f32 to vector<8x32xf32>
    %58 = arith.subf %57, %50 : vector<8x32xf32>
    %59 = arith.mulf %58, %56 : vector<8x32xf32>
    %60 = arith.mulf %50, %37 : vector<8x32xf32>
    %61 = arith.addf %59, %60 : vector<8x32xf32>
    %62 = vector.extract_strided_slice %11 {offsets = [2, 0, 0], sizes = [1, 8, 96], strides = [1, 1, 1]} : vector<8x8x96xf32> to vector<1x8x96xf32>
    %63 = vector.shape_cast %62 : vector<1x8x96xf32> to vector<8x96xf32>
    %cst_19 = arith.constant dense<0.000000e+00> : vector<8x96xf32>
    %64 = tpu.matmul %61, %2, %cst_19 {dimension_numbers = #tpu.dot_dimension_numbers<[1], [0], [0], [1], [0, 0, 1, 1], [], []>} : vector<8x32xf32>, vector<32x96xf32>, vector<8x96xf32> -> vector<8x96xf32>
    %65 = vector.extract_strided_slice %63 {offsets = [0, 0], sizes = [8, 64], strides = [1, 1]} : vector<8x96xf32> to vector<8x64xf32>
    %66 = vector.extract_strided_slice %64 {offsets = [0, 0], sizes = [8, 64], strides = [1, 1]} : vector<8x96xf32> to vector<8x64xf32>
    %67 = arith.addf %65, %66 : vector<8x64xf32>
    %68 = arith.negf %67 : vector<8x64xf32>
    %69 = math.exp %68 : vector<8x64xf32>
    %cst_20 = arith.constant 1.000000e+00 : f32
    %70 = vector.broadcast %cst_20 : f32 to vector<8x64xf32>
    %71 = arith.addf %70, %69 : vector<8x64xf32>
    %72 = arith.divf %70, %71 : vector<8x64xf32>
    %73 = vector.extract_strided_slice %72 {offsets = [0, 0], sizes = [8, 32], strides = [1, 1]} : vector<8x64xf32> to vector<8x32xf32>
    %74 = vector.extract_strided_slice %72 {offsets = [0, 32], sizes = [8, 32], strides = [1, 1]} : vector<8x64xf32> to vector<8x32xf32>
    %75 = vector.extract_strided_slice %63 {offsets = [0, 64], sizes = [8, 32], strides = [1, 1]} : vector<8x96xf32> to vector<8x32xf32>
    %76 = vector.extract_strided_slice %64 {offsets = [0, 64], sizes = [8, 32], strides = [1, 1]} : vector<8x96xf32> to vector<8x32xf32>
    %77 = arith.addf %76, %6 : vector<8x32xf32>
    %78 = arith.mulf %73, %77 : vector<8x32xf32>
    %79 = arith.addf %75, %78 : vector<8x32xf32>
    %80 = math.tanh %79 : vector<8x32xf32>
    %cst_21 = arith.constant 1.000000e+00 : f32
    %81 = vector.broadcast %cst_21 : f32 to vector<8x32xf32>
    %82 = arith.subf %81, %74 : vector<8x32xf32>
    %83 = arith.mulf %82, %80 : vector<8x32xf32>
    %84 = arith.mulf %74, %61 : vector<8x32xf32>
    %85 = arith.addf %83, %84 : vector<8x32xf32>
    %86 = vector.extract_strided_slice %11 {offsets = [3, 0, 0], sizes = [1, 8, 96], strides = [1, 1, 1]} : vector<8x8x96xf32> to vector<1x8x96xf32>
    %87 = vector.shape_cast %86 : vector<1x8x96xf32> to vector<8x96xf32>
    %cst_22 = arith.constant dense<0.000000e+00> : vector<8x96xf32>
    %88 = tpu.matmul %85, %2, %cst_22 {dimension_numbers = #tpu.dot_dimension_numbers<[1], [0], [0], [1], [0, 0, 1, 1], [], []>} : vector<8x32xf32>, vector<32x96xf32>, vector<8x96xf32> -> vector<8x96xf32>
    %89 = vector.extract_strided_slice %87 {offsets = [0, 0], sizes = [8, 64], strides = [1, 1]} : vector<8x96xf32> to vector<8x64xf32>
    %90 = vector.extract_strided_slice %88 {offsets = [0, 0], sizes = [8, 64], strides = [1, 1]} : vector<8x96xf32> to vector<8x64xf32>
    %91 = arith.addf %89, %90 : vector<8x64xf32>
    %92 = arith.negf %91 : vector<8x64xf32>
    %93 = math.exp %92 : vector<8x64xf32>
    %cst_23 = arith.constant 1.000000e+00 : f32
    %94 = vector.broadcast %cst_23 : f32 to vector<8x64xf32>
    %95 = arith.addf %94, %93 : vector<8x64xf32>
    %96 = arith.divf %94, %95 : vector<8x64xf32>
    %97 = vector.extract_strided_slice %96 {offsets = [0, 0], sizes = [8, 32], strides = [1, 1]} : vector<8x64xf32> to vector<8x32xf32>
    %98 = vector.extract_strided_slice %96 {offsets = [0, 32], sizes = [8, 32], strides = [1, 1]} : vector<8x64xf32> to vector<8x32xf32>
    %99 = vector.extract_strided_slice %87 {offsets = [0, 64], sizes = [8, 32], strides = [1, 1]} : vector<8x96xf32> to vector<8x32xf32>
    %100 = vector.extract_strided_slice %88 {offsets = [0, 64], sizes = [8, 32], strides = [1, 1]} : vector<8x96xf32> to vector<8x32xf32>
    %101 = arith.addf %100, %6 : vector<8x32xf32>
    %102 = arith.mulf %97, %101 : vector<8x32xf32>
    %103 = arith.addf %99, %102 : vector<8x32xf32>
    %104 = math.tanh %103 : vector<8x32xf32>
    %cst_24 = arith.constant 1.000000e+00 : f32
    %105 = vector.broadcast %cst_24 : f32 to vector<8x32xf32>
    %106 = arith.subf %105, %98 : vector<8x32xf32>
    %107 = arith.mulf %106, %104 : vector<8x32xf32>
    %108 = arith.mulf %98, %85 : vector<8x32xf32>
    %109 = arith.addf %107, %108 : vector<8x32xf32>
    %110 = vector.extract_strided_slice %11 {offsets = [4, 0, 0], sizes = [1, 8, 96], strides = [1, 1, 1]} : vector<8x8x96xf32> to vector<1x8x96xf32>
    %111 = vector.shape_cast %110 : vector<1x8x96xf32> to vector<8x96xf32>
    %cst_25 = arith.constant dense<0.000000e+00> : vector<8x96xf32>
    %112 = tpu.matmul %109, %2, %cst_25 {dimension_numbers = #tpu.dot_dimension_numbers<[1], [0], [0], [1], [0, 0, 1, 1], [], []>} : vector<8x32xf32>, vector<32x96xf32>, vector<8x96xf32> -> vector<8x96xf32>
    %113 = vector.extract_strided_slice %111 {offsets = [0, 0], sizes = [8, 64], strides = [1, 1]} : vector<8x96xf32> to vector<8x64xf32>
    %114 = vector.extract_strided_slice %112 {offsets = [0, 0], sizes = [8, 64], strides = [1, 1]} : vector<8x96xf32> to vector<8x64xf32>
    %115 = arith.addf %113, %114 : vector<8x64xf32>
    %116 = arith.negf %115 : vector<8x64xf32>
    %117 = math.exp %116 : vector<8x64xf32>
    %cst_26 = arith.constant 1.000000e+00 : f32
    %118 = vector.broadcast %cst_26 : f32 to vector<8x64xf32>
    %119 = arith.addf %118, %117 : vector<8x64xf32>
    %120 = arith.divf %118, %119 : vector<8x64xf32>
    %121 = vector.extract_strided_slice %120 {offsets = [0, 0], sizes = [8, 32], strides = [1, 1]} : vector<8x64xf32> to vector<8x32xf32>
    %122 = vector.extract_strided_slice %120 {offsets = [0, 32], sizes = [8, 32], strides = [1, 1]} : vector<8x64xf32> to vector<8x32xf32>
    %123 = vector.extract_strided_slice %111 {offsets = [0, 64], sizes = [8, 32], strides = [1, 1]} : vector<8x96xf32> to vector<8x32xf32>
    %124 = vector.extract_strided_slice %112 {offsets = [0, 64], sizes = [8, 32], strides = [1, 1]} : vector<8x96xf32> to vector<8x32xf32>
    %125 = arith.addf %124, %6 : vector<8x32xf32>
    %126 = arith.mulf %121, %125 : vector<8x32xf32>
    %127 = arith.addf %123, %126 : vector<8x32xf32>
    %128 = math.tanh %127 : vector<8x32xf32>
    %cst_27 = arith.constant 1.000000e+00 : f32
    %129 = vector.broadcast %cst_27 : f32 to vector<8x32xf32>
    %130 = arith.subf %129, %122 : vector<8x32xf32>
    %131 = arith.mulf %130, %128 : vector<8x32xf32>
    %132 = arith.mulf %122, %109 : vector<8x32xf32>
    %133 = arith.addf %131, %132 : vector<8x32xf32>
    %134 = vector.extract_strided_slice %11 {offsets = [5, 0, 0], sizes = [1, 8, 96], strides = [1, 1, 1]} : vector<8x8x96xf32> to vector<1x8x96xf32>
    %135 = vector.shape_cast %134 : vector<1x8x96xf32> to vector<8x96xf32>
    %cst_28 = arith.constant dense<0.000000e+00> : vector<8x96xf32>
    %136 = tpu.matmul %133, %2, %cst_28 {dimension_numbers = #tpu.dot_dimension_numbers<[1], [0], [0], [1], [0, 0, 1, 1], [], []>} : vector<8x32xf32>, vector<32x96xf32>, vector<8x96xf32> -> vector<8x96xf32>
    %137 = vector.extract_strided_slice %135 {offsets = [0, 0], sizes = [8, 64], strides = [1, 1]} : vector<8x96xf32> to vector<8x64xf32>
    %138 = vector.extract_strided_slice %136 {offsets = [0, 0], sizes = [8, 64], strides = [1, 1]} : vector<8x96xf32> to vector<8x64xf32>
    %139 = arith.addf %137, %138 : vector<8x64xf32>
    %140 = arith.negf %139 : vector<8x64xf32>
    %141 = math.exp %140 : vector<8x64xf32>
    %cst_29 = arith.constant 1.000000e+00 : f32
    %142 = vector.broadcast %cst_29 : f32 to vector<8x64xf32>
    %143 = arith.addf %142, %141 : vector<8x64xf32>
    %144 = arith.divf %142, %143 : vector<8x64xf32>
    %145 = vector.extract_strided_slice %144 {offsets = [0, 0], sizes = [8, 32], strides = [1, 1]} : vector<8x64xf32> to vector<8x32xf32>
    %146 = vector.extract_strided_slice %144 {offsets = [0, 32], sizes = [8, 32], strides = [1, 1]} : vector<8x64xf32> to vector<8x32xf32>
    %147 = vector.extract_strided_slice %135 {offsets = [0, 64], sizes = [8, 32], strides = [1, 1]} : vector<8x96xf32> to vector<8x32xf32>
    %148 = vector.extract_strided_slice %136 {offsets = [0, 64], sizes = [8, 32], strides = [1, 1]} : vector<8x96xf32> to vector<8x32xf32>
    %149 = arith.addf %148, %6 : vector<8x32xf32>
    %150 = arith.mulf %145, %149 : vector<8x32xf32>
    %151 = arith.addf %147, %150 : vector<8x32xf32>
    %152 = math.tanh %151 : vector<8x32xf32>
    %cst_30 = arith.constant 1.000000e+00 : f32
    %153 = vector.broadcast %cst_30 : f32 to vector<8x32xf32>
    %154 = arith.subf %153, %146 : vector<8x32xf32>
    %155 = arith.mulf %154, %152 : vector<8x32xf32>
    %156 = arith.mulf %146, %133 : vector<8x32xf32>
    %157 = arith.addf %155, %156 : vector<8x32xf32>
    %158 = vector.extract_strided_slice %11 {offsets = [6, 0, 0], sizes = [1, 8, 96], strides = [1, 1, 1]} : vector<8x8x96xf32> to vector<1x8x96xf32>
    %159 = vector.shape_cast %158 : vector<1x8x96xf32> to vector<8x96xf32>
    %cst_31 = arith.constant dense<0.000000e+00> : vector<8x96xf32>
    %160 = tpu.matmul %157, %2, %cst_31 {dimension_numbers = #tpu.dot_dimension_numbers<[1], [0], [0], [1], [0, 0, 1, 1], [], []>} : vector<8x32xf32>, vector<32x96xf32>, vector<8x96xf32> -> vector<8x96xf32>
    %161 = vector.extract_strided_slice %159 {offsets = [0, 0], sizes = [8, 64], strides = [1, 1]} : vector<8x96xf32> to vector<8x64xf32>
    %162 = vector.extract_strided_slice %160 {offsets = [0, 0], sizes = [8, 64], strides = [1, 1]} : vector<8x96xf32> to vector<8x64xf32>
    %163 = arith.addf %161, %162 : vector<8x64xf32>
    %164 = arith.negf %163 : vector<8x64xf32>
    %165 = math.exp %164 : vector<8x64xf32>
    %cst_32 = arith.constant 1.000000e+00 : f32
    %166 = vector.broadcast %cst_32 : f32 to vector<8x64xf32>
    %167 = arith.addf %166, %165 : vector<8x64xf32>
    %168 = arith.divf %166, %167 : vector<8x64xf32>
    %169 = vector.extract_strided_slice %168 {offsets = [0, 0], sizes = [8, 32], strides = [1, 1]} : vector<8x64xf32> to vector<8x32xf32>
    %170 = vector.extract_strided_slice %168 {offsets = [0, 32], sizes = [8, 32], strides = [1, 1]} : vector<8x64xf32> to vector<8x32xf32>
    %171 = vector.extract_strided_slice %159 {offsets = [0, 64], sizes = [8, 32], strides = [1, 1]} : vector<8x96xf32> to vector<8x32xf32>
    %172 = vector.extract_strided_slice %160 {offsets = [0, 64], sizes = [8, 32], strides = [1, 1]} : vector<8x96xf32> to vector<8x32xf32>
    %173 = arith.addf %172, %6 : vector<8x32xf32>
    %174 = arith.mulf %169, %173 : vector<8x32xf32>
    %175 = arith.addf %171, %174 : vector<8x32xf32>
    %176 = math.tanh %175 : vector<8x32xf32>
    %cst_33 = arith.constant 1.000000e+00 : f32
    %177 = vector.broadcast %cst_33 : f32 to vector<8x32xf32>
    %178 = arith.subf %177, %170 : vector<8x32xf32>
    %179 = arith.mulf %178, %176 : vector<8x32xf32>
    %180 = arith.mulf %170, %157 : vector<8x32xf32>
    %181 = arith.addf %179, %180 : vector<8x32xf32>
    %182 = vector.extract_strided_slice %11 {offsets = [7, 0, 0], sizes = [1, 8, 96], strides = [1, 1, 1]} : vector<8x8x96xf32> to vector<1x8x96xf32>
    %183 = vector.shape_cast %182 : vector<1x8x96xf32> to vector<8x96xf32>
    %cst_34 = arith.constant dense<0.000000e+00> : vector<8x96xf32>
    %184 = tpu.matmul %181, %2, %cst_34 {dimension_numbers = #tpu.dot_dimension_numbers<[1], [0], [0], [1], [0, 0, 1, 1], [], []>} : vector<8x32xf32>, vector<32x96xf32>, vector<8x96xf32> -> vector<8x96xf32>
    %185 = vector.extract_strided_slice %183 {offsets = [0, 0], sizes = [8, 64], strides = [1, 1]} : vector<8x96xf32> to vector<8x64xf32>
    %186 = vector.extract_strided_slice %184 {offsets = [0, 0], sizes = [8, 64], strides = [1, 1]} : vector<8x96xf32> to vector<8x64xf32>
    %187 = arith.addf %185, %186 : vector<8x64xf32>
    %188 = arith.negf %187 : vector<8x64xf32>
    %189 = math.exp %188 : vector<8x64xf32>
    %cst_35 = arith.constant 1.000000e+00 : f32
    %190 = vector.broadcast %cst_35 : f32 to vector<8x64xf32>
    %191 = arith.addf %190, %189 : vector<8x64xf32>
    %192 = arith.divf %190, %191 : vector<8x64xf32>
    %193 = vector.extract_strided_slice %192 {offsets = [0, 0], sizes = [8, 32], strides = [1, 1]} : vector<8x64xf32> to vector<8x32xf32>
    %194 = vector.extract_strided_slice %192 {offsets = [0, 32], sizes = [8, 32], strides = [1, 1]} : vector<8x64xf32> to vector<8x32xf32>
    %195 = vector.extract_strided_slice %183 {offsets = [0, 64], sizes = [8, 32], strides = [1, 1]} : vector<8x96xf32> to vector<8x32xf32>
    %196 = vector.extract_strided_slice %184 {offsets = [0, 64], sizes = [8, 32], strides = [1, 1]} : vector<8x96xf32> to vector<8x32xf32>
    %197 = arith.addf %196, %6 : vector<8x32xf32>
    %198 = arith.mulf %193, %197 : vector<8x32xf32>
    %199 = arith.addf %195, %198 : vector<8x32xf32>
    %200 = math.tanh %199 : vector<8x32xf32>
    %cst_36 = arith.constant 1.000000e+00 : f32
    %201 = vector.broadcast %cst_36 : f32 to vector<8x32xf32>
    %202 = arith.subf %201, %194 : vector<8x32xf32>
    %203 = arith.mulf %202, %200 : vector<8x32xf32>
    %204 = arith.mulf %194, %181 : vector<8x32xf32>
    %205 = arith.addf %203, %204 : vector<8x32xf32>
    %206 = vector.shape_cast %37 : vector<8x32xf32> to vector<1x8x32xf32>
    %207 = vector.shape_cast %61 : vector<8x32xf32> to vector<1x8x32xf32>
    %208 = vector.shape_cast %85 : vector<8x32xf32> to vector<1x8x32xf32>
    %209 = vector.shape_cast %109 : vector<8x32xf32> to vector<1x8x32xf32>
    %210 = vector.shape_cast %133 : vector<8x32xf32> to vector<1x8x32xf32>
    %211 = vector.shape_cast %157 : vector<8x32xf32> to vector<1x8x32xf32>
    %212 = vector.shape_cast %181 : vector<8x32xf32> to vector<1x8x32xf32>
    %213 = vector.shape_cast %205 : vector<8x32xf32> to vector<1x8x32xf32>
    %214 = tpu.concatenate %206, %207, %208, %209, %210, %211, %212, %213 in 0 : vector<1x8x32xf32>, vector<1x8x32xf32>, vector<1x8x32xf32>, vector<1x8x32xf32>, vector<1x8x32xf32>, vector<1x8x32xf32>, vector<1x8x32xf32>, vector<1x8x32xf32> -> vector<8x8x32xf32>
    %c0_37 = arith.constant 0 : index
    %c0_38 = arith.constant 0 : index
    %215 = vector.load %arg7[%c0_37, %c0_38] : memref<32x96xf32, #tpu.memory_space<vmem>>, vector<32x96xf32>
    %c0_39 = arith.constant 0 : index
    %c0_40 = arith.constant 0 : index
    %216 = vector.load %arg8[%c0_39, %c0_40] : memref<32x96xf32, #tpu.memory_space<vmem>>, vector<32x96xf32>
    %c0_41 = arith.constant 0 : index
    %c0_42 = arith.constant 0 : index
    %217 = vector.load %arg9[%c0_41, %c0_42] : memref<1x96xf32, #tpu.memory_space<vmem>>, vector<1x96xf32>
    %c0_43 = arith.constant 0 : index
    %c0_44 = arith.constant 0 : index
    %218 = vector.load %arg10[%c0_43, %c0_44] : memref<1x32xf32, #tpu.memory_space<vmem>>, vector<1x32xf32>
    %219 = vector.shape_cast %218 : vector<1x32xf32> to vector<1x32xf32>
    %220 = vector.broadcast %219 : vector<1x32xf32> to vector<8x32xf32>
    %221 = vector.shape_cast %214 : vector<8x8x32xf32> to vector<64x32xf32>
    %cst_45 = arith.constant dense<0.000000e+00> : vector<64x96xf32>
    %222 = tpu.matmul %221, %215, %cst_45 {dimension_numbers = #tpu.dot_dimension_numbers<[1], [0], [0], [1], [0, 0, 1, 1], [], []>} : vector<64x32xf32>, vector<32x96xf32>, vector<64x96xf32> -> vector<64x96xf32>
    %223 = vector.broadcast %217 : vector<1x96xf32> to vector<64x96xf32>
    %224 = arith.addf %222, %223 : vector<64x96xf32>
    %225 = vector.shape_cast %224 : vector<64x96xf32> to vector<8x8x96xf32>
    %c1 = arith.constant 1 : index
    %c0_46 = arith.constant 0 : index
    %c0_47 = arith.constant 0 : index
    %226 = vector.load %arg1[%c1, %c0_46, %c0_47] : memref<2x8x32xf32, #tpu.memory_space<vmem>>, vector<1x8x32xf32>
    %227 = vector.shape_cast %226 : vector<1x8x32xf32> to vector<8x32xf32>
    %228 = vector.extract_strided_slice %225 {offsets = [0, 0, 0], sizes = [1, 8, 96], strides = [1, 1, 1]} : vector<8x8x96xf32> to vector<1x8x96xf32>
    %229 = vector.shape_cast %228 : vector<1x8x96xf32> to vector<8x96xf32>
    %cst_48 = arith.constant dense<0.000000e+00> : vector<8x96xf32>
    %230 = tpu.matmul %227, %216, %cst_48 {dimension_numbers = #tpu.dot_dimension_numbers<[1], [0], [0], [1], [0, 0, 1, 1], [], []>} : vector<8x32xf32>, vector<32x96xf32>, vector<8x96xf32> -> vector<8x96xf32>
    %231 = vector.extract_strided_slice %229 {offsets = [0, 0], sizes = [8, 64], strides = [1, 1]} : vector<8x96xf32> to vector<8x64xf32>
    %232 = vector.extract_strided_slice %230 {offsets = [0, 0], sizes = [8, 64], strides = [1, 1]} : vector<8x96xf32> to vector<8x64xf32>
    %233 = arith.addf %231, %232 : vector<8x64xf32>
    %234 = arith.negf %233 : vector<8x64xf32>
    %235 = math.exp %234 : vector<8x64xf32>
    %cst_49 = arith.constant 1.000000e+00 : f32
    %236 = vector.broadcast %cst_49 : f32 to vector<8x64xf32>
    %237 = arith.addf %236, %235 : vector<8x64xf32>
    %238 = arith.divf %236, %237 : vector<8x64xf32>
    %239 = vector.extract_strided_slice %238 {offsets = [0, 0], sizes = [8, 32], strides = [1, 1]} : vector<8x64xf32> to vector<8x32xf32>
    %240 = vector.extract_strided_slice %238 {offsets = [0, 32], sizes = [8, 32], strides = [1, 1]} : vector<8x64xf32> to vector<8x32xf32>
    %241 = vector.extract_strided_slice %229 {offsets = [0, 64], sizes = [8, 32], strides = [1, 1]} : vector<8x96xf32> to vector<8x32xf32>
    %242 = vector.extract_strided_slice %230 {offsets = [0, 64], sizes = [8, 32], strides = [1, 1]} : vector<8x96xf32> to vector<8x32xf32>
    %243 = arith.addf %242, %220 : vector<8x32xf32>
    %244 = arith.mulf %239, %243 : vector<8x32xf32>
    %245 = arith.addf %241, %244 : vector<8x32xf32>
    %246 = math.tanh %245 : vector<8x32xf32>
    %cst_50 = arith.constant 1.000000e+00 : f32
    %247 = vector.broadcast %cst_50 : f32 to vector<8x32xf32>
    %248 = arith.subf %247, %240 : vector<8x32xf32>
    %249 = arith.mulf %248, %246 : vector<8x32xf32>
    %250 = arith.mulf %240, %227 : vector<8x32xf32>
    %251 = arith.addf %249, %250 : vector<8x32xf32>
    %252 = vector.extract_strided_slice %225 {offsets = [1, 0, 0], sizes = [1, 8, 96], strides = [1, 1, 1]} : vector<8x8x96xf32> to vector<1x8x96xf32>
    %253 = vector.shape_cast %252 : vector<1x8x96xf32> to vector<8x96xf32>
    %cst_51 = arith.constant dense<0.000000e+00> : vector<8x96xf32>
    %254 = tpu.matmul %251, %216, %cst_51 {dimension_numbers = #tpu.dot_dimension_numbers<[1], [0], [0], [1], [0, 0, 1, 1], [], []>} : vector<8x32xf32>, vector<32x96xf32>, vector<8x96xf32> -> vector<8x96xf32>
    %255 = vector.extract_strided_slice %253 {offsets = [0, 0], sizes = [8, 64], strides = [1, 1]} : vector<8x96xf32> to vector<8x64xf32>
    %256 = vector.extract_strided_slice %254 {offsets = [0, 0], sizes = [8, 64], strides = [1, 1]} : vector<8x96xf32> to vector<8x64xf32>
    %257 = arith.addf %255, %256 : vector<8x64xf32>
    %258 = arith.negf %257 : vector<8x64xf32>
    %259 = math.exp %258 : vector<8x64xf32>
    %cst_52 = arith.constant 1.000000e+00 : f32
    %260 = vector.broadcast %cst_52 : f32 to vector<8x64xf32>
    %261 = arith.addf %260, %259 : vector<8x64xf32>
    %262 = arith.divf %260, %261 : vector<8x64xf32>
    %263 = vector.extract_strided_slice %262 {offsets = [0, 0], sizes = [8, 32], strides = [1, 1]} : vector<8x64xf32> to vector<8x32xf32>
    %264 = vector.extract_strided_slice %262 {offsets = [0, 32], sizes = [8, 32], strides = [1, 1]} : vector<8x64xf32> to vector<8x32xf32>
    %265 = vector.extract_strided_slice %253 {offsets = [0, 64], sizes = [8, 32], strides = [1, 1]} : vector<8x96xf32> to vector<8x32xf32>
    %266 = vector.extract_strided_slice %254 {offsets = [0, 64], sizes = [8, 32], strides = [1, 1]} : vector<8x96xf32> to vector<8x32xf32>
    %267 = arith.addf %266, %220 : vector<8x32xf32>
    %268 = arith.mulf %263, %267 : vector<8x32xf32>
    %269 = arith.addf %265, %268 : vector<8x32xf32>
    %270 = math.tanh %269 : vector<8x32xf32>
    %cst_53 = arith.constant 1.000000e+00 : f32
    %271 = vector.broadcast %cst_53 : f32 to vector<8x32xf32>
    %272 = arith.subf %271, %264 : vector<8x32xf32>
    %273 = arith.mulf %272, %270 : vector<8x32xf32>
    %274 = arith.mulf %264, %251 : vector<8x32xf32>
    %275 = arith.addf %273, %274 : vector<8x32xf32>
    %276 = vector.extract_strided_slice %225 {offsets = [2, 0, 0], sizes = [1, 8, 96], strides = [1, 1, 1]} : vector<8x8x96xf32> to vector<1x8x96xf32>
    %277 = vector.shape_cast %276 : vector<1x8x96xf32> to vector<8x96xf32>
    %cst_54 = arith.constant dense<0.000000e+00> : vector<8x96xf32>
    %278 = tpu.matmul %275, %216, %cst_54 {dimension_numbers = #tpu.dot_dimension_numbers<[1], [0], [0], [1], [0, 0, 1, 1], [], []>} : vector<8x32xf32>, vector<32x96xf32>, vector<8x96xf32> -> vector<8x96xf32>
    %279 = vector.extract_strided_slice %277 {offsets = [0, 0], sizes = [8, 64], strides = [1, 1]} : vector<8x96xf32> to vector<8x64xf32>
    %280 = vector.extract_strided_slice %278 {offsets = [0, 0], sizes = [8, 64], strides = [1, 1]} : vector<8x96xf32> to vector<8x64xf32>
    %281 = arith.addf %279, %280 : vector<8x64xf32>
    %282 = arith.negf %281 : vector<8x64xf32>
    %283 = math.exp %282 : vector<8x64xf32>
    %cst_55 = arith.constant 1.000000e+00 : f32
    %284 = vector.broadcast %cst_55 : f32 to vector<8x64xf32>
    %285 = arith.addf %284, %283 : vector<8x64xf32>
    %286 = arith.divf %284, %285 : vector<8x64xf32>
    %287 = vector.extract_strided_slice %286 {offsets = [0, 0], sizes = [8, 32], strides = [1, 1]} : vector<8x64xf32> to vector<8x32xf32>
    %288 = vector.extract_strided_slice %286 {offsets = [0, 32], sizes = [8, 32], strides = [1, 1]} : vector<8x64xf32> to vector<8x32xf32>
    %289 = vector.extract_strided_slice %277 {offsets = [0, 64], sizes = [8, 32], strides = [1, 1]} : vector<8x96xf32> to vector<8x32xf32>
    %290 = vector.extract_strided_slice %278 {offsets = [0, 64], sizes = [8, 32], strides = [1, 1]} : vector<8x96xf32> to vector<8x32xf32>
    %291 = arith.addf %290, %220 : vector<8x32xf32>
    %292 = arith.mulf %287, %291 : vector<8x32xf32>
    %293 = arith.addf %289, %292 : vector<8x32xf32>
    %294 = math.tanh %293 : vector<8x32xf32>
    %cst_56 = arith.constant 1.000000e+00 : f32
    %295 = vector.broadcast %cst_56 : f32 to vector<8x32xf32>
    %296 = arith.subf %295, %288 : vector<8x32xf32>
    %297 = arith.mulf %296, %294 : vector<8x32xf32>
    %298 = arith.mulf %288, %275 : vector<8x32xf32>
    %299 = arith.addf %297, %298 : vector<8x32xf32>
    %300 = vector.extract_strided_slice %225 {offsets = [3, 0, 0], sizes = [1, 8, 96], strides = [1, 1, 1]} : vector<8x8x96xf32> to vector<1x8x96xf32>
    %301 = vector.shape_cast %300 : vector<1x8x96xf32> to vector<8x96xf32>
    %cst_57 = arith.constant dense<0.000000e+00> : vector<8x96xf32>
    %302 = tpu.matmul %299, %216, %cst_57 {dimension_numbers = #tpu.dot_dimension_numbers<[1], [0], [0], [1], [0, 0, 1, 1], [], []>} : vector<8x32xf32>, vector<32x96xf32>, vector<8x96xf32> -> vector<8x96xf32>
    %303 = vector.extract_strided_slice %301 {offsets = [0, 0], sizes = [8, 64], strides = [1, 1]} : vector<8x96xf32> to vector<8x64xf32>
    %304 = vector.extract_strided_slice %302 {offsets = [0, 0], sizes = [8, 64], strides = [1, 1]} : vector<8x96xf32> to vector<8x64xf32>
    %305 = arith.addf %303, %304 : vector<8x64xf32>
    %306 = arith.negf %305 : vector<8x64xf32>
    %307 = math.exp %306 : vector<8x64xf32>
    %cst_58 = arith.constant 1.000000e+00 : f32
    %308 = vector.broadcast %cst_58 : f32 to vector<8x64xf32>
    %309 = arith.addf %308, %307 : vector<8x64xf32>
    %310 = arith.divf %308, %309 : vector<8x64xf32>
    %311 = vector.extract_strided_slice %310 {offsets = [0, 0], sizes = [8, 32], strides = [1, 1]} : vector<8x64xf32> to vector<8x32xf32>
    %312 = vector.extract_strided_slice %310 {offsets = [0, 32], sizes = [8, 32], strides = [1, 1]} : vector<8x64xf32> to vector<8x32xf32>
    %313 = vector.extract_strided_slice %301 {offsets = [0, 64], sizes = [8, 32], strides = [1, 1]} : vector<8x96xf32> to vector<8x32xf32>
    %314 = vector.extract_strided_slice %302 {offsets = [0, 64], sizes = [8, 32], strides = [1, 1]} : vector<8x96xf32> to vector<8x32xf32>
    %315 = arith.addf %314, %220 : vector<8x32xf32>
    %316 = arith.mulf %311, %315 : vector<8x32xf32>
    %317 = arith.addf %313, %316 : vector<8x32xf32>
    %318 = math.tanh %317 : vector<8x32xf32>
    %cst_59 = arith.constant 1.000000e+00 : f32
    %319 = vector.broadcast %cst_59 : f32 to vector<8x32xf32>
    %320 = arith.subf %319, %312 : vector<8x32xf32>
    %321 = arith.mulf %320, %318 : vector<8x32xf32>
    %322 = arith.mulf %312, %299 : vector<8x32xf32>
    %323 = arith.addf %321, %322 : vector<8x32xf32>
    %324 = vector.extract_strided_slice %225 {offsets = [4, 0, 0], sizes = [1, 8, 96], strides = [1, 1, 1]} : vector<8x8x96xf32> to vector<1x8x96xf32>
    %325 = vector.shape_cast %324 : vector<1x8x96xf32> to vector<8x96xf32>
    %cst_60 = arith.constant dense<0.000000e+00> : vector<8x96xf32>
    %326 = tpu.matmul %323, %216, %cst_60 {dimension_numbers = #tpu.dot_dimension_numbers<[1], [0], [0], [1], [0, 0, 1, 1], [], []>} : vector<8x32xf32>, vector<32x96xf32>, vector<8x96xf32> -> vector<8x96xf32>
    %327 = vector.extract_strided_slice %325 {offsets = [0, 0], sizes = [8, 64], strides = [1, 1]} : vector<8x96xf32> to vector<8x64xf32>
    %328 = vector.extract_strided_slice %326 {offsets = [0, 0], sizes = [8, 64], strides = [1, 1]} : vector<8x96xf32> to vector<8x64xf32>
    %329 = arith.addf %327, %328 : vector<8x64xf32>
    %330 = arith.negf %329 : vector<8x64xf32>
    %331 = math.exp %330 : vector<8x64xf32>
    %cst_61 = arith.constant 1.000000e+00 : f32
    %332 = vector.broadcast %cst_61 : f32 to vector<8x64xf32>
    %333 = arith.addf %332, %331 : vector<8x64xf32>
    %334 = arith.divf %332, %333 : vector<8x64xf32>
    %335 = vector.extract_strided_slice %334 {offsets = [0, 0], sizes = [8, 32], strides = [1, 1]} : vector<8x64xf32> to vector<8x32xf32>
    %336 = vector.extract_strided_slice %334 {offsets = [0, 32], sizes = [8, 32], strides = [1, 1]} : vector<8x64xf32> to vector<8x32xf32>
    %337 = vector.extract_strided_slice %325 {offsets = [0, 64], sizes = [8, 32], strides = [1, 1]} : vector<8x96xf32> to vector<8x32xf32>
    %338 = vector.extract_strided_slice %326 {offsets = [0, 64], sizes = [8, 32], strides = [1, 1]} : vector<8x96xf32> to vector<8x32xf32>
    %339 = arith.addf %338, %220 : vector<8x32xf32>
    %340 = arith.mulf %335, %339 : vector<8x32xf32>
    %341 = arith.addf %337, %340 : vector<8x32xf32>
    %342 = math.tanh %341 : vector<8x32xf32>
    %cst_62 = arith.constant 1.000000e+00 : f32
    %343 = vector.broadcast %cst_62 : f32 to vector<8x32xf32>
    %344 = arith.subf %343, %336 : vector<8x32xf32>
    %345 = arith.mulf %344, %342 : vector<8x32xf32>
    %346 = arith.mulf %336, %323 : vector<8x32xf32>
    %347 = arith.addf %345, %346 : vector<8x32xf32>
    %348 = vector.extract_strided_slice %225 {offsets = [5, 0, 0], sizes = [1, 8, 96], strides = [1, 1, 1]} : vector<8x8x96xf32> to vector<1x8x96xf32>
    %349 = vector.shape_cast %348 : vector<1x8x96xf32> to vector<8x96xf32>
    %cst_63 = arith.constant dense<0.000000e+00> : vector<8x96xf32>
    %350 = tpu.matmul %347, %216, %cst_63 {dimension_numbers = #tpu.dot_dimension_numbers<[1], [0], [0], [1], [0, 0, 1, 1], [], []>} : vector<8x32xf32>, vector<32x96xf32>, vector<8x96xf32> -> vector<8x96xf32>
    %351 = vector.extract_strided_slice %349 {offsets = [0, 0], sizes = [8, 64], strides = [1, 1]} : vector<8x96xf32> to vector<8x64xf32>
    %352 = vector.extract_strided_slice %350 {offsets = [0, 0], sizes = [8, 64], strides = [1, 1]} : vector<8x96xf32> to vector<8x64xf32>
    %353 = arith.addf %351, %352 : vector<8x64xf32>
    %354 = arith.negf %353 : vector<8x64xf32>
    %355 = math.exp %354 : vector<8x64xf32>
    %cst_64 = arith.constant 1.000000e+00 : f32
    %356 = vector.broadcast %cst_64 : f32 to vector<8x64xf32>
    %357 = arith.addf %356, %355 : vector<8x64xf32>
    %358 = arith.divf %356, %357 : vector<8x64xf32>
    %359 = vector.extract_strided_slice %358 {offsets = [0, 0], sizes = [8, 32], strides = [1, 1]} : vector<8x64xf32> to vector<8x32xf32>
    %360 = vector.extract_strided_slice %358 {offsets = [0, 32], sizes = [8, 32], strides = [1, 1]} : vector<8x64xf32> to vector<8x32xf32>
    %361 = vector.extract_strided_slice %349 {offsets = [0, 64], sizes = [8, 32], strides = [1, 1]} : vector<8x96xf32> to vector<8x32xf32>
    %362 = vector.extract_strided_slice %350 {offsets = [0, 64], sizes = [8, 32], strides = [1, 1]} : vector<8x96xf32> to vector<8x32xf32>
    %363 = arith.addf %362, %220 : vector<8x32xf32>
    %364 = arith.mulf %359, %363 : vector<8x32xf32>
    %365 = arith.addf %361, %364 : vector<8x32xf32>
    %366 = math.tanh %365 : vector<8x32xf32>
    %cst_65 = arith.constant 1.000000e+00 : f32
    %367 = vector.broadcast %cst_65 : f32 to vector<8x32xf32>
    %368 = arith.subf %367, %360 : vector<8x32xf32>
    %369 = arith.mulf %368, %366 : vector<8x32xf32>
    %370 = arith.mulf %360, %347 : vector<8x32xf32>
    %371 = arith.addf %369, %370 : vector<8x32xf32>
    %372 = vector.extract_strided_slice %225 {offsets = [6, 0, 0], sizes = [1, 8, 96], strides = [1, 1, 1]} : vector<8x8x96xf32> to vector<1x8x96xf32>
    %373 = vector.shape_cast %372 : vector<1x8x96xf32> to vector<8x96xf32>
    %cst_66 = arith.constant dense<0.000000e+00> : vector<8x96xf32>
    %374 = tpu.matmul %371, %216, %cst_66 {dimension_numbers = #tpu.dot_dimension_numbers<[1], [0], [0], [1], [0, 0, 1, 1], [], []>} : vector<8x32xf32>, vector<32x96xf32>, vector<8x96xf32> -> vector<8x96xf32>
    %375 = vector.extract_strided_slice %373 {offsets = [0, 0], sizes = [8, 64], strides = [1, 1]} : vector<8x96xf32> to vector<8x64xf32>
    %376 = vector.extract_strided_slice %374 {offsets = [0, 0], sizes = [8, 64], strides = [1, 1]} : vector<8x96xf32> to vector<8x64xf32>
    %377 = arith.addf %375, %376 : vector<8x64xf32>
    %378 = arith.negf %377 : vector<8x64xf32>
    %379 = math.exp %378 : vector<8x64xf32>
    %cst_67 = arith.constant 1.000000e+00 : f32
    %380 = vector.broadcast %cst_67 : f32 to vector<8x64xf32>
    %381 = arith.addf %380, %379 : vector<8x64xf32>
    %382 = arith.divf %380, %381 : vector<8x64xf32>
    %383 = vector.extract_strided_slice %382 {offsets = [0, 0], sizes = [8, 32], strides = [1, 1]} : vector<8x64xf32> to vector<8x32xf32>
    %384 = vector.extract_strided_slice %382 {offsets = [0, 32], sizes = [8, 32], strides = [1, 1]} : vector<8x64xf32> to vector<8x32xf32>
    %385 = vector.extract_strided_slice %373 {offsets = [0, 64], sizes = [8, 32], strides = [1, 1]} : vector<8x96xf32> to vector<8x32xf32>
    %386 = vector.extract_strided_slice %374 {offsets = [0, 64], sizes = [8, 32], strides = [1, 1]} : vector<8x96xf32> to vector<8x32xf32>
    %387 = arith.addf %386, %220 : vector<8x32xf32>
    %388 = arith.mulf %383, %387 : vector<8x32xf32>
    %389 = arith.addf %385, %388 : vector<8x32xf32>
    %390 = math.tanh %389 : vector<8x32xf32>
    %cst_68 = arith.constant 1.000000e+00 : f32
    %391 = vector.broadcast %cst_68 : f32 to vector<8x32xf32>
    %392 = arith.subf %391, %384 : vector<8x32xf32>
    %393 = arith.mulf %392, %390 : vector<8x32xf32>
    %394 = arith.mulf %384, %371 : vector<8x32xf32>
    %395 = arith.addf %393, %394 : vector<8x32xf32>
    %396 = vector.extract_strided_slice %225 {offsets = [7, 0, 0], sizes = [1, 8, 96], strides = [1, 1, 1]} : vector<8x8x96xf32> to vector<1x8x96xf32>
    %397 = vector.shape_cast %396 : vector<1x8x96xf32> to vector<8x96xf32>
    %cst_69 = arith.constant dense<0.000000e+00> : vector<8x96xf32>
    %398 = tpu.matmul %395, %216, %cst_69 {dimension_numbers = #tpu.dot_dimension_numbers<[1], [0], [0], [1], [0, 0, 1, 1], [], []>} : vector<8x32xf32>, vector<32x96xf32>, vector<8x96xf32> -> vector<8x96xf32>
    %399 = vector.extract_strided_slice %397 {offsets = [0, 0], sizes = [8, 64], strides = [1, 1]} : vector<8x96xf32> to vector<8x64xf32>
    %400 = vector.extract_strided_slice %398 {offsets = [0, 0], sizes = [8, 64], strides = [1, 1]} : vector<8x96xf32> to vector<8x64xf32>
    %401 = arith.addf %399, %400 : vector<8x64xf32>
    %402 = arith.negf %401 : vector<8x64xf32>
    %403 = math.exp %402 : vector<8x64xf32>
    %cst_70 = arith.constant 1.000000e+00 : f32
    %404 = vector.broadcast %cst_70 : f32 to vector<8x64xf32>
    %405 = arith.addf %404, %403 : vector<8x64xf32>
    %406 = arith.divf %404, %405 : vector<8x64xf32>
    %407 = vector.extract_strided_slice %406 {offsets = [0, 0], sizes = [8, 32], strides = [1, 1]} : vector<8x64xf32> to vector<8x32xf32>
    %408 = vector.extract_strided_slice %406 {offsets = [0, 32], sizes = [8, 32], strides = [1, 1]} : vector<8x64xf32> to vector<8x32xf32>
    %409 = vector.extract_strided_slice %397 {offsets = [0, 64], sizes = [8, 32], strides = [1, 1]} : vector<8x96xf32> to vector<8x32xf32>
    %410 = vector.extract_strided_slice %398 {offsets = [0, 64], sizes = [8, 32], strides = [1, 1]} : vector<8x96xf32> to vector<8x32xf32>
    %411 = arith.addf %410, %220 : vector<8x32xf32>
    %412 = arith.mulf %407, %411 : vector<8x32xf32>
    %413 = arith.addf %409, %412 : vector<8x32xf32>
    %414 = math.tanh %413 : vector<8x32xf32>
    %cst_71 = arith.constant 1.000000e+00 : f32
    %415 = vector.broadcast %cst_71 : f32 to vector<8x32xf32>
    %416 = arith.subf %415, %408 : vector<8x32xf32>
    %417 = arith.mulf %416, %414 : vector<8x32xf32>
    %418 = arith.mulf %408, %395 : vector<8x32xf32>
    %419 = arith.addf %417, %418 : vector<8x32xf32>
    %420 = vector.shape_cast %251 : vector<8x32xf32> to vector<1x8x32xf32>
    %421 = vector.shape_cast %275 : vector<8x32xf32> to vector<1x8x32xf32>
    %422 = vector.shape_cast %299 : vector<8x32xf32> to vector<1x8x32xf32>
    %423 = vector.shape_cast %323 : vector<8x32xf32> to vector<1x8x32xf32>
    %424 = vector.shape_cast %347 : vector<8x32xf32> to vector<1x8x32xf32>
    %425 = vector.shape_cast %371 : vector<8x32xf32> to vector<1x8x32xf32>
    %426 = vector.shape_cast %395 : vector<8x32xf32> to vector<1x8x32xf32>
    %427 = vector.shape_cast %419 : vector<8x32xf32> to vector<1x8x32xf32>
    %428 = tpu.concatenate %420, %421, %422, %423, %424, %425, %426, %427 in 0 : vector<1x8x32xf32>, vector<1x8x32xf32>, vector<1x8x32xf32>, vector<1x8x32xf32>, vector<1x8x32xf32>, vector<1x8x32xf32>, vector<1x8x32xf32>, vector<1x8x32xf32> -> vector<8x8x32xf32>
    %429 = arith.negf %428 : vector<8x8x32xf32>
    %430 = math.exp %429 : vector<8x8x32xf32>
    %cst_72 = arith.constant 1.000000e+00 : f32
    %431 = vector.broadcast %cst_72 : f32 to vector<8x8x32xf32>
    %432 = arith.addf %431, %430 : vector<8x8x32xf32>
    %433 = arith.divf %431, %432 : vector<8x8x32xf32>
    %434 = vector.shape_cast %433 : vector<8x8x32xf32> to vector<64x32xf32>
    %c0_73 = arith.constant 0 : index
    %c0_74 = arith.constant 0 : index
    %435 = vector.load %arg19[%c0_73, %c0_74] : memref<32x32xf32, #tpu.memory_space<vmem>>, vector<32x32xf32>
    %cst_75 = arith.constant dense<0.000000e+00> : vector<64x32xf32>
    %436 = tpu.matmul %434, %435, %cst_75 {dimension_numbers = #tpu.dot_dimension_numbers<[1], [0], [0], [1], [0, 0, 1, 1], [], []>} : vector<64x32xf32>, vector<32x32xf32>, vector<64x32xf32> -> vector<64x32xf32>
    %c0_76 = arith.constant 0 : index
    %c0_77 = arith.constant 0 : index
    %437 = vector.load %arg20[%c0_76, %c0_77] : memref<1x32xf32, #tpu.memory_space<vmem>>, vector<1x32xf32>
    %438 = vector.broadcast %437 : vector<1x32xf32> to vector<64x32xf32>
    %439 = arith.addf %436, %438 : vector<64x32xf32>
    %440 = vector.shape_cast %439 : vector<64x32xf32> to vector<8x8x32xf32>
    %c0_78 = arith.constant 0 : index
    %c0_79 = arith.constant 0 : index
    %441 = vector.load %arg11[%c0_78, %c0_79] : memref<32x96xf32, #tpu.memory_space<vmem>>, vector<32x96xf32>
    %c0_80 = arith.constant 0 : index
    %c0_81 = arith.constant 0 : index
    %442 = vector.load %arg12[%c0_80, %c0_81] : memref<32x96xf32, #tpu.memory_space<vmem>>, vector<32x96xf32>
    %c0_82 = arith.constant 0 : index
    %c0_83 = arith.constant 0 : index
    %443 = vector.load %arg13[%c0_82, %c0_83] : memref<1x96xf32, #tpu.memory_space<vmem>>, vector<1x96xf32>
    %c0_84 = arith.constant 0 : index
    %c0_85 = arith.constant 0 : index
    %444 = vector.load %arg14[%c0_84, %c0_85] : memref<1x32xf32, #tpu.memory_space<vmem>>, vector<1x32xf32>
    %445 = vector.shape_cast %444 : vector<1x32xf32> to vector<1x32xf32>
    %446 = vector.broadcast %445 : vector<1x32xf32> to vector<8x32xf32>
    %447 = vector.shape_cast %440 : vector<8x8x32xf32> to vector<64x32xf32>
    %cst_86 = arith.constant dense<0.000000e+00> : vector<64x96xf32>
    %448 = tpu.matmul %447, %441, %cst_86 {dimension_numbers = #tpu.dot_dimension_numbers<[1], [0], [0], [1], [0, 0, 1, 1], [], []>} : vector<64x32xf32>, vector<32x96xf32>, vector<64x96xf32> -> vector<64x96xf32>
    %449 = vector.broadcast %443 : vector<1x96xf32> to vector<64x96xf32>
    %450 = arith.addf %448, %449 : vector<64x96xf32>
    %451 = vector.shape_cast %450 : vector<64x96xf32> to vector<8x8x96xf32>
    %c0_87 = arith.constant 0 : index
    %c0_88 = arith.constant 0 : index
    %c0_89 = arith.constant 0 : index
    %452 = vector.load %arg2[%c0_87, %c0_88, %c0_89] : memref<2x8x32xf32, #tpu.memory_space<vmem>>, vector<1x8x32xf32>
    %453 = vector.shape_cast %452 : vector<1x8x32xf32> to vector<8x32xf32>
    %454 = vector.extract_strided_slice %451 {offsets = [0, 0, 0], sizes = [1, 8, 96], strides = [1, 1, 1]} : vector<8x8x96xf32> to vector<1x8x96xf32>
    %455 = vector.shape_cast %454 : vector<1x8x96xf32> to vector<8x96xf32>
    %cst_90 = arith.constant dense<0.000000e+00> : vector<8x96xf32>
    %456 = tpu.matmul %453, %442, %cst_90 {dimension_numbers = #tpu.dot_dimension_numbers<[1], [0], [0], [1], [0, 0, 1, 1], [], []>} : vector<8x32xf32>, vector<32x96xf32>, vector<8x96xf32> -> vector<8x96xf32>
    %457 = vector.extract_strided_slice %455 {offsets = [0, 0], sizes = [8, 64], strides = [1, 1]} : vector<8x96xf32> to vector<8x64xf32>
    %458 = vector.extract_strided_slice %456 {offsets = [0, 0], sizes = [8, 64], strides = [1, 1]} : vector<8x96xf32> to vector<8x64xf32>
    %459 = arith.addf %457, %458 : vector<8x64xf32>
    %460 = arith.negf %459 : vector<8x64xf32>
    %461 = math.exp %460 : vector<8x64xf32>
    %cst_91 = arith.constant 1.000000e+00 : f32
    %462 = vector.broadcast %cst_91 : f32 to vector<8x64xf32>
    %463 = arith.addf %462, %461 : vector<8x64xf32>
    %464 = arith.divf %462, %463 : vector<8x64xf32>
    %465 = vector.extract_strided_slice %464 {offsets = [0, 0], sizes = [8, 32], strides = [1, 1]} : vector<8x64xf32> to vector<8x32xf32>
    %466 = vector.extract_strided_slice %464 {offsets = [0, 32], sizes = [8, 32], strides = [1, 1]} : vector<8x64xf32> to vector<8x32xf32>
    %467 = vector.extract_strided_slice %455 {offsets = [0, 64], sizes = [8, 32], strides = [1, 1]} : vector<8x96xf32> to vector<8x32xf32>
    %468 = vector.extract_strided_slice %456 {offsets = [0, 64], sizes = [8, 32], strides = [1, 1]} : vector<8x96xf32> to vector<8x32xf32>
    %469 = arith.addf %468, %446 : vector<8x32xf32>
    %470 = arith.mulf %465, %469 : vector<8x32xf32>
    %471 = arith.addf %467, %470 : vector<8x32xf32>
    %472 = math.tanh %471 : vector<8x32xf32>
    %cst_92 = arith.constant 1.000000e+00 : f32
    %473 = vector.broadcast %cst_92 : f32 to vector<8x32xf32>
    %474 = arith.subf %473, %466 : vector<8x32xf32>
    %475 = arith.mulf %474, %472 : vector<8x32xf32>
    %476 = arith.mulf %466, %453 : vector<8x32xf32>
    %477 = arith.addf %475, %476 : vector<8x32xf32>
    %478 = vector.extract_strided_slice %451 {offsets = [1, 0, 0], sizes = [1, 8, 96], strides = [1, 1, 1]} : vector<8x8x96xf32> to vector<1x8x96xf32>
    %479 = vector.shape_cast %478 : vector<1x8x96xf32> to vector<8x96xf32>
    %cst_93 = arith.constant dense<0.000000e+00> : vector<8x96xf32>
    %480 = tpu.matmul %477, %442, %cst_93 {dimension_numbers = #tpu.dot_dimension_numbers<[1], [0], [0], [1], [0, 0, 1, 1], [], []>} : vector<8x32xf32>, vector<32x96xf32>, vector<8x96xf32> -> vector<8x96xf32>
    %481 = vector.extract_strided_slice %479 {offsets = [0, 0], sizes = [8, 64], strides = [1, 1]} : vector<8x96xf32> to vector<8x64xf32>
    %482 = vector.extract_strided_slice %480 {offsets = [0, 0], sizes = [8, 64], strides = [1, 1]} : vector<8x96xf32> to vector<8x64xf32>
    %483 = arith.addf %481, %482 : vector<8x64xf32>
    %484 = arith.negf %483 : vector<8x64xf32>
    %485 = math.exp %484 : vector<8x64xf32>
    %cst_94 = arith.constant 1.000000e+00 : f32
    %486 = vector.broadcast %cst_94 : f32 to vector<8x64xf32>
    %487 = arith.addf %486, %485 : vector<8x64xf32>
    %488 = arith.divf %486, %487 : vector<8x64xf32>
    %489 = vector.extract_strided_slice %488 {offsets = [0, 0], sizes = [8, 32], strides = [1, 1]} : vector<8x64xf32> to vector<8x32xf32>
    %490 = vector.extract_strided_slice %488 {offsets = [0, 32], sizes = [8, 32], strides = [1, 1]} : vector<8x64xf32> to vector<8x32xf32>
    %491 = vector.extract_strided_slice %479 {offsets = [0, 64], sizes = [8, 32], strides = [1, 1]} : vector<8x96xf32> to vector<8x32xf32>
    %492 = vector.extract_strided_slice %480 {offsets = [0, 64], sizes = [8, 32], strides = [1, 1]} : vector<8x96xf32> to vector<8x32xf32>
    %493 = arith.addf %492, %446 : vector<8x32xf32>
    %494 = arith.mulf %489, %493 : vector<8x32xf32>
    %495 = arith.addf %491, %494 : vector<8x32xf32>
    %496 = math.tanh %495 : vector<8x32xf32>
    %cst_95 = arith.constant 1.000000e+00 : f32
    %497 = vector.broadcast %cst_95 : f32 to vector<8x32xf32>
    %498 = arith.subf %497, %490 : vector<8x32xf32>
    %499 = arith.mulf %498, %496 : vector<8x32xf32>
    %500 = arith.mulf %490, %477 : vector<8x32xf32>
    %501 = arith.addf %499, %500 : vector<8x32xf32>
    %502 = vector.extract_strided_slice %451 {offsets = [2, 0, 0], sizes = [1, 8, 96], strides = [1, 1, 1]} : vector<8x8x96xf32> to vector<1x8x96xf32>
    %503 = vector.shape_cast %502 : vector<1x8x96xf32> to vector<8x96xf32>
    %cst_96 = arith.constant dense<0.000000e+00> : vector<8x96xf32>
    %504 = tpu.matmul %501, %442, %cst_96 {dimension_numbers = #tpu.dot_dimension_numbers<[1], [0], [0], [1], [0, 0, 1, 1], [], []>} : vector<8x32xf32>, vector<32x96xf32>, vector<8x96xf32> -> vector<8x96xf32>
    %505 = vector.extract_strided_slice %503 {offsets = [0, 0], sizes = [8, 64], strides = [1, 1]} : vector<8x96xf32> to vector<8x64xf32>
    %506 = vector.extract_strided_slice %504 {offsets = [0, 0], sizes = [8, 64], strides = [1, 1]} : vector<8x96xf32> to vector<8x64xf32>
    %507 = arith.addf %505, %506 : vector<8x64xf32>
    %508 = arith.negf %507 : vector<8x64xf32>
    %509 = math.exp %508 : vector<8x64xf32>
    %cst_97 = arith.constant 1.000000e+00 : f32
    %510 = vector.broadcast %cst_97 : f32 to vector<8x64xf32>
    %511 = arith.addf %510, %509 : vector<8x64xf32>
    %512 = arith.divf %510, %511 : vector<8x64xf32>
    %513 = vector.extract_strided_slice %512 {offsets = [0, 0], sizes = [8, 32], strides = [1, 1]} : vector<8x64xf32> to vector<8x32xf32>
    %514 = vector.extract_strided_slice %512 {offsets = [0, 32], sizes = [8, 32], strides = [1, 1]} : vector<8x64xf32> to vector<8x32xf32>
    %515 = vector.extract_strided_slice %503 {offsets = [0, 64], sizes = [8, 32], strides = [1, 1]} : vector<8x96xf32> to vector<8x32xf32>
    %516 = vector.extract_strided_slice %504 {offsets = [0, 64], sizes = [8, 32], strides = [1, 1]} : vector<8x96xf32> to vector<8x32xf32>
    %517 = arith.addf %516, %446 : vector<8x32xf32>
    %518 = arith.mulf %513, %517 : vector<8x32xf32>
    %519 = arith.addf %515, %518 : vector<8x32xf32>
    %520 = math.tanh %519 : vector<8x32xf32>
    %cst_98 = arith.constant 1.000000e+00 : f32
    %521 = vector.broadcast %cst_98 : f32 to vector<8x32xf32>
    %522 = arith.subf %521, %514 : vector<8x32xf32>
    %523 = arith.mulf %522, %520 : vector<8x32xf32>
    %524 = arith.mulf %514, %501 : vector<8x32xf32>
    %525 = arith.addf %523, %524 : vector<8x32xf32>
    %526 = vector.extract_strided_slice %451 {offsets = [3, 0, 0], sizes = [1, 8, 96], strides = [1, 1, 1]} : vector<8x8x96xf32> to vector<1x8x96xf32>
    %527 = vector.shape_cast %526 : vector<1x8x96xf32> to vector<8x96xf32>
    %cst_99 = arith.constant dense<0.000000e+00> : vector<8x96xf32>
    %528 = tpu.matmul %525, %442, %cst_99 {dimension_numbers = #tpu.dot_dimension_numbers<[1], [0], [0], [1], [0, 0, 1, 1], [], []>} : vector<8x32xf32>, vector<32x96xf32>, vector<8x96xf32> -> vector<8x96xf32>
    %529 = vector.extract_strided_slice %527 {offsets = [0, 0], sizes = [8, 64], strides = [1, 1]} : vector<8x96xf32> to vector<8x64xf32>
    %530 = vector.extract_strided_slice %528 {offsets = [0, 0], sizes = [8, 64], strides = [1, 1]} : vector<8x96xf32> to vector<8x64xf32>
    %531 = arith.addf %529, %530 : vector<8x64xf32>
    %532 = arith.negf %531 : vector<8x64xf32>
    %533 = math.exp %532 : vector<8x64xf32>
    %cst_100 = arith.constant 1.000000e+00 : f32
    %534 = vector.broadcast %cst_100 : f32 to vector<8x64xf32>
    %535 = arith.addf %534, %533 : vector<8x64xf32>
    %536 = arith.divf %534, %535 : vector<8x64xf32>
    %537 = vector.extract_strided_slice %536 {offsets = [0, 0], sizes = [8, 32], strides = [1, 1]} : vector<8x64xf32> to vector<8x32xf32>
    %538 = vector.extract_strided_slice %536 {offsets = [0, 32], sizes = [8, 32], strides = [1, 1]} : vector<8x64xf32> to vector<8x32xf32>
    %539 = vector.extract_strided_slice %527 {offsets = [0, 64], sizes = [8, 32], strides = [1, 1]} : vector<8x96xf32> to vector<8x32xf32>
    %540 = vector.extract_strided_slice %528 {offsets = [0, 64], sizes = [8, 32], strides = [1, 1]} : vector<8x96xf32> to vector<8x32xf32>
    %541 = arith.addf %540, %446 : vector<8x32xf32>
    %542 = arith.mulf %537, %541 : vector<8x32xf32>
    %543 = arith.addf %539, %542 : vector<8x32xf32>
    %544 = math.tanh %543 : vector<8x32xf32>
    %cst_101 = arith.constant 1.000000e+00 : f32
    %545 = vector.broadcast %cst_101 : f32 to vector<8x32xf32>
    %546 = arith.subf %545, %538 : vector<8x32xf32>
    %547 = arith.mulf %546, %544 : vector<8x32xf32>
    %548 = arith.mulf %538, %525 : vector<8x32xf32>
    %549 = arith.addf %547, %548 : vector<8x32xf32>
    %550 = vector.extract_strided_slice %451 {offsets = [4, 0, 0], sizes = [1, 8, 96], strides = [1, 1, 1]} : vector<8x8x96xf32> to vector<1x8x96xf32>
    %551 = vector.shape_cast %550 : vector<1x8x96xf32> to vector<8x96xf32>
    %cst_102 = arith.constant dense<0.000000e+00> : vector<8x96xf32>
    %552 = tpu.matmul %549, %442, %cst_102 {dimension_numbers = #tpu.dot_dimension_numbers<[1], [0], [0], [1], [0, 0, 1, 1], [], []>} : vector<8x32xf32>, vector<32x96xf32>, vector<8x96xf32> -> vector<8x96xf32>
    %553 = vector.extract_strided_slice %551 {offsets = [0, 0], sizes = [8, 64], strides = [1, 1]} : vector<8x96xf32> to vector<8x64xf32>
    %554 = vector.extract_strided_slice %552 {offsets = [0, 0], sizes = [8, 64], strides = [1, 1]} : vector<8x96xf32> to vector<8x64xf32>
    %555 = arith.addf %553, %554 : vector<8x64xf32>
    %556 = arith.negf %555 : vector<8x64xf32>
    %557 = math.exp %556 : vector<8x64xf32>
    %cst_103 = arith.constant 1.000000e+00 : f32
    %558 = vector.broadcast %cst_103 : f32 to vector<8x64xf32>
    %559 = arith.addf %558, %557 : vector<8x64xf32>
    %560 = arith.divf %558, %559 : vector<8x64xf32>
    %561 = vector.extract_strided_slice %560 {offsets = [0, 0], sizes = [8, 32], strides = [1, 1]} : vector<8x64xf32> to vector<8x32xf32>
    %562 = vector.extract_strided_slice %560 {offsets = [0, 32], sizes = [8, 32], strides = [1, 1]} : vector<8x64xf32> to vector<8x32xf32>
    %563 = vector.extract_strided_slice %551 {offsets = [0, 64], sizes = [8, 32], strides = [1, 1]} : vector<8x96xf32> to vector<8x32xf32>
    %564 = vector.extract_strided_slice %552 {offsets = [0, 64], sizes = [8, 32], strides = [1, 1]} : vector<8x96xf32> to vector<8x32xf32>
    %565 = arith.addf %564, %446 : vector<8x32xf32>
    %566 = arith.mulf %561, %565 : vector<8x32xf32>
    %567 = arith.addf %563, %566 : vector<8x32xf32>
    %568 = math.tanh %567 : vector<8x32xf32>
    %cst_104 = arith.constant 1.000000e+00 : f32
    %569 = vector.broadcast %cst_104 : f32 to vector<8x32xf32>
    %570 = arith.subf %569, %562 : vector<8x32xf32>
    %571 = arith.mulf %570, %568 : vector<8x32xf32>
    %572 = arith.mulf %562, %549 : vector<8x32xf32>
    %573 = arith.addf %571, %572 : vector<8x32xf32>
    %574 = vector.extract_strided_slice %451 {offsets = [5, 0, 0], sizes = [1, 8, 96], strides = [1, 1, 1]} : vector<8x8x96xf32> to vector<1x8x96xf32>
    %575 = vector.shape_cast %574 : vector<1x8x96xf32> to vector<8x96xf32>
    %cst_105 = arith.constant dense<0.000000e+00> : vector<8x96xf32>
    %576 = tpu.matmul %573, %442, %cst_105 {dimension_numbers = #tpu.dot_dimension_numbers<[1], [0], [0], [1], [0, 0, 1, 1], [], []>} : vector<8x32xf32>, vector<32x96xf32>, vector<8x96xf32> -> vector<8x96xf32>
    %577 = vector.extract_strided_slice %575 {offsets = [0, 0], sizes = [8, 64], strides = [1, 1]} : vector<8x96xf32> to vector<8x64xf32>
    %578 = vector.extract_strided_slice %576 {offsets = [0, 0], sizes = [8, 64], strides = [1, 1]} : vector<8x96xf32> to vector<8x64xf32>
    %579 = arith.addf %577, %578 : vector<8x64xf32>
    %580 = arith.negf %579 : vector<8x64xf32>
    %581 = math.exp %580 : vector<8x64xf32>
    %cst_106 = arith.constant 1.000000e+00 : f32
    %582 = vector.broadcast %cst_106 : f32 to vector<8x64xf32>
    %583 = arith.addf %582, %581 : vector<8x64xf32>
    %584 = arith.divf %582, %583 : vector<8x64xf32>
    %585 = vector.extract_strided_slice %584 {offsets = [0, 0], sizes = [8, 32], strides = [1, 1]} : vector<8x64xf32> to vector<8x32xf32>
    %586 = vector.extract_strided_slice %584 {offsets = [0, 32], sizes = [8, 32], strides = [1, 1]} : vector<8x64xf32> to vector<8x32xf32>
    %587 = vector.extract_strided_slice %575 {offsets = [0, 64], sizes = [8, 32], strides = [1, 1]} : vector<8x96xf32> to vector<8x32xf32>
    %588 = vector.extract_strided_slice %576 {offsets = [0, 64], sizes = [8, 32], strides = [1, 1]} : vector<8x96xf32> to vector<8x32xf32>
    %589 = arith.addf %588, %446 : vector<8x32xf32>
    %590 = arith.mulf %585, %589 : vector<8x32xf32>
    %591 = arith.addf %587, %590 : vector<8x32xf32>
    %592 = math.tanh %591 : vector<8x32xf32>
    %cst_107 = arith.constant 1.000000e+00 : f32
    %593 = vector.broadcast %cst_107 : f32 to vector<8x32xf32>
    %594 = arith.subf %593, %586 : vector<8x32xf32>
    %595 = arith.mulf %594, %592 : vector<8x32xf32>
    %596 = arith.mulf %586, %573 : vector<8x32xf32>
    %597 = arith.addf %595, %596 : vector<8x32xf32>
    %598 = vector.extract_strided_slice %451 {offsets = [6, 0, 0], sizes = [1, 8, 96], strides = [1, 1, 1]} : vector<8x8x96xf32> to vector<1x8x96xf32>
    %599 = vector.shape_cast %598 : vector<1x8x96xf32> to vector<8x96xf32>
    %cst_108 = arith.constant dense<0.000000e+00> : vector<8x96xf32>
    %600 = tpu.matmul %597, %442, %cst_108 {dimension_numbers = #tpu.dot_dimension_numbers<[1], [0], [0], [1], [0, 0, 1, 1], [], []>} : vector<8x32xf32>, vector<32x96xf32>, vector<8x96xf32> -> vector<8x96xf32>
    %601 = vector.extract_strided_slice %599 {offsets = [0, 0], sizes = [8, 64], strides = [1, 1]} : vector<8x96xf32> to vector<8x64xf32>
    %602 = vector.extract_strided_slice %600 {offsets = [0, 0], sizes = [8, 64], strides = [1, 1]} : vector<8x96xf32> to vector<8x64xf32>
    %603 = arith.addf %601, %602 : vector<8x64xf32>
    %604 = arith.negf %603 : vector<8x64xf32>
    %605 = math.exp %604 : vector<8x64xf32>
    %cst_109 = arith.constant 1.000000e+00 : f32
    %606 = vector.broadcast %cst_109 : f32 to vector<8x64xf32>
    %607 = arith.addf %606, %605 : vector<8x64xf32>
    %608 = arith.divf %606, %607 : vector<8x64xf32>
    %609 = vector.extract_strided_slice %608 {offsets = [0, 0], sizes = [8, 32], strides = [1, 1]} : vector<8x64xf32> to vector<8x32xf32>
    %610 = vector.extract_strided_slice %608 {offsets = [0, 32], sizes = [8, 32], strides = [1, 1]} : vector<8x64xf32> to vector<8x32xf32>
    %611 = vector.extract_strided_slice %599 {offsets = [0, 64], sizes = [8, 32], strides = [1, 1]} : vector<8x96xf32> to vector<8x32xf32>
    %612 = vector.extract_strided_slice %600 {offsets = [0, 64], sizes = [8, 32], strides = [1, 1]} : vector<8x96xf32> to vector<8x32xf32>
    %613 = arith.addf %612, %446 : vector<8x32xf32>
    %614 = arith.mulf %609, %613 : vector<8x32xf32>
    %615 = arith.addf %611, %614 : vector<8x32xf32>
    %616 = math.tanh %615 : vector<8x32xf32>
    %cst_110 = arith.constant 1.000000e+00 : f32
    %617 = vector.broadcast %cst_110 : f32 to vector<8x32xf32>
    %618 = arith.subf %617, %610 : vector<8x32xf32>
    %619 = arith.mulf %618, %616 : vector<8x32xf32>
    %620 = arith.mulf %610, %597 : vector<8x32xf32>
    %621 = arith.addf %619, %620 : vector<8x32xf32>
    %622 = vector.extract_strided_slice %451 {offsets = [7, 0, 0], sizes = [1, 8, 96], strides = [1, 1, 1]} : vector<8x8x96xf32> to vector<1x8x96xf32>
    %623 = vector.shape_cast %622 : vector<1x8x96xf32> to vector<8x96xf32>
    %cst_111 = arith.constant dense<0.000000e+00> : vector<8x96xf32>
    %624 = tpu.matmul %621, %442, %cst_111 {dimension_numbers = #tpu.dot_dimension_numbers<[1], [0], [0], [1], [0, 0, 1, 1], [], []>} : vector<8x32xf32>, vector<32x96xf32>, vector<8x96xf32> -> vector<8x96xf32>
    %625 = vector.extract_strided_slice %623 {offsets = [0, 0], sizes = [8, 64], strides = [1, 1]} : vector<8x96xf32> to vector<8x64xf32>
    %626 = vector.extract_strided_slice %624 {offsets = [0, 0], sizes = [8, 64], strides = [1, 1]} : vector<8x96xf32> to vector<8x64xf32>
    %627 = arith.addf %625, %626 : vector<8x64xf32>
    %628 = arith.negf %627 : vector<8x64xf32>
    %629 = math.exp %628 : vector<8x64xf32>
    %cst_112 = arith.constant 1.000000e+00 : f32
    %630 = vector.broadcast %cst_112 : f32 to vector<8x64xf32>
    %631 = arith.addf %630, %629 : vector<8x64xf32>
    %632 = arith.divf %630, %631 : vector<8x64xf32>
    %633 = vector.extract_strided_slice %632 {offsets = [0, 0], sizes = [8, 32], strides = [1, 1]} : vector<8x64xf32> to vector<8x32xf32>
    %634 = vector.extract_strided_slice %632 {offsets = [0, 32], sizes = [8, 32], strides = [1, 1]} : vector<8x64xf32> to vector<8x32xf32>
    %635 = vector.extract_strided_slice %623 {offsets = [0, 64], sizes = [8, 32], strides = [1, 1]} : vector<8x96xf32> to vector<8x32xf32>
    %636 = vector.extract_strided_slice %624 {offsets = [0, 64], sizes = [8, 32], strides = [1, 1]} : vector<8x96xf32> to vector<8x32xf32>
    %637 = arith.addf %636, %446 : vector<8x32xf32>
    %638 = arith.mulf %633, %637 : vector<8x32xf32>
    %639 = arith.addf %635, %638 : vector<8x32xf32>
    %640 = math.tanh %639 : vector<8x32xf32>
    %cst_113 = arith.constant 1.000000e+00 : f32
    %641 = vector.broadcast %cst_113 : f32 to vector<8x32xf32>
    %642 = arith.subf %641, %634 : vector<8x32xf32>
    %643 = arith.mulf %642, %640 : vector<8x32xf32>
    %644 = arith.mulf %634, %621 : vector<8x32xf32>
    %645 = arith.addf %643, %644 : vector<8x32xf32>
    %646 = vector.shape_cast %477 : vector<8x32xf32> to vector<1x8x32xf32>
    %647 = vector.shape_cast %501 : vector<8x32xf32> to vector<1x8x32xf32>
    %648 = vector.shape_cast %525 : vector<8x32xf32> to vector<1x8x32xf32>
    %649 = vector.shape_cast %549 : vector<8x32xf32> to vector<1x8x32xf32>
    %650 = vector.shape_cast %573 : vector<8x32xf32> to vector<1x8x32xf32>
    %651 = vector.shape_cast %597 : vector<8x32xf32> to vector<1x8x32xf32>
    %652 = vector.shape_cast %621 : vector<8x32xf32> to vector<1x8x32xf32>
    %653 = vector.shape_cast %645 : vector<8x32xf32> to vector<1x8x32xf32>
    %654 = tpu.concatenate %646, %647, %648, %649, %650, %651, %652, %653 in 0 : vector<1x8x32xf32>, vector<1x8x32xf32>, vector<1x8x32xf32>, vector<1x8x32xf32>, vector<1x8x32xf32>, vector<1x8x32xf32>, vector<1x8x32xf32>, vector<1x8x32xf32> -> vector<8x8x32xf32>
    %c0_114 = arith.constant 0 : index
    %c0_115 = arith.constant 0 : index
    %655 = vector.load %arg15[%c0_114, %c0_115] : memref<32x96xf32, #tpu.memory_space<vmem>>, vector<32x96xf32>
    %c0_116 = arith.constant 0 : index
    %c0_117 = arith.constant 0 : index
    %656 = vector.load %arg16[%c0_116, %c0_117] : memref<32x96xf32, #tpu.memory_space<vmem>>, vector<32x96xf32>
    %c0_118 = arith.constant 0 : index
    %c0_119 = arith.constant 0 : index
    %657 = vector.load %arg17[%c0_118, %c0_119] : memref<1x96xf32, #tpu.memory_space<vmem>>, vector<1x96xf32>
    %c0_120 = arith.constant 0 : index
    %c0_121 = arith.constant 0 : index
    %658 = vector.load %arg18[%c0_120, %c0_121] : memref<1x32xf32, #tpu.memory_space<vmem>>, vector<1x32xf32>
    %659 = vector.shape_cast %658 : vector<1x32xf32> to vector<1x32xf32>
    %660 = vector.broadcast %659 : vector<1x32xf32> to vector<8x32xf32>
    %661 = vector.shape_cast %654 : vector<8x8x32xf32> to vector<64x32xf32>
    %cst_122 = arith.constant dense<0.000000e+00> : vector<64x96xf32>
    %662 = tpu.matmul %661, %655, %cst_122 {dimension_numbers = #tpu.dot_dimension_numbers<[1], [0], [0], [1], [0, 0, 1, 1], [], []>} : vector<64x32xf32>, vector<32x96xf32>, vector<64x96xf32> -> vector<64x96xf32>
    %663 = vector.broadcast %657 : vector<1x96xf32> to vector<64x96xf32>
    %664 = arith.addf %662, %663 : vector<64x96xf32>
    %665 = vector.shape_cast %664 : vector<64x96xf32> to vector<8x8x96xf32>
    %c1_123 = arith.constant 1 : index
    %c0_124 = arith.constant 0 : index
    %c0_125 = arith.constant 0 : index
    %666 = vector.load %arg2[%c1_123, %c0_124, %c0_125] : memref<2x8x32xf32, #tpu.memory_space<vmem>>, vector<1x8x32xf32>
    %667 = vector.shape_cast %666 : vector<1x8x32xf32> to vector<8x32xf32>
    %668 = vector.extract_strided_slice %665 {offsets = [0, 0, 0], sizes = [1, 8, 96], strides = [1, 1, 1]} : vector<8x8x96xf32> to vector<1x8x96xf32>
    %669 = vector.shape_cast %668 : vector<1x8x96xf32> to vector<8x96xf32>
    %cst_126 = arith.constant dense<0.000000e+00> : vector<8x96xf32>
    %670 = tpu.matmul %667, %656, %cst_126 {dimension_numbers = #tpu.dot_dimension_numbers<[1], [0], [0], [1], [0, 0, 1, 1], [], []>} : vector<8x32xf32>, vector<32x96xf32>, vector<8x96xf32> -> vector<8x96xf32>
    %671 = vector.extract_strided_slice %669 {offsets = [0, 0], sizes = [8, 64], strides = [1, 1]} : vector<8x96xf32> to vector<8x64xf32>
    %672 = vector.extract_strided_slice %670 {offsets = [0, 0], sizes = [8, 64], strides = [1, 1]} : vector<8x96xf32> to vector<8x64xf32>
    %673 = arith.addf %671, %672 : vector<8x64xf32>
    %674 = arith.negf %673 : vector<8x64xf32>
    %675 = math.exp %674 : vector<8x64xf32>
    %cst_127 = arith.constant 1.000000e+00 : f32
    %676 = vector.broadcast %cst_127 : f32 to vector<8x64xf32>
    %677 = arith.addf %676, %675 : vector<8x64xf32>
    %678 = arith.divf %676, %677 : vector<8x64xf32>
    %679 = vector.extract_strided_slice %678 {offsets = [0, 0], sizes = [8, 32], strides = [1, 1]} : vector<8x64xf32> to vector<8x32xf32>
    %680 = vector.extract_strided_slice %678 {offsets = [0, 32], sizes = [8, 32], strides = [1, 1]} : vector<8x64xf32> to vector<8x32xf32>
    %681 = vector.extract_strided_slice %669 {offsets = [0, 64], sizes = [8, 32], strides = [1, 1]} : vector<8x96xf32> to vector<8x32xf32>
    %682 = vector.extract_strided_slice %670 {offsets = [0, 64], sizes = [8, 32], strides = [1, 1]} : vector<8x96xf32> to vector<8x32xf32>
    %683 = arith.addf %682, %660 : vector<8x32xf32>
    %684 = arith.mulf %679, %683 : vector<8x32xf32>
    %685 = arith.addf %681, %684 : vector<8x32xf32>
    %686 = math.tanh %685 : vector<8x32xf32>
    %cst_128 = arith.constant 1.000000e+00 : f32
    %687 = vector.broadcast %cst_128 : f32 to vector<8x32xf32>
    %688 = arith.subf %687, %680 : vector<8x32xf32>
    %689 = arith.mulf %688, %686 : vector<8x32xf32>
    %690 = arith.mulf %680, %667 : vector<8x32xf32>
    %691 = arith.addf %689, %690 : vector<8x32xf32>
    %692 = vector.extract_strided_slice %665 {offsets = [1, 0, 0], sizes = [1, 8, 96], strides = [1, 1, 1]} : vector<8x8x96xf32> to vector<1x8x96xf32>
    %693 = vector.shape_cast %692 : vector<1x8x96xf32> to vector<8x96xf32>
    %cst_129 = arith.constant dense<0.000000e+00> : vector<8x96xf32>
    %694 = tpu.matmul %691, %656, %cst_129 {dimension_numbers = #tpu.dot_dimension_numbers<[1], [0], [0], [1], [0, 0, 1, 1], [], []>} : vector<8x32xf32>, vector<32x96xf32>, vector<8x96xf32> -> vector<8x96xf32>
    %695 = vector.extract_strided_slice %693 {offsets = [0, 0], sizes = [8, 64], strides = [1, 1]} : vector<8x96xf32> to vector<8x64xf32>
    %696 = vector.extract_strided_slice %694 {offsets = [0, 0], sizes = [8, 64], strides = [1, 1]} : vector<8x96xf32> to vector<8x64xf32>
    %697 = arith.addf %695, %696 : vector<8x64xf32>
    %698 = arith.negf %697 : vector<8x64xf32>
    %699 = math.exp %698 : vector<8x64xf32>
    %cst_130 = arith.constant 1.000000e+00 : f32
    %700 = vector.broadcast %cst_130 : f32 to vector<8x64xf32>
    %701 = arith.addf %700, %699 : vector<8x64xf32>
    %702 = arith.divf %700, %701 : vector<8x64xf32>
    %703 = vector.extract_strided_slice %702 {offsets = [0, 0], sizes = [8, 32], strides = [1, 1]} : vector<8x64xf32> to vector<8x32xf32>
    %704 = vector.extract_strided_slice %702 {offsets = [0, 32], sizes = [8, 32], strides = [1, 1]} : vector<8x64xf32> to vector<8x32xf32>
    %705 = vector.extract_strided_slice %693 {offsets = [0, 64], sizes = [8, 32], strides = [1, 1]} : vector<8x96xf32> to vector<8x32xf32>
    %706 = vector.extract_strided_slice %694 {offsets = [0, 64], sizes = [8, 32], strides = [1, 1]} : vector<8x96xf32> to vector<8x32xf32>
    %707 = arith.addf %706, %660 : vector<8x32xf32>
    %708 = arith.mulf %703, %707 : vector<8x32xf32>
    %709 = arith.addf %705, %708 : vector<8x32xf32>
    %710 = math.tanh %709 : vector<8x32xf32>
    %cst_131 = arith.constant 1.000000e+00 : f32
    %711 = vector.broadcast %cst_131 : f32 to vector<8x32xf32>
    %712 = arith.subf %711, %704 : vector<8x32xf32>
    %713 = arith.mulf %712, %710 : vector<8x32xf32>
    %714 = arith.mulf %704, %691 : vector<8x32xf32>
    %715 = arith.addf %713, %714 : vector<8x32xf32>
    %716 = vector.extract_strided_slice %665 {offsets = [2, 0, 0], sizes = [1, 8, 96], strides = [1, 1, 1]} : vector<8x8x96xf32> to vector<1x8x96xf32>
    %717 = vector.shape_cast %716 : vector<1x8x96xf32> to vector<8x96xf32>
    %cst_132 = arith.constant dense<0.000000e+00> : vector<8x96xf32>
    %718 = tpu.matmul %715, %656, %cst_132 {dimension_numbers = #tpu.dot_dimension_numbers<[1], [0], [0], [1], [0, 0, 1, 1], [], []>} : vector<8x32xf32>, vector<32x96xf32>, vector<8x96xf32> -> vector<8x96xf32>
    %719 = vector.extract_strided_slice %717 {offsets = [0, 0], sizes = [8, 64], strides = [1, 1]} : vector<8x96xf32> to vector<8x64xf32>
    %720 = vector.extract_strided_slice %718 {offsets = [0, 0], sizes = [8, 64], strides = [1, 1]} : vector<8x96xf32> to vector<8x64xf32>
    %721 = arith.addf %719, %720 : vector<8x64xf32>
    %722 = arith.negf %721 : vector<8x64xf32>
    %723 = math.exp %722 : vector<8x64xf32>
    %cst_133 = arith.constant 1.000000e+00 : f32
    %724 = vector.broadcast %cst_133 : f32 to vector<8x64xf32>
    %725 = arith.addf %724, %723 : vector<8x64xf32>
    %726 = arith.divf %724, %725 : vector<8x64xf32>
    %727 = vector.extract_strided_slice %726 {offsets = [0, 0], sizes = [8, 32], strides = [1, 1]} : vector<8x64xf32> to vector<8x32xf32>
    %728 = vector.extract_strided_slice %726 {offsets = [0, 32], sizes = [8, 32], strides = [1, 1]} : vector<8x64xf32> to vector<8x32xf32>
    %729 = vector.extract_strided_slice %717 {offsets = [0, 64], sizes = [8, 32], strides = [1, 1]} : vector<8x96xf32> to vector<8x32xf32>
    %730 = vector.extract_strided_slice %718 {offsets = [0, 64], sizes = [8, 32], strides = [1, 1]} : vector<8x96xf32> to vector<8x32xf32>
    %731 = arith.addf %730, %660 : vector<8x32xf32>
    %732 = arith.mulf %727, %731 : vector<8x32xf32>
    %733 = arith.addf %729, %732 : vector<8x32xf32>
    %734 = math.tanh %733 : vector<8x32xf32>
    %cst_134 = arith.constant 1.000000e+00 : f32
    %735 = vector.broadcast %cst_134 : f32 to vector<8x32xf32>
    %736 = arith.subf %735, %728 : vector<8x32xf32>
    %737 = arith.mulf %736, %734 : vector<8x32xf32>
    %738 = arith.mulf %728, %715 : vector<8x32xf32>
    %739 = arith.addf %737, %738 : vector<8x32xf32>
    %740 = vector.extract_strided_slice %665 {offsets = [3, 0, 0], sizes = [1, 8, 96], strides = [1, 1, 1]} : vector<8x8x96xf32> to vector<1x8x96xf32>
    %741 = vector.shape_cast %740 : vector<1x8x96xf32> to vector<8x96xf32>
    %cst_135 = arith.constant dense<0.000000e+00> : vector<8x96xf32>
    %742 = tpu.matmul %739, %656, %cst_135 {dimension_numbers = #tpu.dot_dimension_numbers<[1], [0], [0], [1], [0, 0, 1, 1], [], []>} : vector<8x32xf32>, vector<32x96xf32>, vector<8x96xf32> -> vector<8x96xf32>
    %743 = vector.extract_strided_slice %741 {offsets = [0, 0], sizes = [8, 64], strides = [1, 1]} : vector<8x96xf32> to vector<8x64xf32>
    %744 = vector.extract_strided_slice %742 {offsets = [0, 0], sizes = [8, 64], strides = [1, 1]} : vector<8x96xf32> to vector<8x64xf32>
    %745 = arith.addf %743, %744 : vector<8x64xf32>
    %746 = arith.negf %745 : vector<8x64xf32>
    %747 = math.exp %746 : vector<8x64xf32>
    %cst_136 = arith.constant 1.000000e+00 : f32
    %748 = vector.broadcast %cst_136 : f32 to vector<8x64xf32>
    %749 = arith.addf %748, %747 : vector<8x64xf32>
    %750 = arith.divf %748, %749 : vector<8x64xf32>
    %751 = vector.extract_strided_slice %750 {offsets = [0, 0], sizes = [8, 32], strides = [1, 1]} : vector<8x64xf32> to vector<8x32xf32>
    %752 = vector.extract_strided_slice %750 {offsets = [0, 32], sizes = [8, 32], strides = [1, 1]} : vector<8x64xf32> to vector<8x32xf32>
    %753 = vector.extract_strided_slice %741 {offsets = [0, 64], sizes = [8, 32], strides = [1, 1]} : vector<8x96xf32> to vector<8x32xf32>
    %754 = vector.extract_strided_slice %742 {offsets = [0, 64], sizes = [8, 32], strides = [1, 1]} : vector<8x96xf32> to vector<8x32xf32>
    %755 = arith.addf %754, %660 : vector<8x32xf32>
    %756 = arith.mulf %751, %755 : vector<8x32xf32>
    %757 = arith.addf %753, %756 : vector<8x32xf32>
    %758 = math.tanh %757 : vector<8x32xf32>
    %cst_137 = arith.constant 1.000000e+00 : f32
    %759 = vector.broadcast %cst_137 : f32 to vector<8x32xf32>
    %760 = arith.subf %759, %752 : vector<8x32xf32>
    %761 = arith.mulf %760, %758 : vector<8x32xf32>
    %762 = arith.mulf %752, %739 : vector<8x32xf32>
    %763 = arith.addf %761, %762 : vector<8x32xf32>
    %764 = vector.extract_strided_slice %665 {offsets = [4, 0, 0], sizes = [1, 8, 96], strides = [1, 1, 1]} : vector<8x8x96xf32> to vector<1x8x96xf32>
    %765 = vector.shape_cast %764 : vector<1x8x96xf32> to vector<8x96xf32>
    %cst_138 = arith.constant dense<0.000000e+00> : vector<8x96xf32>
    %766 = tpu.matmul %763, %656, %cst_138 {dimension_numbers = #tpu.dot_dimension_numbers<[1], [0], [0], [1], [0, 0, 1, 1], [], []>} : vector<8x32xf32>, vector<32x96xf32>, vector<8x96xf32> -> vector<8x96xf32>
    %767 = vector.extract_strided_slice %765 {offsets = [0, 0], sizes = [8, 64], strides = [1, 1]} : vector<8x96xf32> to vector<8x64xf32>
    %768 = vector.extract_strided_slice %766 {offsets = [0, 0], sizes = [8, 64], strides = [1, 1]} : vector<8x96xf32> to vector<8x64xf32>
    %769 = arith.addf %767, %768 : vector<8x64xf32>
    %770 = arith.negf %769 : vector<8x64xf32>
    %771 = math.exp %770 : vector<8x64xf32>
    %cst_139 = arith.constant 1.000000e+00 : f32
    %772 = vector.broadcast %cst_139 : f32 to vector<8x64xf32>
    %773 = arith.addf %772, %771 : vector<8x64xf32>
    %774 = arith.divf %772, %773 : vector<8x64xf32>
    %775 = vector.extract_strided_slice %774 {offsets = [0, 0], sizes = [8, 32], strides = [1, 1]} : vector<8x64xf32> to vector<8x32xf32>
    %776 = vector.extract_strided_slice %774 {offsets = [0, 32], sizes = [8, 32], strides = [1, 1]} : vector<8x64xf32> to vector<8x32xf32>
    %777 = vector.extract_strided_slice %765 {offsets = [0, 64], sizes = [8, 32], strides = [1, 1]} : vector<8x96xf32> to vector<8x32xf32>
    %778 = vector.extract_strided_slice %766 {offsets = [0, 64], sizes = [8, 32], strides = [1, 1]} : vector<8x96xf32> to vector<8x32xf32>
    %779 = arith.addf %778, %660 : vector<8x32xf32>
    %780 = arith.mulf %775, %779 : vector<8x32xf32>
    %781 = arith.addf %777, %780 : vector<8x32xf32>
    %782 = math.tanh %781 : vector<8x32xf32>
    %cst_140 = arith.constant 1.000000e+00 : f32
    %783 = vector.broadcast %cst_140 : f32 to vector<8x32xf32>
    %784 = arith.subf %783, %776 : vector<8x32xf32>
    %785 = arith.mulf %784, %782 : vector<8x32xf32>
    %786 = arith.mulf %776, %763 : vector<8x32xf32>
    %787 = arith.addf %785, %786 : vector<8x32xf32>
    %788 = vector.extract_strided_slice %665 {offsets = [5, 0, 0], sizes = [1, 8, 96], strides = [1, 1, 1]} : vector<8x8x96xf32> to vector<1x8x96xf32>
    %789 = vector.shape_cast %788 : vector<1x8x96xf32> to vector<8x96xf32>
    %cst_141 = arith.constant dense<0.000000e+00> : vector<8x96xf32>
    %790 = tpu.matmul %787, %656, %cst_141 {dimension_numbers = #tpu.dot_dimension_numbers<[1], [0], [0], [1], [0, 0, 1, 1], [], []>} : vector<8x32xf32>, vector<32x96xf32>, vector<8x96xf32> -> vector<8x96xf32>
    %791 = vector.extract_strided_slice %789 {offsets = [0, 0], sizes = [8, 64], strides = [1, 1]} : vector<8x96xf32> to vector<8x64xf32>
    %792 = vector.extract_strided_slice %790 {offsets = [0, 0], sizes = [8, 64], strides = [1, 1]} : vector<8x96xf32> to vector<8x64xf32>
    %793 = arith.addf %791, %792 : vector<8x64xf32>
    %794 = arith.negf %793 : vector<8x64xf32>
    %795 = math.exp %794 : vector<8x64xf32>
    %cst_142 = arith.constant 1.000000e+00 : f32
    %796 = vector.broadcast %cst_142 : f32 to vector<8x64xf32>
    %797 = arith.addf %796, %795 : vector<8x64xf32>
    %798 = arith.divf %796, %797 : vector<8x64xf32>
    %799 = vector.extract_strided_slice %798 {offsets = [0, 0], sizes = [8, 32], strides = [1, 1]} : vector<8x64xf32> to vector<8x32xf32>
    %800 = vector.extract_strided_slice %798 {offsets = [0, 32], sizes = [8, 32], strides = [1, 1]} : vector<8x64xf32> to vector<8x32xf32>
    %801 = vector.extract_strided_slice %789 {offsets = [0, 64], sizes = [8, 32], strides = [1, 1]} : vector<8x96xf32> to vector<8x32xf32>
    %802 = vector.extract_strided_slice %790 {offsets = [0, 64], sizes = [8, 32], strides = [1, 1]} : vector<8x96xf32> to vector<8x32xf32>
    %803 = arith.addf %802, %660 : vector<8x32xf32>
    %804 = arith.mulf %799, %803 : vector<8x32xf32>
    %805 = arith.addf %801, %804 : vector<8x32xf32>
    %806 = math.tanh %805 : vector<8x32xf32>
    %cst_143 = arith.constant 1.000000e+00 : f32
    %807 = vector.broadcast %cst_143 : f32 to vector<8x32xf32>
    %808 = arith.subf %807, %800 : vector<8x32xf32>
    %809 = arith.mulf %808, %806 : vector<8x32xf32>
    %810 = arith.mulf %800, %787 : vector<8x32xf32>
    %811 = arith.addf %809, %810 : vector<8x32xf32>
    %812 = vector.extract_strided_slice %665 {offsets = [6, 0, 0], sizes = [1, 8, 96], strides = [1, 1, 1]} : vector<8x8x96xf32> to vector<1x8x96xf32>
    %813 = vector.shape_cast %812 : vector<1x8x96xf32> to vector<8x96xf32>
    %cst_144 = arith.constant dense<0.000000e+00> : vector<8x96xf32>
    %814 = tpu.matmul %811, %656, %cst_144 {dimension_numbers = #tpu.dot_dimension_numbers<[1], [0], [0], [1], [0, 0, 1, 1], [], []>} : vector<8x32xf32>, vector<32x96xf32>, vector<8x96xf32> -> vector<8x96xf32>
    %815 = vector.extract_strided_slice %813 {offsets = [0, 0], sizes = [8, 64], strides = [1, 1]} : vector<8x96xf32> to vector<8x64xf32>
    %816 = vector.extract_strided_slice %814 {offsets = [0, 0], sizes = [8, 64], strides = [1, 1]} : vector<8x96xf32> to vector<8x64xf32>
    %817 = arith.addf %815, %816 : vector<8x64xf32>
    %818 = arith.negf %817 : vector<8x64xf32>
    %819 = math.exp %818 : vector<8x64xf32>
    %cst_145 = arith.constant 1.000000e+00 : f32
    %820 = vector.broadcast %cst_145 : f32 to vector<8x64xf32>
    %821 = arith.addf %820, %819 : vector<8x64xf32>
    %822 = arith.divf %820, %821 : vector<8x64xf32>
    %823 = vector.extract_strided_slice %822 {offsets = [0, 0], sizes = [8, 32], strides = [1, 1]} : vector<8x64xf32> to vector<8x32xf32>
    %824 = vector.extract_strided_slice %822 {offsets = [0, 32], sizes = [8, 32], strides = [1, 1]} : vector<8x64xf32> to vector<8x32xf32>
    %825 = vector.extract_strided_slice %813 {offsets = [0, 64], sizes = [8, 32], strides = [1, 1]} : vector<8x96xf32> to vector<8x32xf32>
    %826 = vector.extract_strided_slice %814 {offsets = [0, 64], sizes = [8, 32], strides = [1, 1]} : vector<8x96xf32> to vector<8x32xf32>
    %827 = arith.addf %826, %660 : vector<8x32xf32>
    %828 = arith.mulf %823, %827 : vector<8x32xf32>
    %829 = arith.addf %825, %828 : vector<8x32xf32>
    %830 = math.tanh %829 : vector<8x32xf32>
    %cst_146 = arith.constant 1.000000e+00 : f32
    %831 = vector.broadcast %cst_146 : f32 to vector<8x32xf32>
    %832 = arith.subf %831, %824 : vector<8x32xf32>
    %833 = arith.mulf %832, %830 : vector<8x32xf32>
    %834 = arith.mulf %824, %811 : vector<8x32xf32>
    %835 = arith.addf %833, %834 : vector<8x32xf32>
    %836 = vector.extract_strided_slice %665 {offsets = [7, 0, 0], sizes = [1, 8, 96], strides = [1, 1, 1]} : vector<8x8x96xf32> to vector<1x8x96xf32>
    %837 = vector.shape_cast %836 : vector<1x8x96xf32> to vector<8x96xf32>
    %cst_147 = arith.constant dense<0.000000e+00> : vector<8x96xf32>
    %838 = tpu.matmul %835, %656, %cst_147 {dimension_numbers = #tpu.dot_dimension_numbers<[1], [0], [0], [1], [0, 0, 1, 1], [], []>} : vector<8x32xf32>, vector<32x96xf32>, vector<8x96xf32> -> vector<8x96xf32>
    %839 = vector.extract_strided_slice %837 {offsets = [0, 0], sizes = [8, 64], strides = [1, 1]} : vector<8x96xf32> to vector<8x64xf32>
    %840 = vector.extract_strided_slice %838 {offsets = [0, 0], sizes = [8, 64], strides = [1, 1]} : vector<8x96xf32> to vector<8x64xf32>
    %841 = arith.addf %839, %840 : vector<8x64xf32>
    %842 = arith.negf %841 : vector<8x64xf32>
    %843 = math.exp %842 : vector<8x64xf32>
    %cst_148 = arith.constant 1.000000e+00 : f32
    %844 = vector.broadcast %cst_148 : f32 to vector<8x64xf32>
    %845 = arith.addf %844, %843 : vector<8x64xf32>
    %846 = arith.divf %844, %845 : vector<8x64xf32>
    %847 = vector.extract_strided_slice %846 {offsets = [0, 0], sizes = [8, 32], strides = [1, 1]} : vector<8x64xf32> to vector<8x32xf32>
    %848 = vector.extract_strided_slice %846 {offsets = [0, 32], sizes = [8, 32], strides = [1, 1]} : vector<8x64xf32> to vector<8x32xf32>
    %849 = vector.extract_strided_slice %837 {offsets = [0, 64], sizes = [8, 32], strides = [1, 1]} : vector<8x96xf32> to vector<8x32xf32>
    %850 = vector.extract_strided_slice %838 {offsets = [0, 64], sizes = [8, 32], strides = [1, 1]} : vector<8x96xf32> to vector<8x32xf32>
    %851 = arith.addf %850, %660 : vector<8x32xf32>
    %852 = arith.mulf %847, %851 : vector<8x32xf32>
    %853 = arith.addf %849, %852 : vector<8x32xf32>
    %854 = math.tanh %853 : vector<8x32xf32>
    %cst_149 = arith.constant 1.000000e+00 : f32
    %855 = vector.broadcast %cst_149 : f32 to vector<8x32xf32>
    %856 = arith.subf %855, %848 : vector<8x32xf32>
    %857 = arith.mulf %856, %854 : vector<8x32xf32>
    %858 = arith.mulf %848, %835 : vector<8x32xf32>
    %859 = arith.addf %857, %858 : vector<8x32xf32>
    %860 = arith.negf %859 : vector<8x32xf32>
    %861 = math.exp %860 : vector<8x32xf32>
    %cst_150 = arith.constant 1.000000e+00 : f32
    %862 = vector.broadcast %cst_150 : f32 to vector<8x32xf32>
    %863 = arith.addf %862, %861 : vector<8x32xf32>
    %864 = arith.divf %862, %863 : vector<8x32xf32>
    %c0_151 = arith.constant 0 : index
    %c0_152 = arith.constant 0 : index
    %865 = vector.load %arg21[%c0_151, %c0_152] : memref<32x128xf32, #tpu.memory_space<vmem>>, vector<32x128xf32>
    %cst_153 = arith.constant dense<0.000000e+00> : vector<8x128xf32>
    %866 = tpu.matmul %864, %865, %cst_153 {dimension_numbers = #tpu.dot_dimension_numbers<[1], [0], [0], [1], [0, 0, 1, 1], [], []>} : vector<8x32xf32>, vector<32x128xf32>, vector<8x128xf32> -> vector<8x128xf32>
    %c0_154 = arith.constant 0 : index
    %c0_155 = arith.constant 0 : index
    %867 = vector.load %arg22[%c0_154, %c0_155] : memref<1x128xf32, #tpu.memory_space<vmem>>, vector<1x128xf32>
    %868 = vector.broadcast %867 : vector<1x128xf32> to vector<8x128xf32>
    %869 = arith.addf %866, %868 : vector<8x128xf32>
    %c0_156 = arith.constant 0 : index
    %c0_157 = arith.constant 0 : index
    %870 = vector.load %arg23[%c0_156, %c0_157] : memref<8x128xf32, #tpu.memory_space<vmem>>, vector<8x128xf32>
    tpu.vector_store %arg23[%c0_156, %c0_157], %869 {strides = array<i32>} : memref<8x128xf32, #tpu.memory_space<vmem>>, vector<8x128xf32>,
    %c0_158 = arith.constant 0 : index
    %c0_159 = arith.constant 0 : index
    %c0_160 = arith.constant 0 : index
    %871 = vector.load %arg24[%c0_158, %c0_159, %c0_160] : memref<2x8x32xf32, #tpu.memory_space<vmem>>, vector<1x8x32xf32>
    %872 = vector.shape_cast %871 : vector<1x8x32xf32> to vector<8x32xf32>
    %873 = vector.shape_cast %645 : vector<8x32xf32> to vector<1x8x32xf32>
    tpu.vector_store %arg24[%c0_158, %c0_159, %c0_160], %873 {strides = array<i32>} : memref<2x8x32xf32, #tpu.memory_space<vmem>>, vector<1x8x32xf32>,
    %c1_161 = arith.constant 1 : index
    %c0_162 = arith.constant 0 : index
    %c0_163 = arith.constant 0 : index
    %874 = vector.load %arg24[%c1_161, %c0_162, %c0_163] : memref<2x8x32xf32, #tpu.memory_space<vmem>>, vector<1x8x32xf32>
    %875 = vector.shape_cast %874 : vector<1x8x32xf32> to vector<8x32xf32>
    %876 = vector.shape_cast %859 : vector<8x32xf32> to vector<1x8x32xf32>
    tpu.vector_store %arg24[%c1_161, %c0_162, %c0_163], %876 {strides = array<i32>} : memref<2x8x32xf32, #tpu.memory_space<vmem>>, vector<1x8x32xf32>,
    return
  }
}

</mosaic_0001>

<bundles_post_ra>
// kernel: time_encoder_forward.1
= control target key start
LH: loop header
LB: loop body
LE: loop exit
PB: predicated region body
PF: predicated region fallthrough
CT: control target
= control target key end

     0   :  { %s4307_s0 = inlined_call_operand.vmem [shape: f32[8,8,32], index: 0, kind: input, shape index: {}]   ;;  %s4308_s1 = inlined_call_operand.vmem [shape: f32[2,8,32], index: 1, kind: input, shape index: {}]   ;;  %s4309_s2 = inlined_call_operand.vmem [shape: f32[2,8,32], index: 2, kind: input, shape index: {}]   ;;  %s4310_s3 = inlined_call_operand.vmem [shape: f32[32,96], index: 3, kind: input, shape index: {}]   ;;  %s4311_s4 = inlined_call_operand.vmem [shape: f32[32,96], index: 4, kind: input, shape index: {}]   ;;  %s4312_s5 = inlined_call_operand.vmem [shape: f32[1,96], index: 5, kind: input, shape index: {}]   ;;  %s4313_s6 = inlined_call_operand.vmem [shape: f32[1,32], index: 6, kind: input, shape index: {}]   ;;  %s4314_s7 = inlined_call_operand.vmem [shape: f32[32,96], index: 7, kind: input, shape index: {}]   ;;  %s4315_s8 = inlined_call_operand.vmem [shape: f32[32,96], index: 8, kind: input, shape index: {}]   ;;  %s4316_s9 = inlined_call_operand.vmem [shape: f32[1,96], index: 9, kind: input, shape index: {}]   ;;  %s4317_s10 = inlined_call_operand.vmem [shape: f32[1,32], index: 10, kind: input, shape index: {}]   ;;  %s4318_s11 = inlined_call_operand.hbm [shape: f32[32,96], index: 11, kind: input, shape index: {}]   ;;  %s4319_s12 = inlined_call_operand.hbm [shape: f32[32,96], index: 12, kind: input, shape index: {}]   ;;  %s4320_s13 = inlined_call_operand.vmem [shape: f32[1,96], index: 13, kind: input, shape index: {}]   ;;  %s4321_s14 = inlined_call_operand.vmem [shape: f32[1,32], index: 14, kind: input, shape index: {}]   ;;  %s4322_s15 = inlined_call_operand.hbm [shape: f32[32,96], index: 15, kind: input, shape index: {}]   ;;  %s4323_s16 = inlined_call_operand.hbm [shape: f32[32,96], index: 16, kind: input, shape index: {}]   ;;  %s4324_s17 = inlined_call_operand.vmem [shape: f32[1,96], index: 17, kind: input, shape index: {}]   ;;  %s4325_s18 = inlined_call_operand.vmem [shape: f32[1,32], index: 18, kind: input, shape index: {}]   ;;  %s4326_s19 = inlined_call_operand.hbm [shape: f32[32,32], index: 19, kind: input, shape index: {}]   ;;  %s4327_s20 = inlined_call_operand.vmem [shape: f32[1,32], index: 20, kind: input, shape index: {}]   ;;  %s4328_s21 = inlined_call_operand.hbm [shape: f32[32,128], index: 21, kind: input, shape index: {}]   ;;  %s4329_s22 = inlined_call_operand.vmem [shape: f32[1,128], index: 22, kind: input, shape index: {}]   ;;  %s4330_s23 = inlined_call_operand.vmem [shape: f32[8,128], index: 23, kind: output, shape index: {0}]   ;;  %s4331_s24 = inlined_call_operand.vmem [shape: f32[2,8,32], index: 24, kind: output, shape index: {1}]  }
   0x1   :  { %4340 = sst [smem:[#allocation16_spill]] %s4307_s0 }
   0x2   :  { %4341 = sst [smem:[#allocation17_spill]] %s4308_s1 }
   0x3   :  { %4342 = sst [smem:[#allocation18_spill]] %s4309_s2 }
   0x4   :  { %4343 = sst [smem:[#allocation19_spill]] %s4310_s3 }
   0x5   :  { %4344 = sst [smem:[#allocation20_spill]] %s4311_s4 }
   0x6   :  { %4345 = sst [smem:[#allocation21_spill]] %s4312_s5 }
   0x7   :  { %4346 = sst [smem:[#allocation22_spill]] %s4313_s6 }
   0x8   :  { %4347 = sst [smem:[#allocation23_spill]] %s4314_s7 }
   0x9   :  { %4348 = sst [smem:[#allocation24_spill]] %s4315_s8 }
   0xa   :  { %30 = vsyncpa [#allocation3], 0 }
   0xb   :  { %31 = vsyncpa [#allocation5], 0 }
   0xc   :  { %32 = vsyncpa [#allocation8], 0 }
   0xd   :  { %33 = vsyncpa [#allocation11], 0  ;;  %s73_s27 = sshll.u32 %s4319_s12, 4  ;;  %s3403_s28 = smov [#allocation4]   ;;  %s74_s27 = int_to_ptr.hbm [resolvable:$true] %s73_s27 }
   0xe   :  { %s75_s6 = sshll.u32 %s3403_s28, 4  ;;  %s103_s0 = sshll.u32 %s4323_s16, 4  ;;  %s76_s6 = int_to_ptr.vmem [resolvable:$true] %s75_s6  ;;  %s104_s0 = int_to_ptr.hbm [resolvable:$true] %s103_s0 }
   0xf   :  { %s3404_s7 = smov 128   ;;  %s3405_s30 = smov 8  }
  0x10   :  { %81 = dma.hbm_to_vmem [thread:$0]  %s74_s27, 512, %s76_s6, [#allocation5], %s3404_s7, %s3404_s7, %s3405_s30  }
  0x11   :  { %s3406_s3 = smov [#allocation7]   ;;  %s60_s12 = sshll.u32 %s4318_s11, 4  ;;  %s61_s12 = int_to_ptr.hbm [resolvable:$true] %s60_s12 }
  0x12   :  { %s105_s25 = sshll.u32 %s3406_s3, 4  ;;  %s90_s5 = sshll.u32 %s4322_s15, 4  ;;  %s106_s25 = int_to_ptr.vmem [resolvable:$true] %s105_s25  ;;  %s91_s5 = int_to_ptr.hbm [resolvable:$true] %s90_s5 }
  0x13   :  { %111 = dma.hbm_to_vmem [thread:$0]  %s104_s0, 512, %s106_s25, [#allocation8], %s3404_s7, %s3404_s7, %s3405_s30  }
  0x14   :  { %s3407_s26 = smov [#allocation2]   ;;  %s3408_s27 = smov [#allocation6]  }
  0x15   :  { %s62_s28 = sshll.u32 %s3407_s26, 4  ;;  %s92_s11 = sshll.u32 %s3408_s27, 4  ;;  %s63_s28 = int_to_ptr.vmem [resolvable:$true] %s62_s28  ;;  %s93_s11 = int_to_ptr.vmem [resolvable:$true] %s92_s11 }
  0x16   :  { %68 = dma.hbm_to_vmem [thread:$0]  %s61_s12, 512, %s63_s28, [#allocation3], %s3404_s7, %s3404_s7, %s3405_s30  }
  0x17   :  { %s120_s29 = sshll.u32 %s4326_s19, 4  ;;  %s135_s3 = sshll.u32 %s4328_s21, 4  ;;  %s121_s29 = int_to_ptr.hbm [resolvable:$true] %s120_s29  ;;  %s136_s3 = int_to_ptr.hbm [resolvable:$true] %s135_s3 }
  0x18   :  { %98 = dma.hbm_to_vmem [thread:$0]  %s91_s5, 512, %s93_s11, [#allocation5], %s3404_s7, %s3404_s7, %s3405_s30  }
  0x19   :  { %s3409_s25 = smov [#allocation9]   ;;  %s3410_s4 = smov [#allocation10]  }
  0x1a   :  { %s122_s8 = sshll.u32 %s3409_s25, 4  ;;  %s137_s19 = sshll.u32 %s3410_s4, 4  ;;  %s123_s8 = int_to_ptr.vmem [resolvable:$true] %s122_s8  ;;  %s138_s19 = int_to_ptr.vmem [resolvable:$true] %s137_s19 }
  0x1b   :  { %128 = dma.hbm_to_vmem [thread:$0]  %s121_s29, 512, %s123_s8, [#allocation8], %s3404_s7, %s3404_s7, %s3405_s30  }
  0x1c   :  { %143 = dma.hbm_to_vmem [thread:$0]  %s136_s3, 512, %s138_s19, [#allocation11], %s3404_s7, %s3404_s7, %s3405_s30  }
  0x1d   :  { %3395 = dma.done.wait [#allocation3], 512  }
  0x1e   :  { %3396 = vsyncadd [#allocation3], 4294966784 }
  0x1f   :  { %3397 = dma.done.wait [#allocation5], 1024  }
  0x20   :  { %3398 = vsyncadd [#allocation5], 4294966272 }
  0x21   :  { %3399 = dma.done.wait [#allocation8], 1024  }
  0x22   :  { %3400 = vsyncadd [#allocation8], 4294966272 }
  0x23   :  { %3401 = dma.done.wait [#allocation11], 512  }
  0x24   :  { %3402 = vsyncadd [#allocation11], 4294966784  ;;  %s4349_s16 = sld [smem:[#allocation19_spill]]  ;;  %vm193_vm0 = vcmask 261120   ;;  %s3412_s27 = smov 64  }
  0x25   :  { %s4350_s26 = sld [smem:[#allocation20_spill]]  ;;  %s3413_s6 = smov 96  }
  0x26   :  { %s4351_s19 = sld [smem:[#allocation16_spill]] }
  0x27   :  { %s4352_s1 = sld [smem:[#allocation17_spill]] }
  0x28   :  { %s4353_s28 = sld [smem:[#allocation22_spill]] }
  0x29   :  { %s4354_s11 = sld [smem:[#allocation21_spill]] }
  0x2a   :  { %v181_v0 = vld [vmem:[%s4349_s16 + $0x18] sm:$0xff]  ;;  %v180_v2 = vld [vmem:[%s4349_s16 + $0x10] sm:$0xff]  ;;  %v179_v4 = vld [vmem:[%s4349_s16 + $0x8] sm:$0xff]  ;;  %s4355_s30 = sld [smem:[#allocation23_spill]] }
  0x2b   :  { %v3581_v1 = vld [vmem:[%s4350_s26 + $0x18] sm:$0xff]  ;;  %230 = vmatpush.msra.mxu0 %v181_v0  ;;  %v3590_v3 = vld [vmem:[%s4350_s26 + $0x10] sm:$0xff]  ;;  %v3598_v5 = vld [vmem:[%s4350_s26 + $0x8] sm:$0xff]  ;;  %2994 = vmatpush.msra.mxu2 %v181_v0  ;;  %s4356_s12 = sld [smem:[#allocation24_spill]] }
  0x2c   :  { %275 = vmatpush.msra.mxu1 %v3581_v1  ;;  %v178_v6 = vld [vmem:[%s4349_s16] sm:$0xff]  ;;  %411 = vmatpush.msra.mxu3 %v3581_v1  ;;  %v176_v36 = vld [vmem:[%s4351_s19 + $0x30] sm:$0xff]  ;;  %v177_v37 = vld [vmem:[%s4351_s19 + $0x38] sm:$0xff] }
  0x2d   :  { %v3606_v7 = vld [vmem:[%s4350_s26] sm:$0xff]  ;;  %231 = vmatpush.msra.mxu0 %v180_v2  ;;  %s3411_s26 = smov 32   ;;  %2995 = vmatpush.msra.mxu2 %v180_v2  ;;  %v171_v44 = vld [vmem:[%s4351_s19 + $0x8] sm:$0xff] }
  0x2e   :  { %276 = vmatpush.msra.mxu1 %v3590_v3  ;;  %v170_v8 = vld [vmem:[%s4351_s19] sm:$0xff]  ;;  %412 = vmatpush.msra.mxu3 %v3590_v3 }
  0x2f   :  { %v259_v9 = vld [vmem:[%s4352_s1] sm:$0xff]  ;;  %232 = vmatpush.msra.mxu0 %v179_v4  ;;  %2996 = vmatpush.msra.mxu2 %v179_v4 }
  0x30   :  { %v3009_v10 = vld [vmem:[%s4353_s28] ss:$0 sm:$0xff]  ;;  %324 = vrot.lane.b32.xlu2 %v259_v9, %s3411_s26  ;;  %277 = vmatpush.msra.mxu1 %v3598_v5 }
  0x31   :  { %303 = vrot.lane.b32.xlu0 %v3009_v10, %s3412_s27  ;;  %233 = vmatpush.msra.mxu0 %v178_v6  ;;  %v3651_v14 = vld [vmem:[%s4354_s11] ss:$0 sm:$0xff] }
  0x32   :  { %278 = vmatpush.msra.mxu1 %v3606_v7  ;;  %2877 = vmatmul.msk.f32.vlgmr.msra.gmra.mxu0 %vm193_vm0, %v170_v8 }
  0x33   :  { %2885 = vmatmul.msk.f32.vlgmr.msra.gmra.mxu1 %vm193_vm0, %v259_v9  ;;  %2997 = vmatpush.msra.mxu2 %v178_v6 }
  0x34   :  { %476 = vmatpush.msrb.mxu1 %v3581_v1  ;;  %413 = vmatpush.msra.mxu3 %v3598_v5 }
  0x35   :  { %346 = vmatpush.msrb.mxu2 %v3581_v1 }
  0x36   :  { %477 = vmatpush.msrb.mxu1 %v3590_v3  ;;  %414 = vmatpush.msra.mxu3 %v3606_v7 }
  0x37   :  { %347 = vmatpush.msrb.mxu2 %v3590_v3 }
  0x38   :  { %478 = vmatpush.msrb.mxu1 %v3598_v5  ;;  %606 = vmatpush.msrb.mxu3 %v3581_v1 }
  0x39   :  { %348 = vmatpush.msrb.mxu2 %v3598_v5 }
  0x3a   :  { %479 = vmatpush.msrb.mxu1 %v3606_v7  ;;  %607 = vmatpush.msrb.mxu3 %v3590_v3 }
  0x3b   :  { %349 = vmatpush.msrb.mxu2 %v3606_v7  ;;  %2878 = vmatmul.msk.f32.gmra.mxu0 %vm193_vm0, %v171_v44 }
  0x3c   :  { %671 = vmatpush.msra.mxu1 %v3581_v1  ;;  %608 = vmatpush.msrb.mxu3 %v3598_v5 }
  0x3d   :  { %2883 = vmatmul.msk.f32.vlgmr.msra.gmra.mxu2 %vm193_vm0, %v176_v36 }
  0x3e   :  { %672 = vmatpush.msra.mxu1 %v3590_v3  ;;  %609 = vmatpush.msrb.mxu3 %v3606_v7 }
  0x3f   :  { %541 = vmatpush.msra.mxu2 %v3581_v1 }
  0x40   :  { %673 = vmatpush.msra.mxu1 %v3598_v5 }
  0x41   :  { %542 = vmatpush.msra.mxu2 %v3590_v3 }
  0x42   :  { %674 = vmatpush.msra.mxu1 %v3606_v7 }
  0x43   :  { %543 = vmatpush.msra.mxu2 %v3598_v5 }
  0x45   :  { %544 = vmatpush.msra.mxu2 %v3606_v7 }
  0x46   :  { %2884 = vmatmul.msk.f32.gmra.mxu2 %vm193_vm0, %v177_v37 }
  0x8a   :  { %v325_v38 = vpop.permute.xlu2 %324 }
  0xa3   :  { %v3644_v11 = vpop.permute.xlu0 %303 }
  0xaf   :  { %v235_v15 = vpop.f32.mrf.mxu0 }
  0xb0   :  { %v280_v12 = vpop.f32.mrf.mxu1  ;;  %v236_v16 = vadd.f32 %v3651_v14, %v235_v15 }
  0xb1   :  { %v306_v13 = vadd.f32 %v3644_v11, %v280_v12 }
  0xb2   :  { %v283_v17 = vadd.f32 %v280_v12, %v236_v16 }
  0xb3   :  { %308 = vrot.lane.b32.xlu0 %v306_v13, %s3412_s27  ;;  %v172_v13 = vld [vmem:[%s4351_s19 + $0x10] sm:$0xff] }
  0xb4   :  { %v2886_v18 = vmul.f32 -1.442695, %v283_v17  ;;  %2879 = vmatmul.msk.f32.gmra.mxu0 %vm193_vm0, %v172_v13 }
  0xb6   :  { %3019 = vpow2.f32 %v2886_v18 }
  0xb8   :  { %v238_v50 = vpop.f32.mrf.mxu0 }
  0xb9   :  { %v239_v51 = vadd.f32 %v3651_v14, %v238_v50 }
  0xbc   :  { %v3020_v19 = vpop.eup %3019 }
  0xbd   :  { %v287_v20 = vadd.f32 1.0, %v3020_v19 }
  0xbf   :  { %3021 = vrcp.f32 %v287_v20  ;;  %v299_v26 = vand.u32 2147483648, %v287_v20  ;;  %vm293_vm2 = vweird.f32 %v287_v20  ;;  %v297_v27 = vand.u32 2147483647, %v287_v20 }
  0xc0   :  { %v3681_v46 = vpop.f32.mrf.mxu2 }
  0xc1   :  { %v300_v29 = vor.u32 1.1754944e-38, %v299_v26  ;;  %vm298_vm4 = vcmp.eq.f32.partialorder %v297_v27, 8.507059e+37 }
  0xc5   :  { %v3022_v21 = vpop.eup %3021 }
  0xc6   :  { %v289_v22 = vmul.f32 %v3022_v21, %v287_v20  ;;  %vm294_vm1 = vweird.f32 %v3022_v21 }
  0xc7   :  { %vm295_vm3 = vmor %vm293_vm2, %vm294_vm1 }
  0xc8   :  { %v290_v23 = vsub.f32 1.0, %v289_v22 }
  0xc9   :  { %v3683_v47 = vpop.f32.mrf.mxu2 }
  0xca   :  { %v291_v24 = vmul.f32 %v3022_v21, %v290_v23 }
  0xcc   :  { %v292_v25 = vadd.f32 %v3022_v21, %v291_v24 }
  0xce   :  { %v296_v28 = vsel %vm295_vm3, %v3022_v21, %v292_v25 }
  0xcf   :  { %v301_v30 = vsel %vm298_vm4, %v300_v29, %v296_v28 }
  0xd0   :  { %v318_v39 = vsub.f32 1.0, %v301_v30  ;;  %v327_v41 = vmul.f32 %v325_v38, %v301_v30 }
 0x125   :  { %v309_v31 = vpop.permute.xlu0 %308 }
 0x126   :  { %v311_v32 = vmul.f32 %v309_v31, %v301_v30 }
 0x128   :  { %313 = vrot.lane.b32.xlu1 %v311_v32, %s3412_s27 }
 0x131   :  { %v241_v18 = vpop.f32.mrf.mxu0 }
 0x132   :  { %v242_v19 = vadd.f32 %v3651_v14, %v241_v18 }
 0x19a   :  { %v314_v33 = vpop.permute.xlu1 %313 }
 0x19b   :  { %v316_v34 = vadd.f32 %v314_v33, %v236_v16 }
 0x19d   :  { %3023 = vtanh.f32 %v316_v34 }
 0x1a3   :  { %v3024_v35 = vpop.eup %3023 }
 0x1a4   :  { %320 = vrot.lane.b32.xlu1 %v3024_v35, %s3413_s6 }
 0x216   :  { %v321_v40 = vpop.permute.xlu1 %320 }
 0x217   :  { %v323_v42 = vmul.f32 %v321_v40, %v318_v39  ;;  %v173_v39 = vld [vmem:[%s4351_s19 + $0x18] sm:$0xff] }
 0x218   :  { %2880 = vmatmul.msk.f32.gmra.mxu0 %vm193_vm0, %v173_v39 }
 0x219   :  { %v328_v43 = vadd.f32 %v327_v41, %v323_v42 }
 0x21b   :  { %330 = vrot.lane.b32.xlu2 %v328_v43, %s3413_s6 }
 0x275   :  { %v3673_v45 = vpop.permute.xlu2 %330 }
 0x276   :  { %2887 = vmatmul.msk.f32.vlgmr.msrb.gmra.mxu2 %vm193_vm0, %v3673_v45 }
 0x277   :  { %736 = vmatpush.msrb.mxu2 %v3581_v1 }
 0x279   :  { %737 = vmatpush.msrb.mxu2 %v3590_v3 }
 0x27b   :  { %738 = vmatpush.msrb.mxu2 %v3598_v5 }
 0x27d   :  { %739 = vmatpush.msrb.mxu2 %v3606_v7 }
 0x2f9   :  { %v351_v48 = vpop.f32.mrf.mxu2 }
 0x2fa   :  { %v374_v49 = vadd.f32 %v351_v48, %v3644_v11  ;;  %v354_v52 = vadd.f32 %v351_v48, %v239_v51 }
 0x2fc   :  { %376 = vrot.lane.b32.xlu0 %v374_v49, %s3412_s27  ;;  %v2888_v53 = vmul.f32 -1.442695, %v354_v52 }
 0x2fe   :  { %3025 = vpow2.f32 %v2888_v53 }
 0x304   :  { %v3026_v54 = vpop.eup %3025 }
 0x305   :  { %v358_v55 = vadd.f32 1.0, %v3026_v54 }
 0x307   :  { %3027 = vrcp.f32 %v358_v55  ;;  %v370_v61 = vand.u32 2147483648, %v358_v55  ;;  %vm364_vm6 = vweird.f32 %v358_v55  ;;  %v368_v62 = vand.u32 2147483647, %v358_v55 }
 0x309   :  { %v371_v0 = vor.u32 1.1754944e-38, %v370_v61  ;;  %vm369_vm8 = vcmp.eq.f32.partialorder %v368_v62, 8.507059e+37 }
 0x30d   :  { %v3028_v56 = vpop.eup %3027 }
 0x30e   :  { %v360_v57 = vmul.f32 %v3028_v56, %v358_v55  ;;  %vm365_vm5 = vweird.f32 %v3028_v56 }
 0x30f   :  { %vm366_vm7 = vmor %vm364_vm6, %vm365_vm5 }
 0x310   :  { %v361_v58 = vsub.f32 1.0, %v360_v57 }
 0x312   :  { %v362_v59 = vmul.f32 %v3028_v56, %v361_v58 }
 0x314   :  { %v363_v60 = vadd.f32 %v3028_v56, %v362_v59 }
 0x316   :  { %v367_v63 = vsel %vm366_vm7, %v3028_v56, %v363_v60 }
 0x317   :  { %v372_v2 = vsel %vm369_vm8, %v371_v0, %v367_v63 }
 0x318   :  { %v386_v7 = vsub.f32 1.0, %v372_v2  ;;  %v392_v9 = vmul.f32 %v372_v2, %v328_v43 }
 0x36e   :  { %v377_v1 = vpop.permute.xlu0 %376 }
 0x36f   :  { %v379_v3 = vmul.f32 %v377_v1, %v372_v2 }
 0x371   :  { %381 = vrot.lane.b32.xlu1 %v379_v3, %s3412_s27 }
 0x3e3   :  { %v382_v4 = vpop.permute.xlu1 %381 }
 0x3e4   :  { %v384_v5 = vadd.f32 %v382_v4, %v239_v51  ;;  %v244_v51 = vpop.f32.mrf.mxu0 }
 0x3e5   :  { %v245_v52 = vadd.f32 %v3651_v14, %v244_v51  ;;  %v786_v51 = vld [vmem:[%s4355_s30 + $0x10] sm:$0xff] }
 0x3e6   :  { %3029 = vtanh.f32 %v384_v5 }
 0x3ec   :  { %v3030_v6 = vpop.eup %3029 }
 0x3ed   :  { %388 = vrot.lane.b32.xlu2 %v3030_v6, %s3413_s6 }
 0x447   :  { %v389_v8 = vpop.permute.xlu2 %388 }
 0x448   :  { %v391_v10 = vmul.f32 %v389_v8, %v386_v7 }
 0x44a   :  { %v393_v12 = vadd.f32 %v392_v9, %v391_v10 }
 0x44c   :  { %395 = vrot.lane.b32.xlu0 %v393_v12, %s3413_s6 }
 0x4be   :  { %v3695_v15 = vpop.permute.xlu0 %395 }
 0x4bf   :  { %2889 = vmatmul.msk.f32.vlgmr.msra.gmra.mxu3 %vm193_vm0, %v3695_v15 }
 0x542   :  { %v416_v16 = vpop.f32.mrf.mxu3 }
 0x543   :  { %v439_v17 = vadd.f32 %v416_v16, %v3644_v11  ;;  %v419_v20 = vadd.f32 %v416_v16, %v242_v19  ;;  %v174_v16 = vld [vmem:[%s4351_s19 + $0x20] sm:$0xff] }
 0x544   :  { %2881 = vmatmul.msk.f32.gmra.mxu0 %vm193_vm0, %v174_v16 }
 0x545   :  { %441 = vrot.lane.b32.xlu1 %v439_v17, %s3412_s27  ;;  %v2890_v21 = vmul.f32 -1.442695, %v419_v20 }
 0x547   :  { %3031 = vpow2.f32 %v2890_v21 }
 0x54d   :  { %v3032_v22 = vpop.eup %3031 }
 0x54e   :  { %v423_v23 = vadd.f32 1.0, %v3032_v22 }
 0x550   :  { %3033 = vrcp.f32 %v423_v23  ;;  %v435_v29 = vand.u32 2147483648, %v423_v23  ;;  %vm429_vm10 = vweird.f32 %v423_v23  ;;  %v433_v30 = vand.u32 2147483647, %v423_v23 }
 0x552   :  { %v436_v32 = vor.u32 1.1754944e-38, %v435_v29  ;;  %vm434_vm12 = vcmp.eq.f32.partialorder %v433_v30, 8.507059e+37 }
 0x556   :  { %v3034_v24 = vpop.eup %3033 }
 0x557   :  { %v425_v25 = vmul.f32 %v3034_v24, %v423_v23  ;;  %vm430_vm9 = vweird.f32 %v3034_v24 }
 0x558   :  { %vm431_vm11 = vmor %vm429_vm10, %vm430_vm9 }
 0x559   :  { %v426_v26 = vsub.f32 1.0, %v425_v25 }
 0x55b   :  { %v427_v27 = vmul.f32 %v3034_v24, %v426_v26 }
 0x55d   :  { %v428_v28 = vadd.f32 %v3034_v24, %v427_v27 }
 0x55f   :  { %v432_v31 = vsel %vm431_vm11, %v3034_v24, %v428_v28 }
 0x560   :  { %v437_v34 = vsel %vm434_vm12, %v436_v32, %v432_v31 }
 0x561   :  { %v451_v40 = vsub.f32 1.0, %v437_v34  ;;  %v457_v42 = vmul.f32 %v437_v34, %v393_v12 }
 0x5b7   :  { %v442_v33 = vpop.permute.xlu1 %441 }
 0x5b8   :  { %v444_v35 = vmul.f32 %v442_v33, %v437_v34 }
 0x5ba   :  { %446 = vrot.lane.b32.xlu2 %v444_v35, %s3412_s27 }
 0x5c1   :  { %v247_v20 = vpop.f32.mrf.mxu0 }
 0x5c2   :  { %v248_v21 = vadd.f32 %v3651_v14, %v247_v20  ;;  %v3767_v20 = vld [vmem:[%s4356_s12 + $0x18] sm:$0xff] }
 0x614   :  { %v447_v36 = vpop.permute.xlu2 %446 }
 0x615   :  { %v449_v37 = vadd.f32 %v447_v36, %v242_v19 }
 0x617   :  { %3035 = vtanh.f32 %v449_v37 }
 0x61d   :  { %v3036_v38 = vpop.eup %3035 }
 0x61e   :  { %453 = vrot.lane.b32.xlu0 %v3036_v38, %s3413_s6 }
 0x690   :  { %v454_v41 = vpop.permute.xlu0 %453 }
 0x691   :  { %v456_v43 = vmul.f32 %v454_v41, %v451_v40 }
 0x693   :  { %v458_v44 = vadd.f32 %v457_v42, %v456_v43 }
 0x695   :  { %460 = vrot.lane.b32.xlu1 %v458_v44, %s3413_s6 }
 0x707   :  { %v3709_v48 = vpop.permute.xlu1 %460 }
 0x708   :  { %2891 = vmatmul.msk.f32.vlgmr.msrb.gmra.mxu1 %vm193_vm0, %v3709_v48 }
 0x709   :  { %862 = vmatpush.msrb.mxu1 %v3767_v20 }
 0x785   :  { %v481_v49 = vpop.f32.mrf.mxu1 }
 0x786   :  { %v504_v50 = vadd.f32 %v481_v49, %v3644_v11  ;;  %v484_v53 = vadd.f32 %v481_v49, %v245_v52 }
 0x788   :  { %506 = vrot.lane.b32.xlu2 %v504_v50, %s3412_s27  ;;  %v2892_v54 = vmul.f32 -1.442695, %v484_v53  ;;  %v787_v50 = vld [vmem:[%s4355_s30 + $0x18] sm:$0xff]  ;;  %v785_v53 = vld [vmem:[%s4355_s30 + $0x8] sm:$0xff] }
 0x789   :  { %816 = vmatpush.msra.mxu3 %v787_v50 }
 0x78a   :  { %3037 = vpow2.f32 %v2892_v54  ;;  %v784_v54 = vld [vmem:[%s4355_s30] sm:$0xff] }
 0x78b   :  { %817 = vmatpush.msra.mxu3 %v786_v51 }
 0x78d   :  { %818 = vmatpush.msra.mxu3 %v785_v53 }
 0x78f   :  { %819 = vmatpush.msra.mxu3 %v784_v54 }
 0x790   :  { %v3038_v55 = vpop.eup %3037 }
 0x791   :  { %v488_v56 = vadd.f32 1.0, %v3038_v55 }
 0x793   :  { %3039 = vrcp.f32 %v488_v56  ;;  %v500_v62 = vand.u32 2147483648, %v488_v56  ;;  %vm494_vm14 = vweird.f32 %v488_v56  ;;  %v498_v63 = vand.u32 2147483647, %v488_v56 }
 0x795   :  { %v501_v1 = vor.u32 1.1754944e-38, %v500_v62  ;;  %vm499_vm1 = vcmp.eq.f32.partialorder %v498_v63, 8.507059e+37 }
 0x799   :  { %v3040_v57 = vpop.eup %3039 }
 0x79a   :  { %v490_v58 = vmul.f32 %v3040_v57, %v488_v56  ;;  %vm495_vm13 = vweird.f32 %v3040_v57 }
 0x79b   :  { %vm496_vm15 = vmor %vm494_vm14, %vm495_vm13 }
 0x79c   :  { %v491_v59 = vsub.f32 1.0, %v490_v58 }
 0x79e   :  { %v492_v60 = vmul.f32 %v3040_v57, %v491_v59 }
 0x7a0   :  { %v493_v61 = vadd.f32 %v3040_v57, %v492_v60 }
 0x7a2   :  { %v497_v0 = vsel %vm496_vm15, %v3040_v57, %v493_v61 }
 0x7a3   :  { %v502_v3 = vsel %vm499_vm1, %v501_v1, %v497_v0 }
 0x7a4   :  { %v516_v8 = vsub.f32 1.0, %v502_v3  ;;  %v522_v10 = vmul.f32 %v502_v3, %v458_v44 }
 0x7e2   :  { %v507_v2 = vpop.permute.xlu2 %506 }
 0x7e3   :  { %v509_v4 = vmul.f32 %v507_v2, %v502_v3 }
 0x7e5   :  { %511 = vrot.lane.b32.xlu0 %v509_v4, %s3412_s27 }
 0x857   :  { %v512_v5 = vpop.permute.xlu0 %511 }
 0x858   :  { %v514_v6 = vadd.f32 %v512_v5, %v245_v52  ;;  %v175_v52 = vld [vmem:[%s4351_s19 + $0x28] sm:$0xff]  ;;  %s4357_s19 = sld [smem:[#allocation18_spill]] }
 0x859   :  { %2882 = vmatmul.msk.f32.gmra.mxu0 %vm193_vm0, %v175_v52 }
 0x85a   :  { %3041 = vtanh.f32 %v514_v6 }
 0x860   :  { %v3042_v7 = vpop.eup %3041 }
 0x861   :  { %518 = vrot.lane.b32.xlu1 %v3042_v7, %s3413_s6 }
 0x8d3   :  { %v519_v9 = vpop.permute.xlu1 %518 }
 0x8d4   :  { %v521_v12 = vmul.f32 %v519_v9, %v516_v8 }
 0x8d6   :  { %v523_v13 = vadd.f32 %v522_v10, %v521_v12  ;;  %v250_v58 = vpop.f32.mrf.mxu0 }
 0x8d7   :  { %v251_v59 = vadd.f32 %v3651_v14, %v250_v58 }
 0x8d8   :  { %525 = vrot.lane.b32.xlu2 %v523_v13, %s3413_s6 }
 0x932   :  { %v526_v17 = vpop.permute.xlu2 %525 }
 0x933   :  { %2893 = vmatmul.msk.f32.vlgmr.msra.gmra.mxu2 %vm193_vm0, %v526_v17 }
 0x934   :  { %933 = vmatpush.msra.mxu2 %v3767_v20 }
 0x9b6   :  { %v546_v18 = vpop.f32.mrf.mxu2 }
 0x9b7   :  { %v569_v19 = vadd.f32 %v546_v18, %v3644_v11  ;;  %v549_v22 = vadd.f32 %v546_v18, %v248_v21 }
 0x9b9   :  { %571 = vrot.lane.b32.xlu0 %v569_v19, %s3412_s27  ;;  %v2894_v23 = vmul.f32 -1.442695, %v549_v22  ;;  %v3779_v22 = vld [vmem:[%s4356_s12 + $0x8] sm:$0xff] }
 0x9bb   :  { %3043 = vpow2.f32 %v2894_v23  ;;  %v3786_v23 = vld [vmem:[%s4356_s12] sm:$0xff] }
 0x9c1   :  { %v3044_v24 = vpop.eup %3043 }
 0x9c2   :  { %v553_v25 = vadd.f32 1.0, %v3044_v24  ;;  %v3012_v24 = vld [vmem:[%s4317_s10] ss:$0 sm:$0xff] }
 0x9c4   :  { %3045 = vrcp.f32 %v553_v25  ;;  %v565_v31 = vand.u32 2147483648, %v553_v25  ;;  %vm559_vm3 = vweird.f32 %v553_v25  ;;  %v563_v32 = vand.u32 2147483647, %v553_v25 }
 0x9c6   :  { %v566_v34 = vor.u32 1.1754944e-38, %v565_v31  ;;  %vm564_vm5 = vcmp.eq.f32.partialorder %v563_v32, 8.507059e+37  ;;  %v254_v32 = vadd.f32 %v3651_v14, %v3681_v46 }
 0x9ca   :  { %v3046_v26 = vpop.eup %3045 }
 0x9cb   :  { %v555_v27 = vmul.f32 %v3046_v26, %v553_v25  ;;  %vm560_vm2 = vweird.f32 %v3046_v26 }
 0x9cc   :  { %vm561_vm4 = vmor %vm559_vm3, %vm560_vm2 }
 0x9cd   :  { %v556_v28 = vsub.f32 1.0, %v555_v27 }
 0x9cf   :  { %v557_v29 = vmul.f32 %v3046_v26, %v556_v28 }
 0x9d1   :  { %v558_v30 = vadd.f32 %v3046_v26, %v557_v29 }
 0x9d3   :  { %v562_v33 = vsel %vm561_vm4, %v3046_v26, %v558_v30  ;;  %v3803_v26 = vld [vmem:[%s4352_s1 + $0x8] sm:$0xff] }
 0x9d4   :  { %v567_v36 = vsel %vm564_vm5, %v566_v34, %v562_v33  ;;  %v3824_v34 = vld [vmem:[%s4316_s9] ss:$0 sm:$0xff] }
 0x9d5   :  { %v581_v41 = vsub.f32 1.0, %v567_v36  ;;  %v587_v43 = vmul.f32 %v567_v36, %v523_v13 }
 0xa2b   :  { %v572_v35 = vpop.permute.xlu0 %571 }
 0xa2c   :  { %v574_v37 = vmul.f32 %v572_v35, %v567_v36 }
 0xa2e   :  { %576 = vrot.lane.b32.xlu1 %v574_v37, %s3412_s27 }
 0xaa0   :  { %v577_v38 = vpop.permute.xlu1 %576 }
 0xaa1   :  { %v579_v39 = vadd.f32 %v577_v38, %v248_v21  ;;  %v3772_v21 = vld [vmem:[%s4356_s12 + $0x10] sm:$0xff] }
 0xaa2   :  { %863 = vmatpush.msrb.mxu1 %v3772_v21  ;;  %934 = vmatpush.msra.mxu2 %v3772_v21 }
 0xaa3   :  { %3047 = vtanh.f32 %v579_v39 }
 0xaa4   :  { %864 = vmatpush.msrb.mxu1 %v3779_v22  ;;  %935 = vmatpush.msra.mxu2 %v3779_v22 }
 0xaa6   :  { %865 = vmatpush.msrb.mxu1 %v3786_v23  ;;  %936 = vmatpush.msra.mxu2 %v3786_v23 }
 0xaa9   :  { %v3048_v40 = vpop.eup %3047 }
 0xaaa   :  { %583 = vrot.lane.b32.xlu2 %v3048_v40, %s3413_s6 }
 0xb04   :  { %v584_v42 = vpop.permute.xlu2 %583 }
 0xb05   :  { %v586_v44 = vmul.f32 %v584_v42, %v581_v41 }
 0xb07   :  { %v588_v49 = vadd.f32 %v587_v43, %v586_v44 }
 0xb09   :  { %590 = vrot.lane.b32.xlu0 %v588_v49, %s3413_s6 }
 0xb7b   :  { %v591_v55 = vpop.permute.xlu0 %590 }
 0xb7c   :  { %2895 = vmatmul.msk.f32.vlgmr.msrb.gmra.mxu3 %vm193_vm0, %v591_v55 }
 0xb84   :  { %2901 = vmatmul.msk.f32.vlgmr.msra.gmra.mxu3 %vm193_vm0, %v3673_v45 }
 0xb8c   :  { %2902 = vmatmul.msk.f32.gmra.mxu3 %vm193_vm0, %v3695_v15 }
 0xb94   :  { %2903 = vmatmul.msk.f32.gmra.mxu3 %vm193_vm0, %v3709_v48 }
 0xb9c   :  { %2904 = vmatmul.msk.f32.gmra.mxu3 %vm193_vm0, %v526_v17 }
 0xba4   :  { %2905 = vmatmul.msk.f32.gmra.mxu3 %vm193_vm0, %v591_v55 }
 0xbff   :  { %v611_v56 = vpop.f32.mrf.mxu3 }
 0xc00   :  { %v634_v57 = vadd.f32 %v611_v56, %v3644_v11  ;;  %v614_v60 = vadd.f32 %v611_v56, %v251_v59 }
 0xc02   :  { %636 = vrot.lane.b32.xlu1 %v634_v57, %s3412_s27  ;;  %v2896_v45 = vmul.f32 -1.442695, %v614_v60 }
 0xc04   :  { %3049 = vpow2.f32 %v2896_v45 }
 0xc07   :  { %v821_v35 = vpop.f32.mrf.mxu3 }
 0xc08   :  { %v822_v37 = vadd.f32 %v3824_v34, %v821_v35 }
 0xc0a   :  { %v3050_v61 = vpop.eup %3049 }
 0xc0b   :  { %v618_v15 = vadd.f32 1.0, %v3050_v61 }
 0xc0d   :  { %3051 = vrcp.f32 %v618_v15  ;;  %v630_v2 = vand.u32 2147483648, %v618_v15  ;;  %vm624_vm7 = vweird.f32 %v618_v15  ;;  %v628_v3 = vand.u32 2147483647, %v618_v15 }
 0xc0f   :  { %v631_v5 = vor.u32 1.1754944e-38, %v630_v2  ;;  %vm629_vm9 = vcmp.eq.f32.partialorder %v628_v3, 8.507059e+37 }
 0xc13   :  { %v3052_v62 = vpop.eup %3051 }
 0xc14   :  { %v620_v48 = vmul.f32 %v3052_v62, %v618_v15  ;;  %vm625_vm6 = vweird.f32 %v3052_v62 }
 0xc15   :  { %vm626_vm8 = vmor %vm624_vm7, %vm625_vm6 }
 0xc16   :  { %v621_v63 = vsub.f32 1.0, %v620_v48 }
 0xc18   :  { %v622_v0 = vmul.f32 %v3052_v62, %v621_v63 }
 0xc1a   :  { %v623_v1 = vadd.f32 %v3052_v62, %v622_v0 }
 0xc1c   :  { %v627_v4 = vsel %vm626_vm8, %v3052_v62, %v623_v1 }
 0xc1d   :  { %v632_v7 = vsel %vm629_vm9, %v631_v5, %v627_v4 }
 0xc1e   :  { %v646_v13 = vsub.f32 1.0, %v632_v7  ;;  %v652_v17 = vmul.f32 %v632_v7, %v588_v49 }
 0xc74   :  { %v637_v6 = vpop.permute.xlu1 %636 }
 0xc75   :  { %v639_v8 = vmul.f32 %v637_v6, %v632_v7 }
 0xc77   :  { %641 = vrot.lane.b32.xlu2 %v639_v8, %s3412_s27 }
 0xc7f   :  { %890 = vrot.lane.b32.xlu2 %v3012_v24, %s3412_s27 }
 0xcd1   :  { %v642_v9 = vpop.permute.xlu2 %641 }
 0xcd2   :  { %v644_v10 = vadd.f32 %v642_v9, %v251_v59 }
 0xcd4   :  { %3053 = vtanh.f32 %v644_v10 }
 0xcd9   :  { %v3815_v29 = vpop.permute.xlu2 %890 }
 0xcda   :  { %v3054_v12 = vpop.eup %3053 }
 0xcdb   :  { %648 = vrot.lane.b32.xlu0 %v3054_v12, %s3413_s6 }
 0xd4d   :  { %v649_v16 = vpop.permute.xlu0 %648 }
 0xd4e   :  { %v651_v18 = vmul.f32 %v649_v16, %v646_v13 }
 0xd50   :  { %v3760_v19 = vadd.f32 %v652_v17, %v651_v18 }
 0xd52   :  { %655 = vrot.lane.b32.xlu1 %v3760_v19, %s3413_s6 }
 0xdc4   :  { %v656_v25 = vpop.permute.xlu1 %655 }
 0xdc5   :  { %2897 = vmatmul.msk.f32.vlgmr.msra.gmra.mxu1 %vm193_vm0, %v656_v25  ;;  %2906 = vmatmul.msk.f32.gmra.mxu3 %vm193_vm0, %v656_v25 }
 0xdc6   :  { %998 = vmatpush.msra.mxu1 %v3767_v20 }
 0xdc8   :  { %999 = vmatpush.msra.mxu1 %v3772_v21 }
 0xdca   :  { %1000 = vmatpush.msra.mxu1 %v3779_v22 }
 0xdcc   :  { %1001 = vmatpush.msra.mxu1 %v3786_v23 }
 0xdcd   :  { %2910 = vmatmul.msk.f32.vlgmr.msrb.gmra.mxu1 %vm193_vm0, %v3803_v26 }
 0xdce   :  { %1128 = vmatpush.msrb.mxu1 %v3767_v20 }
 0xdd0   :  { %1129 = vmatpush.msrb.mxu1 %v3772_v21 }
 0xdd2   :  { %1130 = vmatpush.msrb.mxu1 %v3779_v22 }
 0xdd4   :  { %1131 = vmatpush.msrb.mxu1 %v3786_v23 }
 0xe42   :  { %v676_v27 = vpop.f32.mrf.mxu1 }
 0xe43   :  { %v699_v28 = vadd.f32 %v676_v27, %v3644_v11  ;;  %v679_v33 = vadd.f32 %v676_v27, %v254_v32 }
 0xe45   :  { %701 = vrot.lane.b32.xlu0 %v699_v28, %s3412_s27  ;;  %v2898_v36 = vmul.f32 -1.442695, %v679_v33  ;;  %v824_v33 = vpop.f32.mrf.mxu3 }
 0xe46   :  { %v825_v35 = vadd.f32 %v3824_v34, %v824_v33 }
 0xe47   :  { %3055 = vpow2.f32 %v2898_v36 }
 0xe4a   :  { %v867_v30 = vpop.f32.mrf.mxu1 }
 0xe4b   :  { %v893_v31 = vadd.f32 %v3815_v29, %v867_v30  ;;  %v870_v38 = vadd.f32 %v867_v30, %v822_v37 }
 0xe4d   :  { %895 = vrot.lane.b32.xlu1 %v893_v31, %s3412_s27  ;;  %v2911_v39 = vmul.f32 -1.442695, %v870_v38  ;;  %v3056_v40 = vpop.eup %3055 }
 0xe4e   :  { %v683_v41 = vadd.f32 1.0, %v3056_v40 }
 0xe4f   :  { %3057 = vpow2.f32 %v2911_v39 }
 0xe50   :  { %3059 = vrcp.f32 %v683_v41  ;;  %v695_v54 = vand.u32 2147483648, %v683_v41  ;;  %vm689_vm11 = vweird.f32 %v683_v41  ;;  %v693_v55 = vand.u32 2147483647, %v683_v41 }
 0xe52   :  { %v696_v58 = vor.u32 1.1754944e-38, %v695_v54  ;;  %vm694_vm13 = vcmp.eq.f32.partialorder %v693_v55, 8.507059e+37 }
 0xe55   :  { %v3058_v42 = vpop.eup %3057 }
 0xe56   :  { %v874_v43 = vadd.f32 1.0, %v3058_v42  ;;  %v3060_v14 = vpop.eup %3059 }
 0xe57   :  { %v685_v46 = vmul.f32 %v3060_v14, %v683_v41  ;;  %vm690_vm10 = vweird.f32 %v3060_v14 }
 0xe58   :  { %3061 = vrcp.f32 %v874_v43  ;;  %vm691_vm12 = vmor %vm689_vm11, %vm690_vm10  ;;  %v886_v15 = vand.u32 2147483648, %v874_v43  ;;  %vm880_vm15 = vweird.f32 %v874_v43  ;;  %v884_v62 = vand.u32 2147483647, %v874_v43 }
 0xe59   :  { %v686_v44 = vsub.f32 1.0, %v685_v46 }
 0xe5a   :  { %v887_v63 = vor.u32 1.1754944e-38, %v886_v15  ;;  %vm885_vm2 = vcmp.eq.f32.partialorder %v884_v62, 8.507059e+37 }
 0xe5b   :  { %v687_v50 = vmul.f32 %v3060_v14, %v686_v44 }
 0xe5d   :  { %v688_v52 = vadd.f32 %v3060_v14, %v687_v50 }
 0xe5e   :  { %v3062_v49 = vpop.eup %3061 }
 0xe5f   :  { %v876_v51 = vmul.f32 %v3062_v49, %v874_v43  ;;  %v692_v56 = vsel %vm691_vm12, %v3060_v14, %v688_v52  ;;  %vm881_vm14 = vweird.f32 %v3062_v49 }
 0xe60   :  { %v697_v60 = vsel %vm694_vm13, %v696_v58, %v692_v56  ;;  %vm882_vm1 = vmor %vm880_vm15, %vm881_vm14 }
 0xe61   :  { %v877_v53 = vsub.f32 1.0, %v876_v51  ;;  %v711_v9 = vsub.f32 1.0, %v697_v60  ;;  %v717_v12 = vmul.f32 %v697_v60, %v3760_v19 }
 0xe63   :  { %v878_v57 = vmul.f32 %v3062_v49, %v877_v53 }
 0xe65   :  { %v879_v61 = vadd.f32 %v3062_v49, %v878_v57 }
 0xe67   :  { %v883_v48 = vsel %vm882_vm1, %v3062_v49, %v879_v61 }
 0xe68   :  { %v888_v0 = vsel %vm885_vm2, %v887_v63, %v883_v48  ;;  %v827_v48 = vpop.f32.mrf.mxu3 }
 0xe69   :  { %v905_v18 = vsub.f32 1.0, %v888_v0  ;;  %v828_v63 = vadd.f32 %v3824_v34, %v827_v48 }
 0xeb7   :  { %v702_v59 = vpop.permute.xlu0 %701 }
 0xeb8   :  { %v704_v45 = vmul.f32 %v702_v59, %v697_v60 }
 0xeba   :  { %706 = vrot.lane.b32.xlu2 %v704_v45, %s3412_s27 }
 0xebf   :  { %v896_v1 = vpop.permute.xlu1 %895 }
 0xec0   :  { %v898_v2 = vmul.f32 %v896_v1, %v888_v0 }
 0xec2   :  { %900 = vrot.lane.b32.xlu0 %v898_v2, %s3412_s27 }
 0xeca   :  { %911 = vrot.lane.b32.xlu0 %v3803_v26, %s3411_s26 }
 0xf14   :  { %v707_v3 = vpop.permute.xlu2 %706 }
 0xf15   :  { %v709_v4 = vadd.f32 %v707_v3, %v254_v32 }
 0xf17   :  { %3063 = vtanh.f32 %v709_v4 }
 0xf1d   :  { %v3064_v5 = vpop.eup %3063 }
 0xf1e   :  { %713 = vrot.lane.b32.xlu1 %v3064_v5, %s3413_s6 }
 0xf34   :  { %v901_v6 = vpop.permute.xlu0 %900 }
 0xf35   :  { %v903_v7 = vadd.f32 %v901_v6, %v822_v37 }
 0xf37   :  { %3065 = vtanh.f32 %v903_v7 }
 0xf3c   :  { %v912_v17 = vpop.permute.xlu0 %911 }
 0xf3d   :  { %v3066_v8 = vpop.eup %3065  ;;  %v914_v25 = vmul.f32 %v912_v17, %v888_v0 }
 0xf3e   :  { %907 = vrot.lane.b32.xlu2 %v3066_v8, %s3413_s6 }
 0xf90   :  { %v714_v10 = vpop.permute.xlu1 %713 }
 0xf91   :  { %v716_v13 = vmul.f32 %v714_v10, %v711_v9 }
 0xf93   :  { %v3834_v16 = vadd.f32 %v717_v12, %v716_v13 }
 0xf95   :  { %720 = vrot.lane.b32.xlu1 %v3834_v16, %s3413_s6 }
 0xf98   :  { %v908_v24 = vpop.permute.xlu2 %907 }
 0xf99   :  { %v910_v26 = vmul.f32 %v908_v24, %v905_v18 }
 0xf9b   :  { %v3838_v27 = vadd.f32 %v914_v25, %v910_v26 }
 0xf9d   :  { %917 = vrot.lane.b32.xlu2 %v3838_v27, %s3413_s6 }
 0xff7   :  { %v918_v19 = vpop.permute.xlu2 %917 }
0x1007   :  { %v721_v28 = vpop.permute.xlu1 %720 }
0x1008   :  { %2899 = vmatmul.msk.f32.vlgmr.msrb.gmra.mxu2 %vm193_vm0, %v721_v28  ;;  %2907 = vmatmul.msk.f32.gmra.mxu3 %vm193_vm0, %v721_v28 }
0x1009   :  { %1063 = vmatpush.msrb.mxu2 %v3767_v20 }
0x100b   :  { %1064 = vmatpush.msrb.mxu2 %v3772_v21 }
0x100d   :  { %1065 = vmatpush.msrb.mxu2 %v3779_v22 }
0x100f   :  { %1066 = vmatpush.msrb.mxu2 %v3786_v23 }
0x1010   :  { %2912 = vmatmul.msk.f32.vlgmr.msra.gmra.mxu2 %vm193_vm0, %v918_v19 }
0x1011   :  { %1193 = vmatpush.msra.mxu2 %v3767_v20 }
0x1013   :  { %1194 = vmatpush.msra.mxu2 %v3772_v21 }
0x1015   :  { %1195 = vmatpush.msra.mxu2 %v3779_v22 }
0x1017   :  { %1196 = vmatpush.msra.mxu2 %v3786_v23 }
0x108b   :  { %v3853_v30 = vpop.f32.mrf.mxu2 }
0x1093   :  { %v938_v31 = vpop.f32.mrf.mxu2 }
0x1094   :  { %v961_v32 = vadd.f32 %v938_v31, %v3815_v29  ;;  %v941_v36 = vadd.f32 %v938_v31, %v825_v35 }
0x1096   :  { %963 = vrot.lane.b32.xlu0 %v961_v32, %s3412_s27  ;;  %v2913_v37 = vmul.f32 -1.442695, %v941_v36 }
0x1098   :  { %3067 = vpow2.f32 %v2913_v37 }
0x109e   :  { %v3068_v38 = vpop.eup %3067 }
0x109f   :  { %v945_v39 = vadd.f32 1.0, %v3068_v38 }
0x10a1   :  { %3069 = vrcp.f32 %v945_v39  ;;  %v957_v46 = vand.u32 2147483648, %v945_v39  ;;  %vm951_vm4 = vweird.f32 %v945_v39  ;;  %v955_v44 = vand.u32 2147483647, %v945_v39 }
0x10a3   :  { %v958_v50 = vor.u32 1.1754944e-38, %v957_v46  ;;  %vm956_vm6 = vcmp.eq.f32.partialorder %v955_v44, 8.507059e+37 }
0x10a7   :  { %v3070_v40 = vpop.eup %3069 }
0x10a8   :  { %v947_v41 = vmul.f32 %v3070_v40, %v945_v39  ;;  %vm952_vm3 = vweird.f32 %v3070_v40  ;;  %v830_v39 = vpop.f32.mrf.mxu3 }
0x10a9   :  { %vm953_vm5 = vmor %vm951_vm4, %vm952_vm3 }
0x10aa   :  { %v948_v42 = vsub.f32 1.0, %v947_v41 }
0x10ac   :  { %v949_v43 = vmul.f32 %v3070_v40, %v948_v42 }
0x10ae   :  { %v950_v14 = vadd.f32 %v3070_v40, %v949_v43 }
0x10b0   :  { %v954_v49 = vsel %vm953_vm5, %v3070_v40, %v950_v14  ;;  %v831_v40 = vadd.f32 %v3824_v34, %v830_v39 }
0x10b1   :  { %v959_v52 = vsel %vm956_vm6, %v958_v50, %v954_v49 }
0x10b2   :  { %v973_v57 = vsub.f32 1.0, %v959_v52  ;;  %v979_v59 = vmul.f32 %v959_v52, %v3838_v27 }
0x1108   :  { %v964_v51 = vpop.permute.xlu0 %963 }
0x1109   :  { %v966_v53 = vmul.f32 %v964_v51, %v959_v52 }
0x110b   :  { %968 = vrot.lane.b32.xlu1 %v966_v53, %s3412_s27 }
0x117d   :  { %v969_v54 = vpop.permute.xlu1 %968 }
0x117e   :  { %v971_v55 = vadd.f32 %v969_v54, %v825_v35 }
0x1180   :  { %3071 = vtanh.f32 %v971_v55 }
0x1186   :  { %v3072_v56 = vpop.eup %3071 }
0x1187   :  { %975 = vrot.lane.b32.xlu2 %v3072_v56, %s3413_s6 }
0x11e1   :  { %v976_v58 = vpop.permute.xlu2 %975 }
0x11e2   :  { %v978_v60 = vmul.f32 %v976_v58, %v973_v57 }
0x11e4   :  { %v3861_v45 = vadd.f32 %v979_v59, %v978_v60 }
0x11e6   :  { %982 = vrot.lane.b32.xlu0 %v3861_v45, %s3413_s6 }
0x1258   :  { %v983_v61 = vpop.permute.xlu0 %982 }
0x1259   :  { %2914 = vmatmul.msk.f32.vlgmr.msra.gmra.mxu1 %vm193_vm0, %v983_v61 }
0x125a   :  { %1258 = vmatpush.msra.mxu1 %v3767_v20 }
0x125c   :  { %1259 = vmatpush.msra.mxu1 %v3772_v21 }
0x125e   :  { %1260 = vmatpush.msra.mxu1 %v3779_v22 }
0x1260   :  { %1261 = vmatpush.msra.mxu1 %v3786_v23 }
0x12d6   :  { %v1003_v15 = vpop.f32.mrf.mxu1 }
0x12d7   :  { %v1026_v62 = vadd.f32 %v1003_v15, %v3815_v29  ;;  %v1006_v0 = vadd.f32 %v1003_v15, %v828_v63 }
0x12d9   :  { %1028 = vrot.lane.b32.xlu1 %v1026_v62, %s3412_s27  ;;  %v2915_v1 = vmul.f32 -1.442695, %v1006_v0  ;;  %v833_v0 = vpop.f32.mrf.mxu3 }
0x12db   :  { %3073 = vpow2.f32 %v2915_v1  ;;  %v834_v1 = vadd.f32 %v3824_v34, %v833_v0 }
0x12e1   :  { %v3074_v2 = vpop.eup %3073 }
0x12e2   :  { %v1010_v3 = vadd.f32 1.0, %v3074_v2 }
0x12e4   :  { %3075 = vrcp.f32 %v1010_v3  ;;  %v1022_v9 = vand.u32 2147483648, %v1010_v3  ;;  %vm1016_vm8 = vweird.f32 %v1010_v3  ;;  %v1020_v10 = vand.u32 2147483647, %v1010_v3 }
0x12e6   :  { %v1023_v13 = vor.u32 1.1754944e-38, %v1022_v9  ;;  %vm1021_vm10 = vcmp.eq.f32.partialorder %v1020_v10, 8.507059e+37 }
0x12ea   :  { %v3076_v4 = vpop.eup %3075 }
0x12eb   :  { %v1012_v5 = vmul.f32 %v3076_v4, %v1010_v3  ;;  %vm1017_vm7 = vweird.f32 %v3076_v4 }
0x12ec   :  { %vm1018_vm9 = vmor %vm1016_vm8, %vm1017_vm7 }
0x12ed   :  { %v1013_v6 = vsub.f32 1.0, %v1012_v5 }
0x12ef   :  { %v1014_v7 = vmul.f32 %v3076_v4, %v1013_v6 }
0x12f1   :  { %v1015_v8 = vadd.f32 %v3076_v4, %v1014_v7 }
0x12f3   :  { %v1019_v12 = vsel %vm1018_vm9, %v3076_v4, %v1015_v8 }
0x12f4   :  { %v1024_v18 = vsel %vm1021_vm10, %v1023_v13, %v1019_v12 }
0x12f5   :  { %v1038_v19 = vsub.f32 1.0, %v1024_v18  ;;  %v1044_v32 = vmul.f32 %v1024_v18, %v3861_v45 }
0x134b   :  { %v1029_v17 = vpop.permute.xlu1 %1028 }
0x134c   :  { %v1031_v24 = vmul.f32 %v1029_v17, %v1024_v18 }
0x134e   :  { %1033 = vrot.lane.b32.xlu2 %v1031_v24, %s3412_s27 }
0x13a8   :  { %v1034_v25 = vpop.permute.xlu2 %1033 }
0x13a9   :  { %v1036_v26 = vadd.f32 %v1034_v25, %v828_v63 }
0x13ab   :  { %3077 = vtanh.f32 %v1036_v26 }
0x13b1   :  { %v3078_v28 = vpop.eup %3077 }
0x13b2   :  { %1040 = vrot.lane.b32.xlu0 %v3078_v28, %s3413_s6 }
0x1424   :  { %v1041_v31 = vpop.permute.xlu0 %1040 }
0x1425   :  { %v1043_v33 = vmul.f32 %v1041_v31, %v1038_v19 }
0x1427   :  { %v3876_v35 = vadd.f32 %v1044_v32, %v1043_v33 }
0x1429   :  { %1047 = vrot.lane.b32.xlu1 %v3876_v35, %s3413_s6 }
0x149b   :  { %v1048_v36 = vpop.permute.xlu1 %1047 }
0x149c   :  { %2916 = vmatmul.msk.f32.vlgmr.msrb.gmra.mxu2 %vm193_vm0, %v1048_v36 }
0x149d   :  { %1323 = vmatpush.msrb.mxu2 %v3767_v20 }
0x149f   :  { %1324 = vmatpush.msrb.mxu2 %v3772_v21 }
0x14a1   :  { %1325 = vmatpush.msrb.mxu2 %v3779_v22 }
0x14a3   :  { %1326 = vmatpush.msrb.mxu2 %v3786_v23 }
0x151f   :  { %v1068_v37 = vpop.f32.mrf.mxu2 }
0x1520   :  { %v1091_v38 = vadd.f32 %v1068_v37, %v3815_v29  ;;  %v1071_v41 = vadd.f32 %v1068_v37, %v831_v40 }
0x1522   :  { %1093 = vrot.lane.b32.xlu2 %v1091_v38, %s3412_s27  ;;  %v2917_v42 = vmul.f32 -1.442695, %v1071_v41 }
0x1524   :  { %3079 = vpow2.f32 %v2917_v42  ;;  %v836_v42 = vpop.f32.mrf.mxu3 }
0x152a   :  { %v3080_v43 = vpop.eup %3079 }
0x152b   :  { %v1075_v14 = vadd.f32 1.0, %v3080_v43  ;;  %v837_v43 = vadd.f32 %v3824_v34, %v836_v42 }
0x152d   :  { %3081 = vrcp.f32 %v1075_v14  ;;  %v1087_v23 = vand.u32 2147483648, %v1075_v14  ;;  %vm1081_vm12 = vweird.f32 %v1075_v14  ;;  %v1085_v49 = vand.u32 2147483647, %v1075_v14 }
0x152f   :  { %v1088_v51 = vor.u32 1.1754944e-38, %v1087_v23  ;;  %vm1086_vm14 = vcmp.eq.f32.partialorder %v1085_v49, 8.507059e+37 }
0x1533   :  { %v3082_v20 = vpop.eup %3081 }
0x1534   :  { %v1077_v21 = vmul.f32 %v3082_v20, %v1075_v14  ;;  %vm1082_vm11 = vweird.f32 %v3082_v20 }
0x1535   :  { %vm1083_vm13 = vmor %vm1081_vm12, %vm1082_vm11 }
0x1536   :  { %v1078_v46 = vsub.f32 1.0, %v1077_v21 }
0x1538   :  { %v1079_v22 = vmul.f32 %v3082_v20, %v1078_v46 }
0x153a   :  { %v1080_v44 = vadd.f32 %v3082_v20, %v1079_v22 }
0x153c   :  { %v1084_v50 = vsel %vm1083_vm13, %v3082_v20, %v1080_v44 }
0x153d   :  { %v1089_v53 = vsel %vm1086_vm14, %v1088_v51, %v1084_v50 }
0x153e   :  { %v1103_v58 = vsub.f32 1.0, %v1089_v53  ;;  %v1109_v60 = vmul.f32 %v1089_v53, %v3876_v35 }
0x157c   :  { %v1094_v52 = vpop.permute.xlu2 %1093 }
0x157d   :  { %v1096_v54 = vmul.f32 %v1094_v52, %v1089_v53 }
0x157f   :  { %1098 = vrot.lane.b32.xlu0 %v1096_v54, %s3412_s27 }
0x15f1   :  { %v1099_v55 = vpop.permute.xlu0 %1098 }
0x15f2   :  { %v1101_v56 = vadd.f32 %v1099_v55, %v831_v40 }
0x15f4   :  { %3083 = vtanh.f32 %v1101_v56 }
0x15fa   :  { %v3084_v57 = vpop.eup %3083 }
0x15fb   :  { %1105 = vrot.lane.b32.xlu1 %v3084_v57, %s3413_s6 }
0x166d   :  { %v1106_v59 = vpop.permute.xlu1 %1105 }
0x166e   :  { %v1108_v61 = vmul.f32 %v1106_v59, %v1103_v58  ;;  %v764_v58 = vadd.f32 %v3853_v30, %v3644_v11  ;;  %v3247_v59 = vld [vmem:[%s4354_s11] ss:$0 sm:$0xff] }
0x1670   :  { %v3891_v15 = vadd.f32 %v1109_v60, %v1108_v61  ;;  %v257_v60 = vadd.f32 %v3247_v59, %v3683_v47 }
0x1672   :  { %1112 = vrot.lane.b32.xlu2 %v3891_v15, %s3413_s6  ;;  %v744_v61 = vadd.f32 %v3853_v30, %v257_v60 }
0x16cc   :  { %v1113_v62 = vpop.permute.xlu2 %1112 }
0x16cd   :  { %2918 = vmatmul.msk.f32.vlgmr.msrb.gmra.mxu1 %vm193_vm0, %v1113_v62  ;;  %v2900_v62 = vmul.f32 -1.442695, %v744_v61 }
0x174a   :  { %v1133_v48 = vpop.f32.mrf.mxu1 }
0x174b   :  { %v1156_v63 = vadd.f32 %v1133_v48, %v3815_v29  ;;  %v1136_v2 = vadd.f32 %v1133_v48, %v834_v1 }
0x174d   :  { %1158 = vrot.lane.b32.xlu0 %v1156_v63, %s3412_s27  ;;  %v2919_v3 = vmul.f32 -1.442695, %v1136_v2 }
0x174f   :  { %3085 = vpow2.f32 %v2919_v3 }
0x1755   :  { %v3086_v4 = vpop.eup %3085 }
0x1756   :  { %v1140_v5 = vadd.f32 1.0, %v3086_v4 }
0x1758   :  { %3087 = vrcp.f32 %v1140_v5  ;;  %v1152_v12 = vand.u32 2147483648, %v1140_v5  ;;  %vm1146_vm1 = vweird.f32 %v1140_v5  ;;  %v1150_v13 = vand.u32 2147483647, %v1140_v5 }
0x175a   :  { %v1153_v18 = vor.u32 1.1754944e-38, %v1152_v12  ;;  %vm1151_vm3 = vcmp.eq.f32.partialorder %v1150_v13, 8.507059e+37  ;;  %v2926_v13 = vmul.f32 -1.442695, %v3838_v27 }
0x175e   :  { %v3088_v6 = vpop.eup %3087 }
0x175f   :  { %v1142_v7 = vmul.f32 %v3088_v6, %v1140_v5  ;;  %vm1147_vm15 = vweird.f32 %v3088_v6 }
0x1760   :  { %vm1148_vm2 = vmor %vm1146_vm1, %vm1147_vm15 }
0x1761   :  { %v1143_v8 = vsub.f32 1.0, %v1142_v7 }
0x1763   :  { %v1144_v9 = vmul.f32 %v3088_v6, %v1143_v8 }
0x1765   :  { %v1145_v10 = vadd.f32 %v3088_v6, %v1144_v9 }
0x1767   :  { %v1149_v17 = vsel %vm1148_vm2, %v3088_v6, %v1145_v10 }
0x1768   :  { %v1154_v25 = vsel %vm1151_vm3, %v1153_v18, %v1149_v17 }
0x1769   :  { %v1168_v32 = vsub.f32 1.0, %v1154_v25  ;;  %v1174_v36 = vmul.f32 %v1154_v25, %v3891_v15 }
0x17bf   :  { %v1159_v24 = vpop.permute.xlu0 %1158 }
0x17c0   :  { %v1161_v26 = vmul.f32 %v1159_v24, %v1154_v25 }
0x17c2   :  { %1163 = vrot.lane.b32.xlu1 %v1161_v26, %s3412_s27 }
0x1834   :  { %v1164_v28 = vpop.permute.xlu1 %1163 }
0x1835   :  { %v1166_v19 = vadd.f32 %v1164_v28, %v834_v1 }
0x1837   :  { %3089 = vtanh.f32 %v1166_v19 }
0x183d   :  { %v3090_v31 = vpop.eup %3089 }
0x183e   :  { %1170 = vrot.lane.b32.xlu2 %v3090_v31, %s3413_s6 }
0x1898   :  { %v1171_v33 = vpop.permute.xlu2 %1170 }
0x1899   :  { %v1173_v37 = vmul.f32 %v1171_v33, %v1168_v32 }
0x189b   :  { %v3902_v38 = vadd.f32 %v1174_v36, %v1173_v37 }
0x189d   :  { %1177 = vrot.lane.b32.xlu0 %v3902_v38, %s3413_s6 }
0x190f   :  { %v1178_v39 = vpop.permute.xlu0 %1177 }
0x1910   :  { %2920 = vmatmul.msk.f32.vlgmr.msra.gmra.mxu2 %vm193_vm0, %v1178_v39 }
0x1993   :  { %v1198_v40 = vpop.f32.mrf.mxu2 }
0x1994   :  { %v1221_v41 = vadd.f32 %v1198_v40, %v3815_v29  ;;  %v1201_v14 = vadd.f32 %v1198_v40, %v837_v43 }
0x1996   :  { %1223 = vrot.lane.b32.xlu1 %v1221_v41, %s3412_s27  ;;  %v2921_v20 = vmul.f32 -1.442695, %v1201_v14 }
0x1998   :  { %3091 = vpow2.f32 %v2921_v20 }
0x199e   :  { %v3092_v21 = vpop.eup %3091 }
0x199f   :  { %v1205_v46 = vadd.f32 1.0, %v3092_v21  ;;  %v1526_v21 = vld [vmem:[#allocation9 + $0x18] sm:$0xff] }
0x19a0   :  { %1583 = vmatpush.msrb.mxu1 %v1526_v21 }
0x19a1   :  { %3093 = vrcp.f32 %v1205_v46  ;;  %v1217_v51 = vand.u32 2147483648, %v1205_v46  ;;  %vm1211_vm5 = vweird.f32 %v1205_v46  ;;  %v1215_v52 = vand.u32 2147483647, %v1205_v46 }
0x19a2   :  { %3095 = vpow2.f32 %v2900_v62 }
0x19a3   :  { %v1218_v54 = vor.u32 1.1754944e-38, %v1217_v51  ;;  %vm1216_vm7 = vcmp.eq.f32.partialorder %v1215_v52, 8.507059e+37  ;;  %v839_v52 = vpop.f32.mrf.mxu3 }
0x19a7   :  { %v3094_v22 = vpop.eup %3093 }
0x19a8   :  { %v1207_v44 = vmul.f32 %v3094_v22, %v1205_v46  ;;  %vm1212_vm4 = vweird.f32 %v3094_v22  ;;  %v3096_v48 = vpop.eup %3095  ;;  %v1525_v46 = vld [vmem:[#allocation9 + $0x10] sm:$0xff] }
0x19a9   :  { %vm1213_vm6 = vmor %vm1211_vm5, %vm1212_vm4  ;;  %v748_v63 = vadd.f32 1.0, %v3096_v48  ;;  %1584 = vmatpush.msrb.mxu1 %v1525_v46  ;;  %v3014_v46 = vld [vmem:[%s4321_s14] ss:$0 sm:$0xff] }
0x19aa   :  { %v1208_v23 = vsub.f32 1.0, %v1207_v44  ;;  %v1523_v44 = vld [vmem:[#allocation9] sm:$0xff] }
0x19ab   :  { %3097 = vrcp.f32 %v748_v63  ;;  %v760_v6 = vand.u32 2147483648, %v748_v63  ;;  %vm754_vm9 = vweird.f32 %v748_v63  ;;  %v758_v7 = vand.u32 2147483647, %v748_v63 }
0x19ac   :  { %v1209_v49 = vmul.f32 %v3094_v22, %v1208_v23 }
0x19ad   :  { %v761_v30 = vor.u32 1.1754944e-38, %v760_v6  ;;  %vm759_vm11 = vcmp.eq.f32.partialorder %v758_v7, 8.507059e+37 }
0x19ae   :  { %v1210_v50 = vadd.f32 %v3094_v22, %v1209_v49 }
0x19b0   :  { %v1214_v53 = vsel %vm1213_vm6, %v3094_v22, %v1210_v50  ;;  %v1524_v22 = vld [vmem:[#allocation9 + $0x8] sm:$0xff] }
0x19b1   :  { %v1219_v56 = vsel %vm1216_vm7, %v1218_v54, %v1214_v53  ;;  %v3098_v0 = vpop.eup %3097  ;;  %1585 = vmatpush.msrb.mxu1 %v1524_v22  ;;  %v840_v53 = vadd.f32 %v3824_v34, %v839_v52 }
0x19b2   :  { %v750_v1 = vmul.f32 %v3098_v0, %v748_v63  ;;  %vm755_vm8 = vweird.f32 %v3098_v0  ;;  %v1233_v28 = vsub.f32 1.0, %v1219_v56  ;;  %v1239_v31 = vmul.f32 %v1219_v56, %v3902_v38 }
0x19b3   :  { %vm756_vm10 = vmor %vm754_vm9, %vm755_vm8  ;;  %1586 = vmatpush.msrb.mxu1 %v1523_v44 }
0x19b4   :  { %v751_v2 = vsub.f32 1.0, %v750_v1 }
0x19b6   :  { %v752_v3 = vmul.f32 %v3098_v0, %v751_v2 }
0x19b8   :  { %v753_v5 = vadd.f32 %v3098_v0, %v752_v3 }
0x19ba   :  { %v757_v47 = vsel %vm756_vm10, %v3098_v0, %v753_v5 }
0x19bb   :  { %v3919_v8 = vsel %vm759_vm11, %v761_v30, %v757_v47  ;;  %v3942_v47 = vld [vmem:[#allocation4 + $0x18] sm:$0xff]  ;;  %v3944_v30 = vld [vmem:[#allocation4 + $0x10] sm:$0xff] }
0x19bc   :  { %v782_v6 = vmul.f32 %v3919_v8, %v3834_v16  ;;  %1708 = vmatpush.msrb.mxu3 %v3942_v47  ;;  %1779 = vmatpush.msrb.mxu0 %v3942_v47 }
0x19be   :  { %1709 = vmatpush.msrb.mxu3 %v3944_v30  ;;  %1780 = vmatpush.msrb.mxu0 %v3944_v30 }
0x1a08   :  { %v1224_v55 = vpop.permute.xlu1 %1223 }
0x1a09   :  { %v1226_v57 = vmul.f32 %v1224_v55, %v1219_v56 }
0x1a0b   :  { %1228 = vrot.lane.b32.xlu2 %v1226_v57, %s3412_s27 }
0x1a13   :  { %766 = vrot.lane.b32.xlu2 %v764_v58, %s3412_s27 }
0x1a65   :  { %v1229_v11 = vpop.permute.xlu2 %1228 }
0x1a66   :  { %v1231_v4 = vadd.f32 %v1229_v11, %v837_v43 }
0x1a68   :  { %3099 = vtanh.f32 %v1231_v4  ;;  %v776_v4 = vsub.f32 1.0, %v3919_v8 }
0x1a69   :  { %3101 = vpow2.f32 %v2926_v13 }
0x1a6d   :  { %v767_v9 = vpop.permute.xlu2 %766 }
0x1a6e   :  { %v3100_v10 = vpop.eup %3099  ;;  %v769_v12 = vmul.f32 %v767_v9, %v3919_v8  ;;  %v2927_v8 = vmul.f32 -1.442695, %v3861_v45  ;;  %v1692_v45 = vld [vmem:[%s4357_s19] sm:$0xff] }
0x1a6f   :  { %1235 = vrot.lane.b32.xlu0 %v3100_v10, %s3413_s6  ;;  %v3102_v17 = vpop.eup %3101 }
0x1a70   :  { %771 = vrot.lane.b32.xlu2 %v769_v12, %s3412_s27  ;;  %v1395_v18 = vadd.f32 1.0, %v3102_v17 }
0x1a72   :  { %3103 = vrcp.f32 %v1395_v18  ;;  %v1414_v27 = vand.u32 2147483648, %v1395_v18  ;;  %vm1408_vm13 = vweird.f32 %v1395_v18  ;;  %v1412_v40 = vand.u32 2147483647, %v1395_v18 }
0x1a74   :  { %v1415_v43 = vor.u32 1.1754944e-38, %v1414_v27  ;;  %vm1413_vm15 = vcmp.eq.f32.partialorder %v1412_v40, 8.507059e+37 }
0x1a78   :  { %v3104_v24 = vpop.eup %3103 }
0x1a79   :  { %v1404_v25 = vmul.f32 %v3104_v24, %v1395_v18  ;;  %vm1409_vm12 = vweird.f32 %v3104_v24  ;;  %v2928_v18 = vmul.f32 -1.442695, %v3876_v35 }
0x1a7a   :  { %vm1410_vm14 = vmor %vm1408_vm13, %vm1409_vm12 }
0x1a7b   :  { %v1405_v26 = vsub.f32 1.0, %v1404_v25  ;;  %v3958_v25 = vld [vmem:[#allocation4] sm:$0xff] }
0x1a7d   :  { %v1406_v33 = vmul.f32 %v3104_v24, %v1405_v26 }
0x1a7f   :  { %v1407_v37 = vadd.f32 %v3104_v24, %v1406_v33 }
0x1a81   :  { %v1411_v41 = vsel %vm1410_vm14, %v3104_v24, %v1407_v37  ;;  %v3954_v24 = vld [vmem:[#allocation4 + $0x8] sm:$0xff] }
0x1a82   :  { %v1416_v14 = vsel %vm1413_vm15, %v1415_v43, %v1411_v41  ;;  %1710 = vmatpush.msrb.mxu3 %v3954_v24  ;;  %1781 = vmatpush.msrb.mxu0 %v3954_v24 }
0x1a84   :  { %1711 = vmatpush.msrb.mxu3 %v3958_v25  ;;  %1782 = vmatpush.msrb.mxu0 %v3958_v25 }
0x1a86   :  { %1844 = vmatpush.msra.mxu0 %v3942_v47  ;;  %1909 = vmatpush.msra.mxu3 %v3942_v47 }
0x1a88   :  { %1845 = vmatpush.msra.mxu0 %v3944_v30  ;;  %1910 = vmatpush.msra.mxu3 %v3944_v30 }
0x1a8a   :  { %1846 = vmatpush.msra.mxu0 %v3954_v24  ;;  %1911 = vmatpush.msra.mxu3 %v3954_v24 }
0x1a8c   :  { %1847 = vmatpush.msra.mxu0 %v3958_v25  ;;  %1912 = vmatpush.msra.mxu3 %v3958_v25 }
0x1aca   :  { %v772_v39 = vpop.permute.xlu2 %771 }
0x1acb   :  { %v774_v42 = vadd.f32 %v772_v39, %v257_v60 }
0x1acd   :  { %3105 = vtanh.f32 %v774_v42 }
0x1ad3   :  { %v3106_v20 = vpop.eup %3105 }
0x1ae1   :  { %v1236_v19 = vpop.permute.xlu0 %1235 }
0x1ae2   :  { %v1238_v32 = vmul.f32 %v1236_v19, %v1233_v28 }
0x1ae4   :  { %v3926_v36 = vadd.f32 %v1239_v31, %v1238_v32 }
0x1ae6   :  { %1242 = vrot.lane.b32.xlu1 %v3926_v36, %s3413_s6 }
0x1aee   :  { %1539 = vrot.lane.b32.xlu1 %v1416_v14, %s3413_s6 }
0x1af6   :  { %778 = vrot.lane.b32.xlu1 %v3106_v20, %s3413_s6 }
0x1b58   :  { %v1243_v23 = vpop.permute.xlu1 %1242 }
0x1b59   :  { %2922 = vmatmul.msk.f32.vlgmr.msra.gmra.mxu1 %vm193_vm0, %v1243_v23 }
0x1b60   :  { %v1540_v49 = vpop.permute.xlu1 %1539 }
0x1b61   :  { %2934 = vmatmul.msk.f32.vlgmr.msrb.gmra.mxu1 %vm193_vm0, %v1540_v49 }
0x1b68   :  { %v779_v11 = vpop.permute.xlu1 %778 }
0x1b69   :  { %v781_v5 = vmul.f32 %v779_v11, %v776_v4 }
0x1b6b   :  { %v783_v7 = vadd.f32 %v782_v6, %v781_v5 }
0x1bd6   :  { %v1263_v50 = vpop.f32.mrf.mxu1 }
0x1bd7   :  { %v1286_v51 = vadd.f32 %v1263_v50, %v3815_v29  ;;  %v1266_v54 = vadd.f32 %v1263_v50, %v840_v53 }
0x1bd9   :  { %1288 = vrot.lane.b32.xlu0 %v1286_v51, %s3412_s27  ;;  %v2923_v55 = vmul.f32 -1.442695, %v1266_v54 }
0x1bdb   :  { %3107 = vpow2.f32 %v2923_v55 }
0x1be1   :  { %v3108_v56 = vpop.eup %3107 }
0x1be2   :  { %v1270_v57 = vadd.f32 1.0, %v3108_v56  ;;  %v1615_v56 = vld [vmem:[#allocation2 + $0x18] sm:$0xff] }
0x1be3   :  { %1663 = vmatpush.msra.mxu2 %v1615_v56 }
0x1be4   :  { %3109 = vrcp.f32 %v1270_v57  ;;  %v1282_v48 = vand.u32 2147483648, %v1270_v57  ;;  %vm1276_vm2 = vweird.f32 %v1270_v57  ;;  %v1280_v63 = vand.u32 2147483647, %v1270_v57 }
0x1be6   :  { %v1283_v1 = vor.u32 1.1754944e-38, %v1282_v48  ;;  %vm1281_vm4 = vcmp.eq.f32.partialorder %v1280_v63, 8.507059e+37  ;;  %v3998_v48 = vld [vmem:[%s4327_s20] ss:$0 sm:$0xff] }
0x1bea   :  { %v3110_v58 = vpop.eup %3109 }
0x1beb   :  { %v1272_v59 = vmul.f32 %v3110_v58, %v1270_v57  ;;  %vm1277_vm1 = vweird.f32 %v3110_v58  ;;  %v1614_v57 = vld [vmem:[#allocation2 + $0x10] sm:$0xff] }
0x1bec   :  { %vm1278_vm3 = vmor %vm1276_vm2, %vm1277_vm1  ;;  %1664 = vmatpush.msra.mxu2 %v1614_v57 }
0x1bed   :  { %v1273_v60 = vsub.f32 1.0, %v1272_v59  ;;  %v1612_v59 = vld [vmem:[#allocation2] sm:$0xff] }
0x1bef   :  { %v1274_v61 = vmul.f32 %v3110_v58, %v1273_v60 }
0x1bf1   :  { %v1275_v62 = vadd.f32 %v3110_v58, %v1274_v61 }
0x1bf3   :  { %v1279_v0 = vsel %vm1278_vm3, %v3110_v58, %v1275_v62  ;;  %v1613_v58 = vld [vmem:[#allocation2 + $0x8] sm:$0xff] }
0x1bf4   :  { %v1284_v2 = vsel %vm1281_vm4, %v1283_v1, %v1279_v0  ;;  %1665 = vmatpush.msra.mxu2 %v1613_v58  ;;  %v1588_v0 = vpop.f32.mrf.mxu1 }
0x1bf5   :  { %v1298_v32 = vsub.f32 1.0, %v1284_v2  ;;  %v1304_v37 = vmul.f32 %v1284_v2, %v3926_v36 }
0x1bf6   :  { %1666 = vmatpush.msra.mxu2 %v1612_v59 }
0x1c4b   :  { %v1289_v34 = vpop.permute.xlu0 %1288 }
0x1c4c   :  { %v1291_v3 = vmul.f32 %v1289_v34, %v1284_v2  ;;  %v1589_v34 = vadd.f32 %v3998_v48, %v1588_v0 }
0x1c4e   :  { %1293 = vrot.lane.b32.xlu0 %v1291_v3, %s3412_s27 }
0x1c56   :  { %800 = vrot.lane.b32.xlu0 %v783_v7, %s3413_s6  ;;  %v4013_v7 = vld [vmem:[%s4320_s13] ss:$0 sm:$0xff] }
0x1cc0   :  { %v1294_v9 = vpop.permute.xlu0 %1293 }
0x1cc1   :  { %v1296_v10 = vadd.f32 %v1294_v9, %v840_v53 }
0x1cc3   :  { %3111 = vtanh.f32 %v1296_v10 }
0x1cc4   :  { %3113 = vpow2.f32 %v2927_v8 }
0x1cc8   :  { %v801_v12 = vpop.permute.xlu0 %800 }
0x1cc9   :  { %v3112_v16 = vpop.eup %3111  ;;  %2908 = vmatmul.msk.f32.gmra.mxu3 %vm193_vm0, %v801_v12 }
0x1cca   :  { %1300 = vrot.lane.b32.xlu2 %v3112_v16, %s3413_s6  ;;  %v3114_v13 = vpop.eup %3113 }
0x1ccb   :  { %v1396_v17 = vadd.f32 1.0, %v3114_v13 }
0x1ccd   :  { %3115 = vrcp.f32 %v1396_v17  ;;  %v1429_v43 = vand.u32 2147483648, %v1396_v17  ;;  %vm1423_vm6 = vweird.f32 %v1396_v17  ;;  %v1427_v14 = vand.u32 2147483647, %v1396_v17 }
0x1cce   :  { %3117 = vpow2.f32 %v2928_v18 }
0x1ccf   :  { %v1430_v22 = vor.u32 1.1754944e-38, %v1429_v43  ;;  %vm1428_vm8 = vcmp.eq.f32.partialorder %v1427_v14, 8.507059e+37 }
0x1cd1   :  { %2950 = vmatmul.msk.f32.vlgmr.msrb.gmra.mxu3 %vm193_vm0, %v1692_v45 }
0x1cd2   :  { %2039 = vmatpush.msrb.mxu3 %v3942_v47  ;;  %1736 = vrot.lane.b32.xlu2 %v3014_v46, %s3412_s27 }
0x1cd3   :  { %v3116_v26 = vpop.eup %3115 }
0x1cd4   :  { %v3118_v35 = vpop.eup %3117  ;;  %v1419_v28 = vmul.f32 %v3116_v26, %v1396_v17  ;;  %2040 = vmatpush.msrb.mxu3 %v3944_v30  ;;  %vm1424_vm5 = vweird.f32 %v3116_v26 }
0x1cd5   :  { %v1397_v19 = vadd.f32 1.0, %v3118_v35  ;;  %vm1425_vm7 = vmor %vm1423_vm6, %vm1424_vm5 }
0x1cd6   :  { %v1420_v31 = vsub.f32 1.0, %v1419_v28  ;;  %2041 = vmatpush.msrb.mxu3 %v3954_v24 }
0x1cd7   :  { %3119 = vrcp.f32 %v1397_v19  ;;  %v1444_v51 = vand.u32 2147483648, %v1397_v19  ;;  %vm1438_vm10 = vweird.f32 %v1397_v19  ;;  %v1442_v52 = vand.u32 2147483647, %v1397_v19 }
0x1cd8   :  { %v1421_v39 = vmul.f32 %v3116_v26, %v1420_v31  ;;  %2042 = vmatpush.msrb.mxu3 %v3958_v25 }
0x1cd9   :  { %v1445_v54 = vor.u32 1.1754944e-38, %v1444_v51  ;;  %vm1443_vm12 = vcmp.eq.f32.partialorder %v1442_v52, 8.507059e+37 }
0x1cda   :  { %v1422_v41 = vadd.f32 %v3116_v26, %v1421_v39 }
0x1cdc   :  { %v1426_v20 = vsel %vm1425_vm7, %v3116_v26, %v1422_v41 }
0x1cdd   :  { %v3120_v42 = vpop.eup %3119  ;;  %v1431_v44 = vsel %vm1428_vm8, %v1430_v22, %v1426_v20 }
0x1cde   :  { %v1434_v21 = vmul.f32 %v3120_v42, %v1397_v19  ;;  %vm1439_vm9 = vweird.f32 %v3120_v42 }
0x1cdf   :  { %vm1440_vm11 = vmor %vm1438_vm10, %vm1439_vm9 }
0x1ce0   :  { %v1435_v23 = vsub.f32 1.0, %v1434_v21 }
0x1ce2   :  { %v1436_v49 = vmul.f32 %v3120_v42, %v1435_v23 }
0x1ce4   :  { %v1437_v50 = vadd.f32 %v3120_v42, %v1436_v49 }
0x1ce6   :  { %v1441_v53 = vsel %vm1440_vm11, %v3120_v42, %v1437_v50 }
0x1ce7   :  { %v1446_v55 = vsel %vm1443_vm12, %v1445_v54, %v1441_v53 }
0x1d24   :  { %v1301_v33 = vpop.permute.xlu2 %1300 }
0x1d25   :  { %v1303_v27 = vmul.f32 %v1301_v33, %v1298_v32 }
0x1d27   :  { %v3977_v40 = vadd.f32 %v1304_v37, %v1303_v27 }
0x1d29   :  { %1307 = vrot.lane.b32.xlu1 %v3977_v40, %s3413_s6 }
0x1d2c   :  { %v3993_v62 = vpop.permute.xlu2 %1736 }
0x1d31   :  { %1541 = vrot.lane.b32.xlu1 %v1431_v44, %s3413_s6 }
0x1d39   :  { %1757 = vrot.lane.b32.xlu1 %v1692_v45, %s3411_s26 }
0x1d41   :  { %1543 = vrot.lane.b32.xlu1 %v1446_v55, %s3413_s6 }
0x1d4c   :  { %v3990_v60 = vpop.f32.mrf.mxu3 }
0x1d54   :  { %v1713_v63 = vpop.f32.mrf.mxu3 }
0x1d55   :  { %v1739_v1 = vadd.f32 %v3993_v62, %v1713_v63 }
0x1d57   :  { %1741 = vrot.lane.b32.xlu0 %v1739_v1, %s3412_s27 }
0x1d9b   :  { %v1308_v61 = vpop.permute.xlu1 %1307 }
0x1d9c   :  { %2924 = vmatmul.msk.f32.vlgmr.msrb.gmra.mxu2 %vm193_vm0, %v1308_v61 }
0x1da3   :  { %v1542_v2 = vpop.permute.xlu1 %1541 }
0x1da4   :  { %2935 = vmatmul.msk.f32.gmra.mxu1 %vm193_vm0, %v1542_v2  ;;  %2942 = vmatmul.msk.f32.vlgmr.msra.gmra.mxu2 %vm193_vm0, %v1589_v34 }
0x1dab   :  { %v1758_v3 = vpop.permute.xlu1 %1757 }
0x1db3   :  { %v1544_v11 = vpop.permute.xlu1 %1543 }
0x1db4   :  { %2936 = vmatmul.msk.f32.gmra.mxu1 %vm193_vm0, %v1544_v11 }
0x1dc9   :  { %v1742_v33 = vpop.permute.xlu0 %1741 }
0x1e1f   :  { %v4006_v4 = vpop.f32.mrf.mxu2 }
0x1e21   :  { %v1591_v5 = vpop.f32.mrf.mxu1 }
0x1e22   :  { %v1592_v6 = vadd.f32 %v3998_v48, %v1591_v5 }
0x1e24   :  { %2943 = vmatmul.msk.f32.gmra.mxu2 %vm193_vm0, %v1592_v6  ;;  %v2929_v6 = vmul.f32 -1.442695, %v3891_v15 }
0x1e27   :  { %v1668_v9 = vpop.f32.mrf.mxu2 }
0x1e28   :  { %v1669_v10 = vadd.f32 %v4013_v7, %v1668_v9 }
0x1e2a   :  { %v1716_v12 = vadd.f32 %v1713_v63, %v1669_v10 }
0x1e2c   :  { %v2951_v16 = vmul.f32 -1.442695, %v1716_v12 }
0x1e2e   :  { %3121 = vpow2.f32 %v2951_v16 }
0x1e31   :  { %v1594_v8 = vpop.f32.mrf.mxu1 }
0x1e32   :  { %v1595_v13 = vadd.f32 %v3998_v48, %v1594_v8 }
0x1e34   :  { %v3122_v17 = vpop.eup %3121  ;;  %2944 = vmatmul.msk.f32.gmra.mxu2 %vm193_vm0, %v1595_v13 }
0x1e35   :  { %v1720_v18 = vadd.f32 1.0, %v3122_v17 }
0x1e37   :  { %3123 = vrcp.f32 %v1720_v18  ;;  %v1732_v28 = vand.u32 2147483648, %v1720_v18  ;;  %v1730_v31 = vand.u32 2147483647, %v1720_v18  ;;  %vm1726_vm14 = vweird.f32 %v1720_v18 }
0x1e39   :  { %v1733_v37 = vor.u32 1.1754944e-38, %v1732_v28  ;;  %vm1731_vm1 = vcmp.eq.f32.partialorder %v1730_v31, 8.507059e+37 }
0x1e3d   :  { %v3124_v26 = vpop.eup %3123 }
0x1e3e   :  { %v1722_v45 = vmul.f32 %v3124_v26, %v1720_v18  ;;  %vm1727_vm13 = vweird.f32 %v3124_v26 }
0x1e3f   :  { %vm1728_vm15 = vmor %vm1726_vm14, %vm1727_vm13 }
0x1e40   :  { %v1723_v35 = vsub.f32 1.0, %v1722_v45 }
0x1e42   :  { %v1724_v19 = vmul.f32 %v3124_v26, %v1723_v35 }
0x1e44   :  { %v1725_v32 = vadd.f32 %v3124_v26, %v1724_v19 }
0x1e46   :  { %v1729_v27 = vsel %vm1728_vm15, %v3124_v26, %v1725_v32 }
0x1e47   :  { %v1734_v39 = vsel %vm1731_vm1, %v1733_v37, %v1729_v27 }
0x1e48   :  { %v1744_v41 = vmul.f32 %v1742_v33, %v1734_v39  ;;  %v1751_v20 = vsub.f32 1.0, %v1734_v39  ;;  %v1760_v22 = vmul.f32 %v1758_v3, %v1734_v39 }
0x1e4a   :  { %1746 = vrot.lane.b32.xlu2 %v1744_v41, %s3412_s27 }
0x1ea4   :  { %v1747_v42 = vpop.permute.xlu2 %1746 }
0x1ea5   :  { %v1749_v43 = vadd.f32 %v1747_v42, %v1669_v10 }
0x1ea7   :  { %3125 = vtanh.f32 %v1749_v43  ;;  %v1671_v51 = vpop.f32.mrf.mxu2 }
0x1ea8   :  { %v1672_v52 = vadd.f32 %v4013_v7, %v1671_v51 }
0x1ead   :  { %v3126_v14 = vpop.eup %3125 }
0x1eae   :  { %1753 = vrot.lane.b32.xlu0 %v3126_v14, %s3413_s6 }
0x1f20   :  { %v1754_v21 = vpop.permute.xlu0 %1753 }
0x1f21   :  { %v1756_v46 = vmul.f32 %v1754_v21, %v1751_v20 }
0x1f23   :  { %v4020_v44 = vadd.f32 %v1760_v22, %v1756_v46  ;;  %v1674_v46 = vpop.f32.mrf.mxu2 }
0x1f24   :  { %v1675_v22 = vadd.f32 %v4013_v7, %v1674_v46 }
0x1f25   :  { %1763 = vrot.lane.b32.xlu2 %v4020_v44, %s3413_s6 }
0x1f7f   :  { %v4024_v23 = vpop.permute.xlu2 %1763 }
0x1f80   :  { %2952 = vmatmul.msk.f32.vlgmr.msrb.gmra.mxu0 %vm193_vm0, %v4024_v23 }
0x1f81   :  { %1974 = vmatpush.msrb.mxu0 %v3942_v47 }
0x1f83   :  { %1975 = vmatpush.msrb.mxu0 %v3944_v30 }
0x1f85   :  { %1976 = vmatpush.msrb.mxu0 %v3954_v24 }
0x1f87   :  { %1977 = vmatpush.msrb.mxu0 %v3958_v25 }
0x1ffd   :  { %v1784_v49 = vpop.f32.mrf.mxu0 }
0x1ffe   :  { %v1807_v50 = vadd.f32 %v1784_v49, %v3993_v62  ;;  %v1787_v53 = vadd.f32 %v1784_v49, %v1672_v52 }
0x2000   :  { %1809 = vrot.lane.b32.xlu0 %v1807_v50, %s3412_s27  ;;  %v2953_v54 = vmul.f32 -1.442695, %v1787_v53 }
0x2002   :  { %3127 = vpow2.f32 %v2953_v54 }
0x2008   :  { %v3128_v55 = vpop.eup %3127 }
0x2009   :  { %v1791_v56 = vadd.f32 1.0, %v3128_v55 }
0x200b   :  { %3129 = vrcp.f32 %v1791_v56  ;;  %v1803_v0 = vand.u32 2147483648, %v1791_v56  ;;  %vm1797_vm3 = vweird.f32 %v1791_v56  ;;  %v1801_v1 = vand.u32 2147483647, %v1791_v56 }
0x200c   :  { %3131 = vpow2.f32 %v2929_v6 }
0x200d   :  { %v1804_v2 = vor.u32 1.1754944e-38, %v1803_v0  ;;  %vm1802_vm5 = vcmp.eq.f32.partialorder %v1801_v1, 8.507059e+37 }
0x2011   :  { %v3130_v57 = vpop.eup %3129 }
0x2012   :  { %v1793_v58 = vmul.f32 %v3130_v57, %v1791_v56  ;;  %vm1798_vm2 = vweird.f32 %v3130_v57  ;;  %v3132_v9 = vpop.eup %3131 }
0x2013   :  { %vm1799_vm4 = vmor %vm1797_vm3, %vm1798_vm2  ;;  %v1398_v10 = vadd.f32 1.0, %v3132_v9 }
0x2014   :  { %v1794_v59 = vsub.f32 1.0, %v1793_v58 }
0x2015   :  { %3133 = vrcp.f32 %v1398_v10  ;;  %v1459_v35 = vand.u32 2147483648, %v1398_v10  ;;  %vm1453_vm7 = vweird.f32 %v1398_v10  ;;  %v1457_v28 = vand.u32 2147483647, %v1398_v10 }
0x2016   :  { %v1795_v61 = vmul.f32 %v3130_v57, %v1794_v59 }
0x2017   :  { %v1460_v19 = vor.u32 1.1754944e-38, %v1459_v35  ;;  %vm1458_vm9 = vcmp.eq.f32.partialorder %v1457_v28, 8.507059e+37 }
0x2018   :  { %v1796_v63 = vadd.f32 %v3130_v57, %v1795_v61 }
0x201a   :  { %v1800_v34 = vsel %vm1799_vm4, %v3130_v57, %v1796_v63 }
0x201b   :  { %v1805_v11 = vsel %vm1802_vm5, %v1804_v2, %v1800_v34  ;;  %v3134_v12 = vpop.eup %3133  ;;  %v2930_v34 = vmul.f32 -1.442695, %v3902_v38 }
0x201c   :  { %v1449_v16 = vmul.f32 %v3134_v12, %v1398_v10  ;;  %vm1454_vm6 = vweird.f32 %v3134_v12  ;;  %v1819_v32 = vsub.f32 1.0, %v1805_v11  ;;  %v1825_v37 = vmul.f32 %v1805_v11, %v4020_v44 }
0x201d   :  { %vm1455_vm8 = vmor %vm1453_vm7, %vm1454_vm6 }
0x201e   :  { %v1450_v17 = vsub.f32 1.0, %v1449_v16 }
0x2020   :  { %v1451_v18 = vmul.f32 %v3134_v12, %v1450_v17 }
0x2022   :  { %v1452_v45 = vadd.f32 %v3134_v12, %v1451_v18 }
0x2024   :  { %v1456_v15 = vsel %vm1455_vm8, %v3134_v12, %v1452_v45 }
0x2025   :  { %v1461_v31 = vsel %vm1458_vm9, %v1460_v19, %v1456_v15 }
0x2072   :  { %v1810_v3 = vpop.permute.xlu0 %1809 }
0x2073   :  { %v1812_v5 = vmul.f32 %v1810_v3, %v1805_v11 }
0x2075   :  { %1814 = vrot.lane.b32.xlu2 %v1812_v5, %s3412_s27 }
0x20cf   :  { %v1815_v8 = vpop.permute.xlu2 %1814 }
0x20d0   :  { %v1817_v13 = vadd.f32 %v1815_v8, %v1672_v52 }
0x20d2   :  { %3135 = vtanh.f32 %v1817_v13 }
0x20d8   :  { %v3136_v26 = vpop.eup %3135 }
0x20d9   :  { %1821 = vrot.lane.b32.xlu0 %v3136_v26, %s3413_s6 }
0x20e1   :  { %1545 = vrot.lane.b32.xlu0 %v1461_v31, %s3413_s6 }
0x214b   :  { %v1822_v33 = vpop.permute.xlu0 %1821 }
0x214c   :  { %v1824_v27 = vmul.f32 %v1822_v33, %v1819_v32 }
0x214e   :  { %v4040_v39 = vadd.f32 %v1825_v37, %v1824_v27 }
0x2150   :  { %1828 = vrot.lane.b32.xlu1 %v4040_v39, %s3413_s6 }
0x2153   :  { %v1546_v41 = vpop.permute.xlu0 %1545 }
0x2154   :  { %2937 = vmatmul.msk.f32.gmra.mxu1 %vm193_vm0, %v1546_v41 }
0x21c2   :  { %v4045_v42 = vpop.permute.xlu1 %1828 }
0x21c3   :  { %2954 = vmatmul.msk.f32.vlgmr.msra.gmra.mxu0 %vm193_vm0, %v4045_v42 }
0x21c4   :  { %2104 = vmatpush.msra.mxu0 %v3942_v47 }
0x21c6   :  { %2105 = vmatpush.msra.mxu0 %v3944_v30 }
0x21c8   :  { %2106 = vmatpush.msra.mxu0 %v3954_v24 }
0x21ca   :  { %2107 = vmatpush.msra.mxu0 %v3958_v25 }
0x21d1   :  { %v1597_v43 = vpop.f32.mrf.mxu1 }
0x21d2   :  { %v1598_v14 = vadd.f32 %v3998_v48, %v1597_v43 }
0x21d4   :  { %2945 = vmatmul.msk.f32.gmra.mxu2 %vm193_vm0, %v1598_v14 }
0x2240   :  { %v1849_v20 = vpop.f32.mrf.mxu0 }
0x2241   :  { %v1872_v21 = vadd.f32 %v1849_v20, %v3993_v62  ;;  %v1852_v44 = vadd.f32 %v1849_v20, %v1675_v22 }
0x2243   :  { %1874 = vrot.lane.b32.xlu2 %v1872_v21, %s3412_s27  ;;  %v2955_v49 = vmul.f32 -1.442695, %v1852_v44 }
0x2245   :  { %3137 = vpow2.f32 %v2955_v49 }
0x224b   :  { %v3138_v50 = vpop.eup %3137 }
0x224c   :  { %v1856_v51 = vadd.f32 1.0, %v3138_v50 }
0x224e   :  { %3139 = vrcp.f32 %v1856_v51  ;;  %v1868_v57 = vand.u32 2147483648, %v1856_v51  ;;  %vm1862_vm11 = vweird.f32 %v1856_v51  ;;  %v1866_v58 = vand.u32 2147483647, %v1856_v51 }
0x224f   :  { %3141 = vpow2.f32 %v2930_v34 }
0x2250   :  { %v1869_v61 = vor.u32 1.1754944e-38, %v1868_v57  ;;  %vm1867_vm13 = vcmp.eq.f32.partialorder %v1866_v58, 8.507059e+37 }
0x2254   :  { %v3140_v52 = vpop.eup %3139 }
0x2255   :  { %v1858_v53 = vmul.f32 %v3140_v52, %v1856_v51  ;;  %vm1863_vm10 = vweird.f32 %v3140_v52  ;;  %v3142_v2 = vpop.eup %3141 }
0x2256   :  { %vm1864_vm12 = vmor %vm1862_vm11, %vm1863_vm10  ;;  %v1399_v3 = vadd.f32 1.0, %v3142_v2 }
0x2257   :  { %v1859_v54 = vsub.f32 1.0, %v1858_v53  ;;  %v1677_v41 = vpop.f32.mrf.mxu2 }
0x2258   :  { %3143 = vrcp.f32 %v1399_v3  ;;  %v1474_v13 = vand.u32 2147483648, %v1399_v3  ;;  %vm1468_vm15 = vweird.f32 %v1399_v3  ;;  %v1472_v17 = vand.u32 2147483647, %v1399_v3 }
0x2259   :  { %v1860_v55 = vmul.f32 %v3140_v52, %v1859_v54  ;;  %v1678_v43 = vadd.f32 %v4013_v7, %v1677_v41 }
0x225a   :  { %v1475_v18 = vor.u32 1.1754944e-38, %v1474_v13  ;;  %vm1473_vm2 = vcmp.eq.f32.partialorder %v1472_v17, 8.507059e+37 }
0x225b   :  { %v1861_v56 = vadd.f32 %v3140_v52, %v1860_v55  ;;  %v2931_v55 = vmul.f32 -1.442695, %v3926_v36 }
0x225d   :  { %v1865_v59 = vsel %vm1864_vm12, %v3140_v52, %v1861_v56 }
0x225e   :  { %v1870_v0 = vsel %vm1867_vm13, %v1869_v61, %v1865_v59  ;;  %v3144_v11 = vpop.eup %3143 }
0x225f   :  { %v1464_v5 = vmul.f32 %v3144_v11, %v1399_v3  ;;  %vm1469_vm14 = vweird.f32 %v3144_v11  ;;  %v1884_v45 = vsub.f32 1.0, %v1870_v0  ;;  %v1890_v28 = vmul.f32 %v1870_v0, %v4040_v39 }
0x2260   :  { %vm1470_vm1 = vmor %vm1468_vm15, %vm1469_vm14 }
0x2261   :  { %v1465_v10 = vsub.f32 1.0, %v1464_v5 }
0x2263   :  { %v1466_v12 = vmul.f32 %v3144_v11, %v1465_v10 }
0x2265   :  { %v1467_v8 = vadd.f32 %v3144_v11, %v1466_v12 }
0x2267   :  { %v1471_v38 = vsel %vm1470_vm1, %v3144_v11, %v1467_v8 }
0x2268   :  { %v1476_v26 = vsel %vm1473_vm2, %v1475_v18, %v1471_v38 }
0x229d   :  { %v1875_v63 = vpop.permute.xlu2 %1874 }
0x229e   :  { %v1877_v1 = vmul.f32 %v1875_v63, %v1870_v0 }
0x22a0   :  { %1879 = vrot.lane.b32.xlu1 %v1877_v1, %s3412_s27 }
0x2312   :  { %v1880_v6 = vpop.permute.xlu1 %1879 }
0x2313   :  { %v1882_v9 = vadd.f32 %v1880_v6, %v1675_v22 }
0x2315   :  { %3145 = vtanh.f32 %v1882_v9 }
0x231b   :  { %v3146_v16 = vpop.eup %3145 }
0x231c   :  { %1886 = vrot.lane.b32.xlu2 %v3146_v16, %s3413_s6 }
0x2324   :  { %1547 = vrot.lane.b32.xlu2 %v1476_v26, %s3413_s6 }
0x2376   :  { %v1887_v35 = vpop.permute.xlu2 %1886 }
0x2377   :  { %v1889_v15 = vmul.f32 %v1887_v35, %v1884_v45 }
0x2379   :  { %v4063_v19 = vadd.f32 %v1890_v28, %v1889_v15 }
0x237b   :  { %1893 = vrot.lane.b32.xlu0 %v4063_v19, %s3413_s6 }
0x237e   :  { %v1548_v31 = vpop.permute.xlu2 %1547 }
0x237f   :  { %2938 = vmatmul.msk.f32.gmra.mxu1 %vm193_vm0, %v1548_v31 }
0x23ed   :  { %v4068_v32 = vpop.permute.xlu0 %1893 }
0x23ee   :  { %2956 = vmatmul.msk.f32.vlgmr.msra.gmra.mxu3 %vm193_vm0, %v4068_v32 }
0x23ef   :  { %2169 = vmatpush.msra.mxu3 %v3942_v47 }
0x23f1   :  { %2170 = vmatpush.msra.mxu3 %v3944_v30 }
0x23f3   :  { %2171 = vmatpush.msra.mxu3 %v3954_v24 }
0x23f5   :  { %2172 = vmatpush.msra.mxu3 %v3958_v25 }
0x23fc   :  { %v1600_v33 = vpop.f32.mrf.mxu1 }
0x23fd   :  { %v1601_v37 = vadd.f32 %v3998_v48, %v1600_v33 }
0x23ff   :  { %2946 = vmatmul.msk.f32.gmra.mxu2 %vm193_vm0, %v1601_v37 }
0x2471   :  { %v1914_v27 = vpop.f32.mrf.mxu3 }
0x2472   :  { %v1937_v39 = vadd.f32 %v1914_v27, %v3993_v62  ;;  %v1917_v47 = vadd.f32 %v1914_v27, %v1678_v43 }
0x2474   :  { %1939 = vrot.lane.b32.xlu1 %v1937_v39, %s3412_s27  ;;  %v2957_v14 = vmul.f32 -1.442695, %v1917_v47 }
0x2476   :  { %3147 = vpow2.f32 %v2957_v14 }
0x247c   :  { %v3148_v30 = vpop.eup %3147 }
0x247d   :  { %v1921_v24 = vadd.f32 1.0, %v3148_v30 }
0x247f   :  { %3149 = vrcp.f32 %v1921_v24  ;;  %v1933_v44 = vand.u32 2147483648, %v1921_v24  ;;  %vm1927_vm4 = vweird.f32 %v1921_v24  ;;  %v1931_v49 = vand.u32 2147483647, %v1921_v24 }
0x2480   :  { %3151 = vpow2.f32 %v2931_v55 }
0x2481   :  { %v1934_v51 = vor.u32 1.1754944e-38, %v1933_v44  ;;  %vm1932_vm6 = vcmp.eq.f32.partialorder %v1931_v49, 8.507059e+37 }
0x2482   :  { %v1680_v35 = vpop.f32.mrf.mxu2 }
0x2483   :  { %v1681_v28 = vadd.f32 %v4013_v7, %v1680_v35 }
0x2485   :  { %v3150_v25 = vpop.eup %3149 }
0x2486   :  { %v1923_v20 = vmul.f32 %v3150_v25, %v1921_v24  ;;  %vm1928_vm3 = vweird.f32 %v3150_v25  ;;  %v3152_v56 = vpop.eup %3151 }
0x2487   :  { %vm1929_vm5 = vmor %vm1927_vm4, %vm1928_vm3  ;;  %v1400_v57 = vadd.f32 1.0, %v3152_v56 }
0x2488   :  { %v1924_v21 = vsub.f32 1.0, %v1923_v20 }
0x2489   :  { %3153 = vrcp.f32 %v1400_v57  ;;  %v1489_v3 = vand.u32 2147483648, %v1400_v57  ;;  %vm1483_vm8 = vweird.f32 %v1400_v57  ;;  %v1487_v11 = vand.u32 2147483647, %v1400_v57 }
0x248a   :  { %v1925_v46 = vmul.f32 %v3150_v25, %v1924_v21 }
0x248b   :  { %v1490_v5 = vor.u32 1.1754944e-38, %v1489_v3  ;;  %vm1488_vm10 = vcmp.eq.f32.partialorder %v1487_v11, 8.507059e+37 }
0x248c   :  { %v1926_v22 = vadd.f32 %v3150_v25, %v1925_v46  ;;  %v2932_v46 = vmul.f32 -1.442695, %v3977_v40 }
0x248e   :  { %v1930_v50 = vsel %vm1929_vm5, %v3150_v25, %v1926_v22 }
0x248f   :  { %v1935_v53 = vsel %vm1932_vm6, %v1934_v51, %v1930_v50  ;;  %v3154_v58 = vpop.eup %3153 }
0x2490   :  { %v1479_v59 = vmul.f32 %v3154_v58, %v1400_v57  ;;  %vm1484_vm7 = vweird.f32 %v3154_v58  ;;  %v1949_v9 = vsub.f32 1.0, %v1935_v53  ;;  %v1955_v12 = vmul.f32 %v1935_v53, %v4063_v19 }
0x2491   :  { %vm1485_vm9 = vmor %vm1483_vm8, %vm1484_vm7 }
0x2492   :  { %v1480_v0 = vsub.f32 1.0, %v1479_v59 }
0x2494   :  { %v1481_v1 = vmul.f32 %v3154_v58, %v1480_v0 }
0x2496   :  { %v1482_v2 = vadd.f32 %v3154_v58, %v1481_v1 }
0x2498   :  { %v1486_v36 = vsel %vm1485_vm9, %v3154_v58, %v1482_v2 }
0x2499   :  { %v1491_v6 = vsel %vm1488_vm10, %v1490_v5, %v1486_v36 }
0x24e6   :  { %v1940_v52 = vpop.permute.xlu1 %1939 }
0x24e7   :  { %v1942_v54 = vmul.f32 %v1940_v52, %v1935_v53 }
0x24e9   :  { %1944 = vrot.lane.b32.xlu0 %v1942_v54, %s3412_s27 }
0x255b   :  { %v1945_v61 = vpop.permute.xlu0 %1944 }
0x255c   :  { %v1947_v63 = vadd.f32 %v1945_v61, %v1678_v43 }
0x255e   :  { %3155 = vtanh.f32 %v1947_v63 }
0x2564   :  { %v3156_v34 = vpop.eup %3155 }
0x2565   :  { %1951 = vrot.lane.b32.xlu1 %v3156_v34, %s3413_s6 }
0x256d   :  { %1549 = vrot.lane.b32.xlu1 %v1491_v6, %s3413_s6 }
0x25d7   :  { %v1952_v10 = vpop.permute.xlu1 %1951 }
0x25d8   :  { %v1954_v16 = vmul.f32 %v1952_v10, %v1949_v9 }
0x25da   :  { %v4086_v8 = vadd.f32 %v1955_v12, %v1954_v16 }
0x25dc   :  { %1958 = vrot.lane.b32.xlu2 %v4086_v8, %s3413_s6 }
0x25df   :  { %v1550_v13 = vpop.permute.xlu1 %1549 }
0x25e0   :  { %2939 = vmatmul.msk.f32.gmra.mxu1 %vm193_vm0, %v1550_v13 }
0x2636   :  { %v4091_v17 = vpop.permute.xlu2 %1958 }
0x2637   :  { %2958 = vmatmul.msk.f32.vlgmr.msrb.gmra.mxu0 %vm193_vm0, %v4091_v17 }
0x265d   :  { %v1603_v38 = vpop.f32.mrf.mxu1 }
0x265e   :  { %v1604_v18 = vadd.f32 %v3998_v48, %v1603_v38 }
0x2660   :  { %2947 = vmatmul.msk.f32.gmra.mxu2 %vm193_vm0, %v1604_v18 }
0x26b4   :  { %v1979_v26 = vpop.f32.mrf.mxu0 }
0x26b5   :  { %v2002_v45 = vadd.f32 %v1979_v26, %v3993_v62  ;;  %v1982_v15 = vadd.f32 %v1979_v26, %v1681_v28 }
0x26b7   :  { %2004 = vrot.lane.b32.xlu0 %v2002_v45, %s3412_s27  ;;  %v2959_v19 = vmul.f32 -1.442695, %v1982_v15 }
0x26b9   :  { %3157 = vpow2.f32 %v2959_v19 }
0x26bf   :  { %v3158_v31 = vpop.eup %3157 }
0x26c0   :  { %v1986_v33 = vadd.f32 1.0, %v3158_v31 }
0x26c2   :  { %3159 = vrcp.f32 %v1986_v33  ;;  %v1998_v47 = vand.u32 2147483648, %v1986_v33  ;;  %vm1992_vm12 = vweird.f32 %v1986_v33  ;;  %v1996_v14 = vand.u32 2147483647, %v1986_v33 }
0x26c3   :  { %3161 = vpow2.f32 %v2932_v46  ;;  %v2219_v46 = vld [vmem:[#allocation6 + $0x10] sm:$0xff] }
0x26c4   :  { %v1999_v24 = vor.u32 1.1754944e-38, %v1998_v47  ;;  %vm1997_vm14 = vcmp.eq.f32.partialorder %v1996_v14, 8.507059e+37 }
0x26c8   :  { %v3160_v37 = vpop.eup %3159 }
0x26c9   :  { %v1988_v27 = vmul.f32 %v3160_v37, %v1986_v33  ;;  %vm1993_vm11 = vweird.f32 %v3160_v37  ;;  %v3162_v22 = vpop.eup %3161 }
0x26ca   :  { %vm1994_vm13 = vmor %vm1992_vm12, %vm1993_vm11  ;;  %v1401_v44 = vadd.f32 1.0, %v3162_v22  ;;  %v2218_v22 = vld [vmem:[#allocation6 + $0x8] sm:$0xff] }
0x26cb   :  { %v1989_v39 = vsub.f32 1.0, %v1988_v27 }
0x26cc   :  { %3163 = vrcp.f32 %v1401_v44  ;;  %v1504_v57 = vand.u32 2147483648, %v1401_v44  ;;  %vm1498_vm1 = vweird.f32 %v1401_v44  ;;  %v1502_v58 = vand.u32 2147483647, %v1401_v44 }
0x26cd   :  { %v1990_v41 = vmul.f32 %v3160_v37, %v1989_v39 }
0x26ce   :  { %v1505_v61 = vor.u32 1.1754944e-38, %v1504_v57  ;;  %vm1503_vm3 = vcmp.eq.f32.partialorder %v1502_v58, 8.507059e+37 }
0x26cf   :  { %v1991_v43 = vadd.f32 %v3160_v37, %v1990_v41 }
0x26d1   :  { %v1995_v30 = vsel %vm1994_vm13, %v3160_v37, %v1991_v43 }
0x26d2   :  { %v2000_v20 = vsel %vm1997_vm14, %v1999_v24, %v1995_v30  ;;  %v3164_v49 = vpop.eup %3163 }
0x26d3   :  { %v1494_v50 = vmul.f32 %v3164_v49, %v1401_v44  ;;  %vm1499_vm15 = vweird.f32 %v3164_v49  ;;  %v2014_v0 = vsub.f32 1.0, %v2000_v20  ;;  %v2020_v34 = vmul.f32 %v2000_v20, %v4086_v8  ;;  %v2217_v44 = vld [vmem:[#allocation6] sm:$0xff] }
0x26d4   :  { %vm1500_vm2 = vmor %vm1498_vm1, %vm1499_vm15 }
0x26d5   :  { %v1495_v53 = vsub.f32 1.0, %v1494_v50 }
0x26d7   :  { %v1496_v54 = vmul.f32 %v3164_v49, %v1495_v53 }
0x26d9   :  { %v1497_v56 = vadd.f32 %v3164_v49, %v1496_v54 }
0x26db   :  { %v1501_v59 = vsel %vm1500_vm2, %v3164_v49, %v1497_v56 }
0x26dc   :  { %v1506_v63 = vsel %vm1503_vm3, %v1505_v61, %v1501_v59 }
0x26e3   :  { %v1683_v12 = vpop.f32.mrf.mxu2 }
0x26e4   :  { %v1684_v16 = vadd.f32 %v4013_v7, %v1683_v12  ;;  %v4136_v12 = vld [vmem:[#allocation7 + $0x18] sm:$0xff] }
0x26e5   :  { %2431 = vmatpush.msra.mxu1 %v4136_v12  ;;  %2496 = vmatpush.msrb.mxu2 %v4136_v12 }
0x2729   :  { %v2005_v25 = vpop.permute.xlu0 %2004 }
0x272a   :  { %v2007_v21 = vmul.f32 %v2005_v25, %v2000_v20 }
0x272c   :  { %2009 = vrot.lane.b32.xlu2 %v2007_v21, %s3412_s27  ;;  %v2220_v21 = vld [vmem:[#allocation6 + $0x18] sm:$0xff] }
0x272d   :  { %2249 = vmatpush.msrb.mxu0 %v2220_v21 }
0x272f   :  { %2250 = vmatpush.msrb.mxu0 %v2219_v46 }
0x2731   :  { %2251 = vmatpush.msrb.mxu0 %v2218_v22 }
0x2733   :  { %2252 = vmatpush.msrb.mxu0 %v2217_v44 }
0x2786   :  { %v2010_v51 = vpop.permute.xlu2 %2009 }
0x2787   :  { %v2012_v52 = vadd.f32 %v2010_v51, %v1681_v28 }
0x2789   :  { %3165 = vtanh.f32 %v2012_v52 }
0x278f   :  { %v3166_v55 = vpop.eup %3165 }
0x2790   :  { %2016 = vrot.lane.b32.xlu0 %v3166_v55, %s3413_s6 }
0x2798   :  { %1551 = vrot.lane.b32.xlu0 %v1506_v63, %s3413_s6 }
0x2802   :  { %v2017_v1 = vpop.permute.xlu0 %2016 }
0x2803   :  { %v2019_v2 = vmul.f32 %v2017_v1, %v2014_v0 }
0x2805   :  { %v2021_v3 = vadd.f32 %v2020_v34, %v2019_v2 }
0x2807   :  { %2023 = vrot.lane.b32.xlu1 %v2021_v3, %s3413_s6 }
0x280a   :  { %v1552_v11 = vpop.permute.xlu0 %1551 }
0x280b   :  { %2940 = vmatmul.msk.f32.gmra.mxu1 %vm193_vm0, %v1552_v11 }
0x2879   :  { %v2024_v36 = vpop.permute.xlu1 %2023 }
0x287a   :  { %2960 = vmatmul.msk.f32.vlgmr.msrb.gmra.mxu3 %vm193_vm0, %v2024_v36 }
0x287b   :  { %2295 = vmatpush.msrb.mxu3 %v4136_v12 }
0x2888   :  { %v1606_v5 = vpop.f32.mrf.mxu1 }
0x2889   :  { %v1607_v6 = vadd.f32 %v3998_v48, %v1606_v5 }
0x288b   :  { %2948 = vmatmul.msk.f32.gmra.mxu2 %vm193_vm0, %v1607_v6 }
0x28fd   :  { %v2044_v9 = vpop.f32.mrf.mxu3 }
0x28fe   :  { %v2067_v10 = vadd.f32 %v2044_v9, %v3993_v62  ;;  %v2047_v8 = vadd.f32 %v2044_v9, %v1684_v16 }
0x2900   :  { %2069 = vrot.lane.b32.xlu2 %v2067_v10, %s3412_s27  ;;  %v2961_v13 = vmul.f32 -1.442695, %v2047_v8  ;;  %v4142_v8 = vld [vmem:[#allocation7 + $0x8] sm:$0xff] }
0x2902   :  { %3167 = vpow2.f32 %v2961_v13  ;;  %v4147_v13 = vld [vmem:[#allocation7] sm:$0xff] }
0x2908   :  { %v3168_v38 = vpop.eup %3167 }
0x2909   :  { %v2051_v18 = vadd.f32 1.0, %v3168_v38  ;;  %v3017_v38 = vld [vmem:[%s4325_s18] ss:$0 sm:$0xff] }
0x290b   :  { %3169 = vrcp.f32 %v2051_v18  ;;  %v2063_v15 = vand.u32 2147483648, %v2051_v18  ;;  %vm2057_vm5 = vweird.f32 %v2051_v18  ;;  %v2061_v19 = vand.u32 2147483647, %v2051_v18 }
0x290d   :  { %v2064_v33 = vor.u32 1.1754944e-38, %v2063_v15  ;;  %vm2062_vm7 = vcmp.eq.f32.partialorder %v2061_v19, 8.507059e+37  ;;  %v4192_v15 = vld [vmem:[%s4324_s17] ss:$0 sm:$0xff] }
0x290e   :  { %v1686_v52 = vpop.f32.mrf.mxu2 }
0x2911   :  { %v3170_v26 = vpop.eup %3169 }
0x2912   :  { %v2053_v45 = vmul.f32 %v3170_v26, %v2051_v18  ;;  %vm2058_vm4 = vweird.f32 %v3170_v26 }
0x2913   :  { %vm2059_vm6 = vmor %vm2057_vm5, %vm2058_vm4 }
0x2914   :  { %v2054_v35 = vsub.f32 1.0, %v2053_v45 }
0x2916   :  { %v2055_v48 = vmul.f32 %v3170_v26, %v2054_v35 }
0x2918   :  { %v2056_v28 = vadd.f32 %v3170_v26, %v2055_v48 }
0x291a   :  { %v2060_v31 = vsel %vm2059_vm6, %v3170_v26, %v2056_v28  ;;  %v2974_v26 = vld [vmem:[%s4357_s19 + $0x8] sm:$0xff] }
0x291b   :  { %v2065_v27 = vsel %vm2062_vm7, %v2064_v33, %v2060_v31 }
0x291c   :  { %v2079_v14 = vsub.f32 1.0, %v2065_v27  ;;  %v2085_v24 = vmul.f32 %v2065_v27, %v2021_v3 }
0x295a   :  { %v2070_v37 = vpop.permute.xlu2 %2069 }
0x295b   :  { %v2072_v39 = vmul.f32 %v2070_v37, %v2065_v27 }
0x295d   :  { %2074 = vrot.lane.b32.xlu1 %v2072_v39, %s3412_s27 }
0x29cf   :  { %v2075_v41 = vpop.permute.xlu1 %2074 }
0x29d0   :  { %v2077_v43 = vadd.f32 %v2075_v41, %v1684_v16  ;;  %v4138_v16 = vld [vmem:[#allocation7 + $0x10] sm:$0xff] }
0x29d1   :  { %2296 = vmatpush.msrb.mxu3 %v4138_v16  ;;  %2432 = vmatpush.msra.mxu1 %v4138_v16 }
0x29d2   :  { %3171 = vtanh.f32 %v2077_v43  ;;  %2497 = vmatpush.msrb.mxu2 %v4138_v16 }
0x29d3   :  { %2297 = vmatpush.msrb.mxu3 %v4142_v8  ;;  %2433 = vmatpush.msra.mxu1 %v4142_v8 }
0x29d4   :  { %2498 = vmatpush.msrb.mxu2 %v4142_v8 }
0x29d5   :  { %2298 = vmatpush.msrb.mxu3 %v4147_v13  ;;  %2434 = vmatpush.msra.mxu1 %v4147_v13 }
0x29d6   :  { %2499 = vmatpush.msrb.mxu2 %v4147_v13 }
0x29d7   :  { %2626 = vmatpush.msrb.mxu1 %v4136_v12 }
0x29d8   :  { %v3172_v47 = vpop.eup %3171  ;;  %2691 = vmatpush.msra.mxu2 %v4136_v12 }
0x29d9   :  { %2081 = vrot.lane.b32.xlu2 %v3172_v47, %s3413_s6  ;;  %2627 = vmatpush.msrb.mxu1 %v4138_v16 }
0x29da   :  { %2692 = vmatpush.msra.mxu2 %v4138_v16 }
0x29db   :  { %2628 = vmatpush.msrb.mxu1 %v4142_v8 }
0x29dc   :  { %2693 = vmatpush.msra.mxu2 %v4142_v8 }
0x29dd   :  { %2629 = vmatpush.msrb.mxu1 %v4147_v13 }
0x29de   :  { %2694 = vmatpush.msra.mxu2 %v4147_v13 }
0x2a33   :  { %v2082_v30 = vpop.permute.xlu2 %2081 }
0x2a34   :  { %v2084_v25 = vmul.f32 %v2082_v30, %v2079_v14 }
0x2a36   :  { %v2086_v20 = vadd.f32 %v2085_v24, %v2084_v25 }
0x2a38   :  { %2088 = vrot.lane.b32.xlu0 %v2086_v20, %s3413_s6 }
0x2aaa   :  { %v2089_v49 = vpop.permute.xlu0 %2088 }
0x2aab   :  { %2962 = vmatmul.msk.f32.vlgmr.msra.gmra.mxu0 %vm193_vm0, %v2089_v49 }
0x2ab3   :  { %2966 = vmatmul.msk.f32.vlgmr.msrb.gmra.mxu0 %vm193_vm0, %v4024_v23  ;;  %v1687_v23 = vadd.f32 %v4013_v7, %v1686_v52  ;;  %v1351_v52 = vadd.f32 %v4006_v4, %v3815_v29 }
0x2abb   :  { %2967 = vmatmul.msk.f32.gmra.mxu0 %vm193_vm0, %v4045_v42 }
0x2ac3   :  { %2968 = vmatmul.msk.f32.gmra.mxu0 %vm193_vm0, %v4068_v32 }
0x2acb   :  { %2969 = vmatmul.msk.f32.gmra.mxu0 %vm193_vm0, %v4091_v17 }
0x2ad3   :  { %2970 = vmatmul.msk.f32.gmra.mxu0 %vm193_vm0, %v2024_v36 }
0x2adb   :  { %2971 = vmatmul.msk.f32.gmra.mxu0 %vm193_vm0, %v2089_v49 }
0x2b28   :  { %v2109_v50 = vpop.f32.mrf.mxu0 }
0x2b29   :  { %v2132_v51 = vadd.f32 %v2109_v50, %v3993_v62  ;;  %v2112_v53 = vadd.f32 %v2109_v50, %v1687_v23 }
0x2b2b   :  { %2134 = vrot.lane.b32.xlu1 %v2132_v51, %s3412_s27  ;;  %v2963_v42 = vmul.f32 -1.442695, %v2112_v53 }
0x2b2d   :  { %3173 = vpow2.f32 %v2963_v42 }
0x2b30   :  { %v2254_v19 = vpop.f32.mrf.mxu0 }
0x2b31   :  { %v2255_v31 = vadd.f32 %v4192_v15, %v2254_v19 }
0x2b33   :  { %v3174_v54 = vpop.eup %3173 }
0x2b34   :  { %v2116_v32 = vadd.f32 1.0, %v3174_v54 }
0x2b36   :  { %3175 = vrcp.f32 %v2116_v32  ;;  %v2128_v59 = vand.u32 2147483648, %v2116_v32  ;;  %vm2122_vm9 = vweird.f32 %v2116_v32  ;;  %v2126_v61 = vand.u32 2147483647, %v2116_v32 }
0x2b38   :  { %v2129_v0 = vor.u32 1.1754944e-38, %v2128_v59  ;;  %vm2127_vm11 = vcmp.eq.f32.partialorder %v2126_v61, 8.507059e+37 }
0x2b3c   :  { %v3176_v55 = vpop.eup %3175 }
0x2b3d   :  { %v2118_v17 = vmul.f32 %v3176_v55, %v2116_v32  ;;  %vm2123_vm8 = vweird.f32 %v3176_v55 }
0x2b3e   :  { %vm2124_vm10 = vmor %vm2122_vm9, %vm2123_vm8 }
0x2b3f   :  { %v2119_v56 = vsub.f32 1.0, %v2118_v17 }
0x2b41   :  { %v2120_v57 = vmul.f32 %v3176_v55, %v2119_v56 }
0x2b43   :  { %v2121_v58 = vadd.f32 %v3176_v55, %v2120_v57 }
0x2b45   :  { %v2125_v63 = vsel %vm2124_vm10, %v3176_v55, %v2121_v58 }
0x2b46   :  { %v2130_v1 = vsel %vm2127_vm11, %v2129_v0, %v2125_v63 }
0x2b47   :  { %v2144_v36 = vsub.f32 1.0, %v2130_v1  ;;  %v2150_v6 = vmul.f32 %v2130_v1, %v2086_v20 }
0x2b9d   :  { %v2135_v7 = vpop.permute.xlu1 %2134 }
0x2b9e   :  { %v2137_v34 = vmul.f32 %v2135_v7, %v2130_v1 }
0x2ba0   :  { %2139 = vrot.lane.b32.xlu2 %v2137_v34, %s3412_s27 }
0x2ba8   :  { %2323 = vrot.lane.b32.xlu2 %v3017_v38, %s3412_s27 }
0x2bfa   :  { %v2140_v2 = vpop.permute.xlu2 %2139 }
0x2bfb   :  { %v2142_v3 = vadd.f32 %v2140_v2, %v1687_v23  ;;  %v3248_v23 = vld [vmem:[%s4316_s9] ss:$0 sm:$0xff] }
0x2bfc   :  { %v843_v53 = vadd.f32 %v3248_v23, %v3990_v60 }
0x2bfd   :  { %3177 = vtanh.f32 %v2142_v3 }
0x2bfe   :  { %v1331_v42 = vadd.f32 %v4006_v4, %v843_v53 }
0x2c00   :  { %v2925_v54 = vmul.f32 -1.442695, %v1331_v42 }
0x2c02   :  { %v4184_v35 = vpop.permute.xlu2 %2323 }
0x2c03   :  { %v3178_v11 = vpop.eup %3177 }
0x2c04   :  { %2146 = vrot.lane.b32.xlu0 %v3178_v11, %s3413_s6 }
0x2c76   :  { %v2147_v5 = vpop.permute.xlu0 %2146 }
0x2c77   :  { %v2149_v9 = vmul.f32 %v2147_v5, %v2144_v36 }
0x2c79   :  { %v4132_v10 = vadd.f32 %v2150_v6, %v2149_v9 }
0x2c7b   :  { %2153 = vrot.lane.b32.xlu1 %v4132_v10, %s3413_s6 }
0x2ced   :  { %v2154_v18 = vpop.permute.xlu1 %2153 }
0x2cee   :  { %2964 = vmatmul.msk.f32.vlgmr.msra.gmra.mxu3 %vm193_vm0, %v2154_v18  ;;  %2972 = vmatmul.msk.f32.gmra.mxu0 %vm193_vm0, %v2154_v18 }
0x2cef   :  { %2366 = vmatpush.msra.mxu3 %v4136_v12 }
0x2cf1   :  { %2367 = vmatpush.msra.mxu3 %v4138_v16 }
0x2cf3   :  { %2368 = vmatpush.msra.mxu3 %v4142_v8 }
0x2cf5   :  { %2369 = vmatpush.msra.mxu3 %v4147_v13 }
0x2cf6   :  { %2975 = vmatmul.msk.f32.vlgmr.msrb.gmra.mxu3 %vm193_vm0, %v2974_v26 }
0x2cf7   :  { %2561 = vmatpush.msrb.mxu3 %v4136_v12 }
0x2cf9   :  { %2562 = vmatpush.msrb.mxu3 %v4138_v16 }
0x2cfb   :  { %2563 = vmatpush.msrb.mxu3 %v4142_v8 }
0x2cfd   :  { %2564 = vmatpush.msrb.mxu3 %v4147_v13 }
0x2d71   :  { %v4182_v45 = vpop.f32.mrf.mxu3 }
0x2d79   :  { %v2300_v48 = vpop.f32.mrf.mxu3 }
0x2d7a   :  { %v2326_v28 = vadd.f32 %v4184_v35, %v2300_v48  ;;  %v2303_v33 = vadd.f32 %v2300_v48, %v2255_v31  ;;  %v2257_v48 = vpop.f32.mrf.mxu0 }
0x2d7c   :  { %2328 = vrot.lane.b32.xlu0 %v2326_v28, %s3412_s27  ;;  %v2976_v37 = vmul.f32 -1.442695, %v2303_v33 }
0x2d7e   :  { %3179 = vpow2.f32 %v2976_v37 }
0x2d84   :  { %2344 = vrot.lane.b32.xlu0 %v2974_v26, %s3411_s26  ;;  %v3180_v27 = vpop.eup %3179 }
0x2d85   :  { %v2307_v39 = vadd.f32 1.0, %v3180_v27 }
0x2d87   :  { %3181 = vrcp.f32 %v2307_v39  ;;  %v2319_v24 = vand.u32 2147483648, %v2307_v39  ;;  %vm2313_vm13 = vweird.f32 %v2307_v39  ;;  %v2317_v25 = vand.u32 2147483647, %v2307_v39 }
0x2d89   :  { %v2320_v21 = vor.u32 1.1754944e-38, %v2319_v24  ;;  %vm2318_vm15 = vcmp.eq.f32.partialorder %v2317_v25, 8.507059e+37 }
0x2d8d   :  { %v3182_v41 = vpop.eup %3181 }
0x2d8e   :  { %v2309_v43 = vmul.f32 %v3182_v41, %v2307_v39  ;;  %vm2314_vm12 = vweird.f32 %v3182_v41 }
0x2d8f   :  { %vm2315_vm14 = vmor %vm2313_vm13, %vm2314_vm12 }
0x2d90   :  { %v2310_v47 = vsub.f32 1.0, %v2309_v43 }
0x2d92   :  { %v2311_v14 = vmul.f32 %v3182_v41, %v2310_v47 }
0x2d94   :  { %v2312_v30 = vadd.f32 %v3182_v41, %v2311_v14 }
0x2d96   :  { %v2316_v20 = vsel %vm2315_vm14, %v3182_v41, %v2312_v30 }
0x2d97   :  { %v2321_v46 = vsel %vm2318_vm15, %v2320_v21, %v2316_v20 }
0x2d98   :  { %v2338_v29 = vsub.f32 1.0, %v2321_v46 }
0x2dee   :  { %v2329_v22 = vpop.permute.xlu0 %2328 }
0x2def   :  { %v2331_v44 = vmul.f32 %v2329_v22, %v2321_v46 }
0x2df1   :  { %2333 = vrot.lane.b32.xlu1 %v2331_v44, %s3412_s27 }
0x2df6   :  { %v2345_v58 = vpop.permute.xlu0 %2344 }
0x2df7   :  { %v2347_v63 = vmul.f32 %v2345_v58, %v2321_v46 }
0x2e63   :  { %v2334_v49 = vpop.permute.xlu1 %2333 }
0x2e64   :  { %v2336_v50 = vadd.f32 %v2334_v49, %v2255_v31 }
0x2e66   :  { %3183 = vtanh.f32 %v2336_v50 }
0x2e67   :  { %3185 = vpow2.f32 %v2925_v54 }
0x2e6c   :  { %v3184_v51 = vpop.eup %3183 }
0x2e6d   :  { %2340 = vrot.lane.b32.xlu2 %v3184_v51, %s3413_s6  ;;  %v3186_v32 = vpop.eup %3185 }
0x2e6e   :  { %v1335_v55 = vadd.f32 1.0, %v3186_v32 }
0x2e70   :  { %3187 = vrcp.f32 %v1335_v55  ;;  %v1347_v60 = vand.u32 2147483648, %v1335_v55  ;;  %vm1341_vm2 = vweird.f32 %v1335_v55  ;;  %v1345_v4 = vand.u32 2147483647, %v1335_v55 }
0x2e72   :  { %v1348_v2 = vor.u32 1.1754944e-38, %v1347_v60  ;;  %vm1346_vm4 = vcmp.eq.f32.partialorder %v1345_v4, 8.507059e+37  ;;  %v3249_v4 = vld [vmem:[%s4327_s20] ss:$0 sm:$0xff] }
0x2e75   :  { %1353 = vrot.lane.b32.xlu2 %v1351_v52, %s3412_s27 }
0x2e76   :  { %v3188_v17 = vpop.eup %3187 }
0x2e77   :  { %v1337_v56 = vmul.f32 %v3188_v17, %v1335_v55  ;;  %vm1342_vm1 = vweird.f32 %v3188_v17 }
0x2e78   :  { %vm1343_vm3 = vmor %vm1341_vm2, %vm1342_vm1 }
0x2e79   :  { %v1338_v57 = vsub.f32 1.0, %v1337_v56 }
0x2e7b   :  { %v1339_v59 = vmul.f32 %v3188_v17, %v1338_v57 }
0x2e7d   :  { %v1340_v1 = vadd.f32 %v3188_v17, %v1339_v59 }
0x2e7f   :  { %v1344_v34 = vsel %vm1343_vm3, %v3188_v17, %v1340_v1 }
0x2e80   :  { %v1349_v11 = vsel %vm1346_vm4, %v1348_v2, %v1344_v34 }
0x2e81   :  { %v1363_v25 = vsub.f32 1.0, %v1349_v11  ;;  %v1369_v21 = vmul.f32 %v1349_v11, %v3977_v40 }
0x2ec7   :  { %v2341_v61 = vpop.permute.xlu2 %2340 }
0x2ec8   :  { %v2343_v0 = vmul.f32 %v2341_v61, %v2338_v29 }
0x2eca   :  { %v4205_v7 = vadd.f32 %v2347_v63, %v2343_v0 }
0x2ecc   :  { %2350 = vrot.lane.b32.xlu1 %v4205_v7, %s3413_s6 }
0x2ecf   :  { %v1354_v3 = vpop.permute.xlu2 %1353 }
0x2ed0   :  { %v1356_v36 = vmul.f32 %v1354_v3, %v1349_v11 }
0x2ed4   :  { %1358 = vrot.lane.b32.xlu1 %v1356_v36, %s3412_s27 }
0x2f3e   :  { %v2351_v5 = vpop.permute.xlu1 %2350 }
0x2f3f   :  { %2977 = vmatmul.msk.f32.vlgmr.msra.gmra.mxu3 %vm193_vm0, %v2351_v5 }
0x2f40   :  { %2756 = vmatpush.msra.mxu3 %v4136_v12  ;;  %v2258_v12 = vadd.f32 %v4192_v15, %v2257_v48 }
0x2f42   :  { %2757 = vmatpush.msra.mxu3 %v4138_v16 }
0x2f44   :  { %2758 = vmatpush.msra.mxu3 %v4142_v8 }
0x2f46   :  { %2759 = vmatpush.msra.mxu3 %v4147_v13  ;;  %v1359_v6 = vpop.permute.xlu1 %1358 }
0x2f47   :  { %v1361_v9 = vadd.f32 %v1359_v6, %v843_v53 }
0x2f49   :  { %3189 = vtanh.f32 %v1361_v9 }
0x2f4f   :  { %v3190_v26 = vpop.eup %3189 }
0x2fc2   :  { %v2371_v38 = vpop.f32.mrf.mxu3 }
0x2fc3   :  { %v2394_v18 = vadd.f32 %v2371_v38, %v4184_v35  ;;  %v2374_v28 = vadd.f32 %v2371_v38, %v2258_v12 }
0x2fc5   :  { %2396 = vrot.lane.b32.xlu0 %v2394_v18, %s3412_s27  ;;  %v2978_v16 = vmul.f32 -1.442695, %v2374_v28 }
0x2fc7   :  { %3191 = vpow2.f32 %v2978_v16 }
0x2fcd   :  { %1365 = vrot.lane.b32.xlu0 %v3190_v26, %s3413_s6  ;;  %v3192_v8 = vpop.eup %3191 }
0x2fce   :  { %v2378_v19 = vadd.f32 1.0, %v3192_v8 }
0x2fd0   :  { %3193 = vrcp.f32 %v2378_v19  ;;  %v2390_v39 = vand.u32 2147483648, %v2378_v19  ;;  %vm2384_vm6 = vweird.f32 %v2378_v19  ;;  %v2388_v41 = vand.u32 2147483647, %v2378_v19 }
0x2fd2   :  { %v2391_v47 = vor.u32 1.1754944e-38, %v2390_v39  ;;  %vm2389_vm8 = vcmp.eq.f32.partialorder %v2388_v41, 8.507059e+37 }
0x2fd6   :  { %v3194_v13 = vpop.eup %3193 }
0x2fd7   :  { %v2380_v31 = vmul.f32 %v3194_v13, %v2378_v19  ;;  %vm2385_vm5 = vweird.f32 %v3194_v13 }
0x2fd8   :  { %vm2386_vm7 = vmor %vm2384_vm6, %vm2385_vm5 }
0x2fd9   :  { %v2381_v33 = vsub.f32 1.0, %v2380_v31 }
0x2fdb   :  { %v2382_v37 = vmul.f32 %v3194_v13, %v2381_v33 }
0x2fdd   :  { %v2383_v27 = vadd.f32 %v3194_v13, %v2382_v37 }
0x2fdf   :  { %v2387_v43 = vsel %vm2386_vm7, %v3194_v13, %v2383_v27 }
0x2fe0   :  { %v2392_v30 = vsel %vm2389_vm8, %v2391_v47, %v2387_v43 }
0x2fe1   :  { %v2406_v59 = vsub.f32 1.0, %v2392_v30  ;;  %v2412_v63 = vmul.f32 %v2392_v30, %v4205_v7  ;;  %v2260_v7 = vpop.f32.mrf.mxu0 }
0x2fe2   :  { %v2261_v36 = vadd.f32 %v4192_v15, %v2260_v7 }
0x3037   :  { %v2397_v14 = vpop.permute.xlu0 %2396 }
0x3038   :  { %v2399_v24 = vmul.f32 %v2397_v14, %v2392_v30 }
0x303a   :  { %2401 = vrot.lane.b32.xlu2 %v2399_v24, %s3412_s27 }
0x303f   :  { %v1366_v20 = vpop.permute.xlu0 %1365 }
0x3040   :  { %v1368_v46 = vmul.f32 %v1366_v20, %v1363_v25 }
0x3042   :  { %v1370_v22 = vadd.f32 %v1369_v21, %v1368_v46 }
0x3044   :  { %v2933_v44 = vmul.f32 -1.442695, %v1370_v22  ;;  %v2263_v22 = vpop.f32.mrf.mxu0 }
0x3046   :  { %3195 = vpow2.f32 %v2933_v44  ;;  %v2264_v44 = vadd.f32 %v4192_v15, %v2263_v22 }
0x304c   :  { %v3196_v49 = vpop.eup %3195  ;;  %v2266_v7 = vpop.f32.mrf.mxu0 }
0x304d   :  { %v1402_v50 = vadd.f32 1.0, %v3196_v49 }
0x304f   :  { %3197 = vrcp.f32 %v1402_v50  ;;  %v1519_v53 = vand.u32 2147483648, %v1402_v50  ;;  %v1517_v54 = vand.u32 2147483647, %v1402_v50  ;;  %vm1513_vm10 = vweird.f32 %v1402_v50 }
0x3051   :  { %v1520_v55 = vor.u32 1.1754944e-38, %v1519_v53  ;;  %vm1518_vm12 = vcmp.eq.f32.partialorder %v1517_v54, 8.507059e+37 }
0x3054   :  { %v2269_v22 = vpop.f32.mrf.mxu0 }
0x3055   :  { %v3198_v51 = vpop.eup %3197 }
0x3056   :  { %v1509_v52 = vmul.f32 %v3198_v51, %v1402_v50  ;;  %vm1514_vm9 = vweird.f32 %v3198_v51 }
0x3057   :  { %vm1515_vm11 = vmor %vm1513_vm10, %vm1514_vm9 }
0x3058   :  { %v1510_v23 = vsub.f32 1.0, %v1509_v52 }
0x305a   :  { %v1511_v42 = vmul.f32 %v3198_v51, %v1510_v23 }
0x305c   :  { %v1512_v32 = vadd.f32 %v3198_v51, %v1511_v42 }
0x305e   :  { %v1516_v17 = vsel %vm1515_vm11, %v3198_v51, %v1512_v32 }
0x305f   :  { %v1521_v40 = vsel %vm1518_vm12, %v1520_v55, %v1516_v17 }
0x3060   :  { %1553 = vrot.lane.b32.xlu2 %v1521_v40, %s3413_s6 }
0x3094   :  { %v2402_v56 = vpop.permute.xlu2 %2401 }
0x3095   :  { %v2404_v57 = vadd.f32 %v2402_v56, %v2258_v12 }
0x3097   :  { %3199 = vtanh.f32 %v2404_v57 }
0x309d   :  { %v3200_v58 = vpop.eup %3199 }
0x309e   :  { %2408 = vrot.lane.b32.xlu1 %v3200_v58, %s3413_s6 }
0x30ba   :  { %v1554_v29 = vpop.permute.xlu2 %1553 }
0x30bb   :  { %2941 = vmatmul.msk.f32.gmra.mxu1 %vm193_vm0, %v1554_v29 }
0x3110   :  { %v2409_v61 = vpop.permute.xlu1 %2408 }
0x3111   :  { %v2411_v0 = vmul.f32 %v2409_v61, %v2406_v59 }
0x3113   :  { %v2413_v1 = vadd.f32 %v2412_v63, %v2411_v0 }
0x3115   :  { %2415 = vrot.lane.b32.xlu0 %v2413_v1, %s3413_s6 }
0x3138   :  { %v1609_v60 = vpop.f32.mrf.mxu1 }
0x3139   :  { %v1610_v34 = vadd.f32 %v3249_v4, %v1609_v60 }
0x313b   :  { %2949 = vmatmul.msk.f32.gmra.mxu2 %vm193_vm0, %v1610_v34 }
0x3187   :  { %v2416_v2 = vpop.permute.xlu0 %2415 }
0x3188   :  { %2979 = vmatmul.msk.f32.vlgmr.msra.gmra.mxu1 %vm193_vm0, %v2416_v2 }
0x31be   :  { %v4238_v20 = vpop.f32.mrf.mxu2 }
0x3205   :  { %v2436_v3 = vpop.f32.mrf.mxu1 }
0x3206   :  { %v2459_v11 = vadd.f32 %v2436_v3, %v4184_v35  ;;  %v2439_v5 = vadd.f32 %v2436_v3, %v2261_v36 }
0x3208   :  { %2461 = vrot.lane.b32.xlu1 %v2459_v11, %s3412_s27  ;;  %v2980_v6 = vmul.f32 -1.442695, %v2439_v5 }
0x320a   :  { %3201 = vpow2.f32 %v2980_v6 }
0x3210   :  { %v3202_v9 = vpop.eup %3201 }
0x3211   :  { %v2443_v38 = vadd.f32 1.0, %v3202_v9 }
0x3213   :  { %3203 = vrcp.f32 %v2443_v38  ;;  %v2455_v16 = vand.u32 2147483648, %v2443_v38  ;;  %vm2449_vm14 = vweird.f32 %v2443_v38  ;;  %v2453_v8 = vand.u32 2147483647, %v2443_v38 }
0x3215   :  { %v2456_v13 = vor.u32 1.1754944e-38, %v2455_v16  ;;  %vm2454_vm1 = vcmp.eq.f32.partialorder %v2453_v8, 8.507059e+37 }
0x3219   :  { %v3204_v18 = vpop.eup %3203 }
0x321a   :  { %v2445_v26 = vmul.f32 %v3204_v18, %v2443_v38  ;;  %vm2450_vm13 = vweird.f32 %v3204_v18 }
0x321b   :  { %vm2451_vm15 = vmor %vm2449_vm14, %vm2450_vm13 }
0x321c   :  { %v2446_v48 = vsub.f32 1.0, %v2445_v26 }
0x321e   :  { %v2447_v12 = vmul.f32 %v3204_v18, %v2446_v48 }
0x3220   :  { %v2448_v28 = vadd.f32 %v3204_v18, %v2447_v12 }
0x3222   :  { %v2452_v19 = vsel %vm2451_vm15, %v3204_v18, %v2448_v28 }
0x3223   :  { %v2457_v33 = vsel %vm2454_vm1, %v2456_v13, %v2452_v19 }
0x3224   :  { %v2471_v43 = vsub.f32 1.0, %v2457_v33  ;;  %v2477_v14 = vmul.f32 %v2457_v33, %v2413_v1 }
0x327a   :  { %v2462_v31 = vpop.permute.xlu1 %2461 }
0x327b   :  { %v2464_v37 = vmul.f32 %v2462_v31, %v2457_v33 }
0x327d   :  { %2466 = vrot.lane.b32.xlu2 %v2464_v37, %s3412_s27 }
0x32d7   :  { %v2467_v27 = vpop.permute.xlu2 %2466 }
0x32d8   :  { %v2469_v39 = vadd.f32 %v2467_v27, %v2261_v36  ;;  %v2267_v36 = vadd.f32 %v4192_v15, %v2266_v7 }
0x32da   :  { %3205 = vtanh.f32 %v2469_v39 }
0x32e0   :  { %v3206_v41 = vpop.eup %3205 }
0x32e1   :  { %2473 = vrot.lane.b32.xlu0 %v3206_v41, %s3413_s6 }
0x3353   :  { %v2474_v47 = vpop.permute.xlu0 %2473 }
0x3354   :  { %v2476_v30 = vmul.f32 %v2474_v47, %v2471_v43 }
0x3356   :  { %v2478_v24 = vadd.f32 %v2477_v14, %v2476_v30 }
0x3358   :  { %2480 = vrot.lane.b32.xlu1 %v2478_v24, %s3413_s6 }
0x33ca   :  { %v2481_v25 = vpop.permute.xlu1 %2480 }
0x33cb   :  { %2981 = vmatmul.msk.f32.vlgmr.msrb.gmra.mxu2 %vm193_vm0, %v2481_v25 }
0x344e   :  { %v2501_v21 = vpop.f32.mrf.mxu2 }
0x344f   :  { %v2524_v46 = vadd.f32 %v2501_v21, %v4184_v35  ;;  %v2504_v49 = vadd.f32 %v2501_v21, %v2264_v44 }
0x3451   :  { %2526 = vrot.lane.b32.xlu2 %v2524_v46, %s3412_s27  ;;  %v2982_v50 = vmul.f32 -1.442695, %v2504_v49 }
0x3453   :  { %3207 = vpow2.f32 %v2982_v50 }
0x3459   :  { %v3208_v51 = vpop.eup %3207 }
0x345a   :  { %v2508_v52 = vadd.f32 1.0, %v3208_v51 }
0x345c   :  { %3209 = vrcp.f32 %v2508_v52  ;;  %v2520_v55 = vand.u32 2147483648, %v2508_v52  ;;  %vm2514_vm3 = vweird.f32 %v2508_v52  ;;  %v2518_v17 = vand.u32 2147483647, %v2508_v52 }
0x345e   :  { %v2521_v56 = vor.u32 1.1754944e-38, %v2520_v55  ;;  %vm2519_vm5 = vcmp.eq.f32.partialorder %v2518_v17, 8.507059e+37 }
0x3462   :  { %v3210_v23 = vpop.eup %3209 }
0x3463   :  { %v2510_v53 = vmul.f32 %v3210_v23, %v2508_v52  ;;  %vm2515_vm2 = vweird.f32 %v3210_v23 }
0x3464   :  { %vm2516_vm4 = vmor %vm2514_vm3, %vm2515_vm2 }
0x3465   :  { %v2511_v42 = vsub.f32 1.0, %v2510_v53 }
0x3467   :  { %v2512_v54 = vmul.f32 %v3210_v23, %v2511_v42 }
0x3469   :  { %v2513_v32 = vadd.f32 %v3210_v23, %v2512_v54 }
0x346b   :  { %v2517_v40 = vsel %vm2516_vm4, %v3210_v23, %v2513_v32 }
0x346c   :  { %v2522_v58 = vsel %vm2519_vm5, %v2521_v56, %v2517_v40 }
0x346d   :  { %v2536_v0 = vsub.f32 1.0, %v2522_v58  ;;  %v2542_v60 = vmul.f32 %v2522_v58, %v2478_v24 }
0x34ab   :  { %v2527_v57 = vpop.permute.xlu2 %2526 }
0x34ac   :  { %v2529_v29 = vmul.f32 %v2527_v57, %v2522_v58 }
0x34ae   :  { %2531 = vrot.lane.b32.xlu0 %v2529_v29, %s3412_s27 }
0x3520   :  { %v2532_v59 = vpop.permute.xlu0 %2531 }
0x3521   :  { %v2534_v61 = vadd.f32 %v2532_v59, %v2264_v44  ;;  %v2270_v44 = vadd.f32 %v4192_v15, %v2269_v22 }
0x3523   :  { %3211 = vtanh.f32 %v2534_v61 }
0x3529   :  { %v3212_v63 = vpop.eup %3211 }
0x352a   :  { %2538 = vrot.lane.b32.xlu1 %v3212_v63, %s3413_s6 }
0x359c   :  { %v2539_v1 = vpop.permute.xlu1 %2538 }
0x359d   :  { %v2541_v4 = vmul.f32 %v2539_v1, %v2536_v0  ;;  %v2197_v0 = vadd.f32 %v4182_v45, %v3993_v62 }
0x359f   :  { %v2543_v34 = vadd.f32 %v2542_v60, %v2541_v4 }
0x35a1   :  { %2545 = vrot.lane.b32.xlu2 %v2543_v34, %s3413_s6 }
0x35fb   :  { %v2546_v2 = vpop.permute.xlu2 %2545 }
0x35fc   :  { %2983 = vmatmul.msk.f32.vlgmr.msrb.gmra.mxu3 %vm193_vm0, %v2546_v2 }
0x367f   :  { %v2566_v3 = vpop.f32.mrf.mxu3 }
0x3680   :  { %v2589_v11 = vadd.f32 %v2566_v3, %v4184_v35  ;;  %v2569_v5 = vadd.f32 %v2566_v3, %v2267_v36 }
0x3682   :  { %2591 = vrot.lane.b32.xlu0 %v2589_v11, %s3412_s27  ;;  %v2984_v6 = vmul.f32 -1.442695, %v2569_v5  ;;  %v3250_v11 = vld [vmem:[%s4320_s13] ss:$0 sm:$0xff] }
0x3683   :  { %v1690_v62 = vadd.f32 %v3250_v11, %v4238_v20 }
0x3684   :  { %3213 = vpow2.f32 %v2984_v6 }
0x3685   :  { %v2177_v7 = vadd.f32 %v4182_v45, %v1690_v62 }
0x368a   :  { %v3214_v9 = vpop.eup %3213 }
0x368b   :  { %v2573_v38 = vadd.f32 1.0, %v3214_v9 }
0x368d   :  { %3215 = vrcp.f32 %v2573_v38  ;;  %v2585_v16 = vand.u32 2147483648, %v2573_v38  ;;  %vm2579_vm7 = vweird.f32 %v2573_v38  ;;  %v2583_v8 = vand.u32 2147483647, %v2573_v38 }
0x368f   :  { %v2586_v13 = vor.u32 1.1754944e-38, %v2585_v16  ;;  %vm2584_vm9 = vcmp.eq.f32.partialorder %v2583_v8, 8.507059e+37 }
0x3693   :  { %v3216_v18 = vpop.eup %3215 }
0x3694   :  { %v2575_v26 = vmul.f32 %v3216_v18, %v2573_v38  ;;  %vm2580_vm6 = vweird.f32 %v3216_v18 }
0x3695   :  { %vm2581_vm8 = vmor %vm2579_vm7, %vm2580_vm6 }
0x3696   :  { %v2576_v48 = vsub.f32 1.0, %v2575_v26 }
0x3698   :  { %v2577_v12 = vmul.f32 %v3216_v18, %v2576_v48 }
0x369a   :  { %v2578_v28 = vadd.f32 %v3216_v18, %v2577_v12 }
0x369c   :  { %v2582_v19 = vsel %vm2581_vm8, %v3216_v18, %v2578_v28 }
0x369d   :  { %v2587_v33 = vsel %vm2584_vm9, %v2586_v13, %v2582_v19 }
0x369e   :  { %v2601_v43 = vsub.f32 1.0, %v2587_v33  ;;  %v2607_v14 = vmul.f32 %v2587_v33, %v2543_v34 }
0x36f4   :  { %v2592_v31 = vpop.permute.xlu0 %2591 }
0x36f5   :  { %v2594_v37 = vmul.f32 %v2592_v31, %v2587_v33  ;;  %v2272_v33 = vpop.f32.mrf.mxu0 }
0x36f7   :  { %2596 = vrot.lane.b32.xlu1 %v2594_v37, %s3412_s27  ;;  %v2273_v37 = vadd.f32 %v4192_v15, %v2272_v33 }
0x3769   :  { %v2597_v27 = vpop.permute.xlu1 %2596 }
0x376a   :  { %v2599_v39 = vadd.f32 %v2597_v27, %v2267_v36  ;;  %v2965_v36 = vmul.f32 -1.442695, %v2177_v7 }
0x376c   :  { %3217 = vtanh.f32 %v2599_v39 }
0x3772   :  { %v3218_v41 = vpop.eup %3217 }
0x3773   :  { %2603 = vrot.lane.b32.xlu2 %v3218_v41, %s3413_s6 }
0x37cd   :  { %v2604_v47 = vpop.permute.xlu2 %2603 }
0x37ce   :  { %v2606_v30 = vmul.f32 %v2604_v47, %v2601_v43 }
0x37d0   :  { %v2608_v24 = vadd.f32 %v2607_v14, %v2606_v30 }
0x37d2   :  { %2610 = vrot.lane.b32.xlu0 %v2608_v24, %s3413_s6 }
0x3844   :  { %v2611_v25 = vpop.permute.xlu0 %2610 }
0x3845   :  { %2985 = vmatmul.msk.f32.vlgmr.msrb.gmra.mxu1 %vm193_vm0, %v2611_v25 }
0x38c2   :  { %v2631_v21 = vpop.f32.mrf.mxu1 }
0x38c3   :  { %v2654_v46 = vadd.f32 %v2631_v21, %v4184_v35  ;;  %v2634_v49 = vadd.f32 %v2631_v21, %v2270_v44 }
0x38c5   :  { %2656 = vrot.lane.b32.xlu1 %v2654_v46, %s3412_s27  ;;  %v2986_v50 = vmul.f32 -1.442695, %v2634_v49 }
0x38c7   :  { %3219 = vpow2.f32 %v2986_v50 }
0x38cd   :  { %v3220_v51 = vpop.eup %3219 }
0x38ce   :  { %v2638_v52 = vadd.f32 1.0, %v3220_v51 }
0x38d0   :  { %3221 = vrcp.f32 %v2638_v52  ;;  %v2650_v55 = vand.u32 2147483648, %v2638_v52  ;;  %vm2644_vm11 = vweird.f32 %v2638_v52  ;;  %v2648_v17 = vand.u32 2147483647, %v2638_v52 }
0x38d2   :  { %v2651_v56 = vor.u32 1.1754944e-38, %v2650_v55  ;;  %vm2649_vm13 = vcmp.eq.f32.partialorder %v2648_v17, 8.507059e+37 }
0x38d6   :  { %v3222_v23 = vpop.eup %3221 }
0x38d7   :  { %v2640_v53 = vmul.f32 %v3222_v23, %v2638_v52  ;;  %vm2645_vm10 = vweird.f32 %v3222_v23 }
0x38d8   :  { %vm2646_vm12 = vmor %vm2644_vm11, %vm2645_vm10 }
0x38d9   :  { %v2641_v42 = vsub.f32 1.0, %v2640_v53 }
0x38db   :  { %v2642_v54 = vmul.f32 %v3222_v23, %v2641_v42 }
0x38dd   :  { %v2643_v32 = vadd.f32 %v3222_v23, %v2642_v54 }
0x38df   :  { %v2647_v40 = vsel %vm2646_vm12, %v3222_v23, %v2643_v32 }
0x38e0   :  { %v2652_v58 = vsel %vm2649_vm13, %v2651_v56, %v2647_v40 }
0x38e1   :  { %v2666_v1 = vsub.f32 1.0, %v2652_v58  ;;  %v2672_v4 = vmul.f32 %v2652_v58, %v2608_v24 }
0x3937   :  { %v2657_v57 = vpop.permute.xlu1 %2656 }
0x3938   :  { %v2659_v29 = vmul.f32 %v2657_v57, %v2652_v58 }
0x393a   :  { %2661 = vrot.lane.b32.xlu2 %v2659_v29, %s3412_s27 }
0x3994   :  { %v2662_v59 = vpop.permute.xlu2 %2661 }
0x3995   :  { %v2664_v61 = vadd.f32 %v2662_v59, %v2270_v44 }
0x3997   :  { %3223 = vtanh.f32 %v2664_v61 }
0x3998   :  { %3225 = vpow2.f32 %v2965_v36 }
0x399d   :  { %v3224_v63 = vpop.eup %3223 }
0x399e   :  { %2668 = vrot.lane.b32.xlu0 %v3224_v63, %s3413_s6  ;;  %v3226_v5 = vpop.eup %3225 }
0x399f   :  { %v2181_v6 = vadd.f32 1.0, %v3226_v5 }
0x39a1   :  { %3227 = vrcp.f32 %v2181_v6  ;;  %v2193_v16 = vand.u32 2147483648, %v2181_v6  ;;  %vm2187_vm15 = vweird.f32 %v2181_v6  ;;  %v2191_v8 = vand.u32 2147483647, %v2181_v6 }
0x39a3   :  { %v2194_v20 = vor.u32 1.1754944e-38, %v2193_v16  ;;  %vm2192_vm2 = vcmp.eq.f32.partialorder %v2191_v8, 8.507059e+37 }
0x39a6   :  { %2199 = vrot.lane.b32.xlu0 %v2197_v0, %s3412_s27 }
0x39a7   :  { %v3228_v9 = vpop.eup %3227 }
0x39a8   :  { %v2183_v38 = vmul.f32 %v3228_v9, %v2181_v6  ;;  %vm2188_vm14 = vweird.f32 %v3228_v9 }
0x39a9   :  { %vm2189_vm1 = vmor %vm2187_vm15, %vm2188_vm14 }
0x39aa   :  { %v2184_v18 = vsub.f32 1.0, %v2183_v38 }
0x39ac   :  { %v2185_v26 = vmul.f32 %v3228_v9, %v2184_v18 }
0x39ae   :  { %v2186_v12 = vadd.f32 %v3228_v9, %v2185_v26 }
0x39b0   :  { %v2190_v45 = vsel %vm2189_vm1, %v3228_v9, %v2186_v12 }
0x39b1   :  { %v2195_v13 = vsel %vm2192_vm2, %v2194_v20, %v2190_v45 }
0x39b2   :  { %v2209_v55 = vsub.f32 1.0, %v2195_v13  ;;  %v2215_v40 = vmul.f32 %v2195_v13, %v4132_v10 }
0x3a10   :  { %v2669_v60 = vpop.permute.xlu0 %2668 }
0x3a11   :  { %v2671_v34 = vmul.f32 %v2669_v60, %v2666_v1 }
0x3a13   :  { %v4262_v2 = vadd.f32 %v2672_v4, %v2671_v34 }
0x3a15   :  { %2675 = vrot.lane.b32.xlu1 %v4262_v2, %s3413_s6 }
0x3a18   :  { %v2200_v19 = vpop.permute.xlu0 %2199 }
0x3a19   :  { %v2202_v31 = vmul.f32 %v2200_v19, %v2195_v13 }
0x3a87   :  { %v2676_v3 = vpop.permute.xlu1 %2675 }
0x3a88   :  { %2987 = vmatmul.msk.f32.vlgmr.msra.gmra.mxu2 %vm193_vm0, %v2676_v3 }
0x3b0b   :  { %v2696_v48 = vpop.f32.mrf.mxu2 }
0x3b0c   :  { %v2719_v28 = vadd.f32 %v2696_v48, %v4184_v35  ;;  %v2699_v27 = vadd.f32 %v2696_v48, %v2273_v37 }
0x3b0e   :  { %2721 = vrot.lane.b32.xlu2 %v2719_v28, %s3412_s27  ;;  %v2988_v39 = vmul.f32 -1.442695, %v2699_v27 }
0x3b10   :  { %3229 = vpow2.f32 %v2988_v39 }
0x3b16   :  { %2204 = vrot.lane.b32.xlu2 %v2202_v31, %s3412_s27  ;;  %v3230_v41 = vpop.eup %3229 }
0x3b17   :  { %v2703_v43 = vadd.f32 1.0, %v3230_v41 }
0x3b19   :  { %3231 = vrcp.f32 %v2703_v43  ;;  %v2715_v21 = vand.u32 2147483648, %v2703_v43  ;;  %vm2709_vm4 = vweird.f32 %v2703_v43  ;;  %v2713_v46 = vand.u32 2147483647, %v2703_v43 }
0x3b1b   :  { %v2716_v44 = vor.u32 1.1754944e-38, %v2715_v21  ;;  %vm2714_vm6 = vcmp.eq.f32.partialorder %v2713_v46, 8.507059e+37 }
0x3b1f   :  { %v3232_v47 = vpop.eup %3231 }
0x3b20   :  { %v2705_v14 = vmul.f32 %v3232_v47, %v2703_v43  ;;  %vm2710_vm3 = vweird.f32 %v3232_v47 }
0x3b21   :  { %vm2711_vm5 = vmor %vm2709_vm4, %vm2710_vm3 }
0x3b22   :  { %v2706_v30 = vsub.f32 1.0, %v2705_v14 }
0x3b24   :  { %v2707_v24 = vmul.f32 %v3232_v47, %v2706_v30 }
0x3b26   :  { %v2708_v25 = vadd.f32 %v3232_v47, %v2707_v24 }
0x3b28   :  { %v2712_v22 = vsel %vm2711_vm5, %v3232_v47, %v2708_v25 }
0x3b29   :  { %v2717_v50 = vsel %vm2714_vm6, %v2716_v44, %v2712_v22  ;;  %v2826_v22 = vld [vmem:[#allocation10 + $0x18] sm:$0xff]  ;;  %v2825_v44 = vld [vmem:[#allocation10 + $0x10] sm:$0xff] }
0x3b2a   :  { %v2731_v58 = vsub.f32 1.0, %v2717_v50  ;;  %v2737_v59 = vmul.f32 %v2717_v50, %v4262_v2  ;;  %2848 = vmatpush.msra.mxu1 %v2826_v22 }
0x3b2c   :  { %2849 = vmatpush.msra.mxu1 %v2825_v44 }
0x3b68   :  { %v2722_v49 = vpop.permute.xlu2 %2721 }
0x3b69   :  { %v2724_v51 = vmul.f32 %v2722_v49, %v2717_v50  ;;  %v2824_v49 = vld [vmem:[#allocation10 + $0x8] sm:$0xff]  ;;  %v2823_v50 = vld [vmem:[#allocation10] sm:$0xff] }
0x3b6a   :  { %2850 = vmatpush.msra.mxu1 %v2824_v49 }
0x3b6b   :  { %2726 = vrot.lane.b32.xlu1 %v2724_v51, %s3412_s27 }
0x3b6c   :  { %2851 = vmatpush.msra.mxu1 %v2823_v50 }
0x3b70   :  { %v2205_v52 = vpop.permute.xlu2 %2204 }
0x3b71   :  { %v2207_v23 = vadd.f32 %v2205_v52, %v1690_v62 }
0x3b73   :  { %3233 = vtanh.f32 %v2207_v23  ;;  %v3018_v23 = vld [vmem:[%s4329_s22] ss:$0 sm:$0xff] }
0x3b79   :  { %v3234_v53 = vpop.eup %3233 }
0x3b7a   :  { %2211 = vrot.lane.b32.xlu1 %v3234_v53, %s3413_s6 }
0x3bdd   :  { %v2727_v42 = vpop.permute.xlu1 %2726 }
0x3bde   :  { %v2729_v54 = vadd.f32 %v2727_v42, %v2273_v37 }
0x3be0   :  { %3235 = vtanh.f32 %v2729_v54 }
0x3be6   :  { %v3236_v32 = vpop.eup %3235 }
0x3be7   :  { %2733 = vrot.lane.b32.xlu0 %v3236_v32, %s3413_s6 }
0x3bec   :  { %v2212_v17 = vpop.permute.xlu1 %2211 }
0x3bed   :  { %v2214_v56 = vmul.f32 %v2212_v17, %v2209_v55 }
0x3bef   :  { %v2216_v57 = vadd.f32 %v2215_v40, %v2214_v56 }
0x3bf1   :  { %2233 = vrot.lane.b32.xlu0 %v2216_v57, %s3413_s6 }
0x3c59   :  { %v2734_v29 = vpop.permute.xlu0 %2733 }
0x3c5a   :  { %v2736_v61 = vmul.f32 %v2734_v29, %v2731_v58 }
0x3c5c   :  { %v2738_v63 = vadd.f32 %v2737_v59, %v2736_v61 }
0x3c5e   :  { %2740 = vrot.lane.b32.xlu2 %v2738_v63, %s3413_s6 }
0x3c63   :  { %v2234_v0 = vpop.permute.xlu0 %2233 }
0x3c64   :  { %2858 = vst.msk [vmem:[%s4331_s24] sm:$0xff] %vm193_vm0, %v2234_v0  ;;  %2973 = vmatmul.msk.f32.gmra.mxu0 %vm193_vm0, %v2234_v0 }
0x3cb8   :  { %v2741_v10 = vpop.permute.xlu2 %2740 }
0x3cb9   :  { %2989 = vmatmul.msk.f32.vlgmr.msra.gmra.mxu3 %vm193_vm0, %v2741_v10 }
0x3ce1   :  { %v2275_v4 = vpop.f32.mrf.mxu0 }
0x3ce2   :  { %v2276_v34 = vadd.f32 %v4192_v15, %v2275_v4 }
0x3d3c   :  { %v2761_v1 = vpop.f32.mrf.mxu3 }
0x3d3d   :  { %v2784_v60 = vadd.f32 %v2761_v1, %v4184_v35  ;;  %v2764_v2 = vadd.f32 %v2761_v1, %v2276_v34 }
0x3d3f   :  { %2786 = vrot.lane.b32.xlu1 %v2784_v60, %s3412_s27  ;;  %v2990_v3 = vmul.f32 -1.442695, %v2764_v2 }
0x3d41   :  { %3237 = vpow2.f32 %v2990_v3 }
0x3d47   :  { %v3238_v11 = vpop.eup %3237 }
0x3d48   :  { %v2768_v62 = vadd.f32 1.0, %v3238_v11 }
0x3d4a   :  { %3239 = vrcp.f32 %v2768_v62  ;;  %v2780_v38 = vand.u32 2147483648, %v2768_v62  ;;  %vm2774_vm8 = vweird.f32 %v2768_v62  ;;  %v2778_v35 = vand.u32 2147483647, %v2768_v62 }
0x3d4c   :  { %v2781_v26 = vor.u32 1.1754944e-38, %v2780_v38  ;;  %vm2779_vm10 = vcmp.eq.f32.partialorder %v2778_v35, 8.507059e+37 }
0x3d50   :  { %v3240_v7 = vpop.eup %3239 }
0x3d51   :  { %v2770_v36 = vmul.f32 %v3240_v7, %v2768_v62  ;;  %vm2775_vm7 = vweird.f32 %v3240_v7 }
0x3d52   :  { %vm2776_vm9 = vmor %vm2774_vm8, %vm2775_vm7 }
0x3d53   :  { %v2771_v5 = vsub.f32 1.0, %v2770_v36 }
0x3d55   :  { %v2772_v6 = vmul.f32 %v3240_v7, %v2771_v5 }
0x3d57   :  { %v2773_v9 = vadd.f32 %v3240_v7, %v2772_v6 }
0x3d59   :  { %v2777_v18 = vsel %vm2776_vm9, %v3240_v7, %v2773_v9 }
0x3d5a   :  { %v2782_v48 = vsel %vm2779_vm10, %v2781_v26, %v2777_v18 }
0x3d5b   :  { %v2796_v45 = vsub.f32 1.0, %v2782_v48  ;;  %v2802_v19 = vmul.f32 %v2782_v48, %v2738_v63 }
0x3db1   :  { %v2787_v15 = vpop.permute.xlu1 %2786 }
0x3db2   :  { %v2789_v12 = vmul.f32 %v2787_v15, %v2782_v48 }
0x3db4   :  { %2791 = vrot.lane.b32.xlu2 %v2789_v12, %s3412_s27 }
0x3e0e   :  { %v2792_v28 = vpop.permute.xlu2 %2791 }
0x3e0f   :  { %v2794_v16 = vadd.f32 %v2792_v28, %v2276_v34 }
0x3e11   :  { %3241 = vtanh.f32 %v2794_v16 }
0x3e17   :  { %v3242_v8 = vpop.eup %3241 }
0x3e18   :  { %2798 = vrot.lane.b32.xlu0 %v3242_v8, %s3413_s6 }
0x3e8a   :  { %v2799_v20 = vpop.permute.xlu0 %2798 }
0x3e8b   :  { %v2801_v13 = vmul.f32 %v2799_v20, %v2796_v45 }
0x3e8d   :  { %v2803_v31 = vadd.f32 %v2802_v19, %v2801_v13 }
0x3e8f   :  { %v2991_v33 = vmul.f32 -1.442695, %v2803_v31  ;;  %2860 = vrot.lane.b32.xlu2 %v2803_v31, %s3413_s6 }
0x3e91   :  { %3243 = vpow2.f32 %v2991_v33 }
0x3e97   :  { %v3244_v37 = vpop.eup %3243 }
0x3e98   :  { %v2807_v27 = vadd.f32 1.0, %v3244_v37 }
0x3e9a   :  { %3245 = vrcp.f32 %v2807_v27  ;;  %v2819_v47 = vand.u32 2147483648, %v2807_v27  ;;  %v2817_v30 = vand.u32 2147483647, %v2807_v27  ;;  %vm2813_vm12 = vweird.f32 %v2807_v27 }
0x3e9c   :  { %v2820_v25 = vor.u32 1.1754944e-38, %v2819_v47  ;;  %vm2818_vm14 = vcmp.eq.f32.partialorder %v2817_v30, 8.507059e+37 }
0x3ea0   :  { %v3246_v39 = vpop.eup %3245 }
0x3ea1   :  { %v2809_v41 = vmul.f32 %v3246_v39, %v2807_v27  ;;  %vm2814_vm11 = vweird.f32 %v3246_v39 }
0x3ea2   :  { %vm2815_vm13 = vmor %vm2813_vm12, %vm2814_vm11 }
0x3ea3   :  { %v2810_v43 = vsub.f32 1.0, %v2809_v41 }
0x3ea5   :  { %v2811_v14 = vmul.f32 %v3246_v39, %v2810_v43 }
0x3ea7   :  { %v2812_v24 = vadd.f32 %v3246_v39, %v2811_v14 }
0x3ea9   :  { %v2816_v21 = vsel %vm2815_vm13, %v3246_v39, %v2812_v24 }
0x3eaa   :  { %v2821_v46 = vsel %vm2818_vm14, %v2820_v25, %v2816_v21 }
0x3eab   :  { %2832 = vrot.lane.b32.xlu1 %v2821_v46, %s3413_s6 }
0x3ee9   :  { %v2861_v51 = vpop.permute.xlu2 %2860 }
0x3eea   :  { %2993 = vst.msk [vmem:[%s4331_s24 + $0x8] sm:$0xff] %vm193_vm0, %v2861_v51 }
0x3f1d   :  { %v2833_v52 = vpop.permute.xlu1 %2832 }
0x3f1e   :  { %2992 = vmatmul.msk.f32.vlgmr.msra.gmra.mxu1 %vm193_vm0, %v2833_v52 }
0x3f9b   :  { %v2853_v53 = vpop.f32.mrf.mxu1 }
0x3f9c   :  { %v2854_v42 = vadd.f32 %v3018_v23, %v2853_v53 }
0x3f9e   :  { %2856 = vst [vmem:[%s4330_s23] sm:$0xff] %v2854_v42 }
0x3f9f   :  { %2873 = vsyncpa [#allocation3], 1 }
0x3fa0   :  { %2874 = vsyncpa [#allocation5], 1 }
0x3fa1   :  { %2875 = vsyncpa [#allocation8], 1 }
0x3fa2   :  { %2876 = vsyncpa [#allocation11], 1 }

</bundles_post_ra>
